<compile_context>
chip_gen: v6e
topology: v6e:2x2x1
jax: 0.10.0
libtpu: 0.0.40
codegen_flags: <defaults>
</compile_context>

<pallas_src>
import jax
import jax.numpy as jnp
from jax import lax
from jax.experimental import pallas as pl
from jax.experimental.pallas import tpu as pltpu

EPS = 1e-5  # nn.InstanceNorm2d default eps


def dense_layer_forward(x, w0, w1, *, mm_dtype=jnp.bfloat16, samples_per_step=2,
                        out_dtype=None):
    """Pallas-TPU forward of DenseLayer (norm_type='IN', drop_rate=0 / eval).

    x : [N, C_in, H, W]           input feature map (NCHW)
    w0: [32, C_in, 3, 3]          dense_layer0 conv0 weight (OIHW, bias-free)
    w1: [growth, C_in+32, 3, 3]   dense_layer1 conv1 weight, growth = out_planes - C_in
    Returns [N, C_in + growth, H, W]  ==  torch.cat([x, h1], 1).
    """
    n, c_in, h, wd = x.shape
    c_mid = w0.shape[0]                       # 32 (fixed by the module)
    growth = w1.shape[0]
    assert w0.shape == (c_mid, c_in, 3, 3)
    assert w1.shape == (growth, c_in + c_mid, 3, 3)
    spp = samples_per_step
    assert n % spp == 0, "samples_per_step must divide the batch"
    hw = h * wd
    L = spp * hw                              # fused lane axis: samples x spatial
    out_ch = c_in + growth
    n_steps = n // spp
    if out_dtype is None:
        out_dtype = x.dtype
    inv_hw = 1.0 / hw                         # python float -> safe kernel constant

    # ---- wrapper-side layout plumbing (free / one-time) ---------------------
    # Lane-dense activations: spp samples and the spatial dims flattened onto the
    # last (lane) axis; lane index l = b*hw + p for sample b, flat position p.
    x3 = (x.reshape(n_steps, spp, c_in, hw)
           .transpose(0, 2, 1, 3)
           .reshape(n_steps, c_in, L))

    # Tap-fused weights.  Stage 1 consumes the stacked taps of ReLU(IN(x)) and
    # produces BOTH conv0's 32 channels and conv1's contribution from the
    # x-channels of cat([x, h0]); stack those on the output-channel axis.
    # Column ordering matches the stacked activation rows: col = k*c + c_idx.
    w_s1 = jnp.concatenate([w0, w1[:, :c_in]], axis=0)        # (32+g, C_in, 3, 3)
    wa = jnp.transpose(w_s1, (0, 2, 3, 1)).reshape(c_mid + growth, 9 * c_in)
    wb = jnp.transpose(w1[:, c_in:], (0, 2, 3, 1)).reshape(growth, 9 * c_mid)
    wa = wa.astype(mm_dtype)
    wb = wb.astype(mm_dtype)

    # 0/1 validity masks for the nine 3x3 taps on the flattened lane axis
    # (the conv's zero padding expressed as a lane mask; tiled per sample so the
    # circular pltpu.roll wrap across sample boundaries is also zeroed).
    rows = jnp.arange(hw, dtype=jnp.int32) // wd
    cols = jnp.arange(hw, dtype=jnp.int32) % wd
    mask_list = []
    for k in range(9):
        oh, ow = k // 3 - 1, k % 3 - 1
        ok = ((rows + oh >= 0) & (rows + oh < h) &
              (cols + ow >= 0) & (cols + ow < wd))
        mask_list.append(ok.astype(jnp.float32))
    masks = jnp.tile(jnp.stack(mask_list, axis=0), (1, spp)).reshape(9, 1, L)

    # Segment matrices for per-sample InstanceNorm over the fused lane axis.
    seg_ids = jnp.repeat(jnp.arange(spp, dtype=jnp.int32), hw)           # (L,)
    seg_r = (seg_ids[:, None] ==
             jnp.arange(spp, dtype=jnp.int32)[None, :]).astype(jnp.float32)  # (L, spp)
    seg_b = seg_r.T                                                      # (spp, L)

    # ---- kernel --------------------------------------------------------------
    def kernel(x_ref, wa_ref, wb_ref, m_ref, sr_ref, sb_ref, o_ref,
               t0_ref, t1_ref):
        x_f = x_ref[0].astype(jnp.float32)      # (C_in, L)
        masks_v = m_ref[...]                    # (9, 1, L)  f32
        segr = sr_ref[...]                      # (L, spp)   f32
        segb = sb_ref[...]                      # (spp, L)   f32

        def inorm_relu(v):
            # Per-sample InstanceNorm2d (affine=False, biased var, eps=1e-5) + ReLU.
            # Segmented stats via small f32 matmuls: one sum and one sum-of-squares
            # per sample, broadcast back with the transposed segment matrix.
            mean = jnp.dot(v, segr, preferred_element_type=jnp.float32) * inv_hw
            msq = jnp.dot(v * v, segr, preferred_element_type=jnp.float32) * inv_hw
            var = msq - mean * mean
            scale = lax.rsqrt(var + EPS)                     # (C, spp)
            shift = mean * scale                             # (C, spp)
            scale_f = jnp.dot(scale, segb, preferred_element_type=jnp.float32)
            shift_f = jnp.dot(shift, segb, preferred_element_type=jnp.float32)
            return jnp.maximum(v * scale_f - shift_f, 0.0)

        def tapped(a, c, t_ref):
            # Stack the 9 taps of a 3x3 / pad=1 conv of `a` (c, L) on the sublane
            # axis of VMEM scratch t_ref (9*c, L): row k*c + ch = tap k of channel ch.
            for k in range(9):
                oh, ow = k // 3 - 1, k % 3 - 1
                d = oh * wd + ow
                r = a if d == 0 else pltpu.roll(a, (-d) % L, 1)
                if d != 0:
                    r = r * masks_v[k]          # zero padding / cross-wrap lanes
                t_ref[k * c:(k + 1) * c, :] = r
            return t_ref[...].astype(mm_dtype)

        # Stage 1: conv0 (C_in->32) fused with conv1's x-channel slice (C_in->g)
        # as a single MXU dot with K = 9*C_in.
        a0 = inorm_relu(x_f)
        acc = jnp.dot(wa_ref[...], tapped(a0, c_in, t0_ref),
                      preferred_element_type=jnp.float32)    # (32+g, L) f32
        h0 = acc[:c_mid]                                     # conv0 output
        h1 = acc[c_mid:]                                     # conv1 partial (x chans)

        # Stage 2: conv1's h0-channel slice (32->g), single dot with K = 9*32.
        b1 = inorm_relu(h0)
        h1 = h1 + jnp.dot(wb_ref[...], tapped(b1, c_mid, t1_ref),
                          preferred_element_type=jnp.float32)

        # Fold torch.cat([x, h1], 1) into the writeback (x already in VMEM).
        o_ref[0, 0:c_in, :] = x_f.astype(o_ref.dtype)
        o_ref[0, c_in:out_ch, :] = h1.astype(o_ref.dtype)

    # TODO(synk): for large H*W (feature maps where spp*hw*4B per channel exceeds a
    # few MiB) the lane axis should be tiled in-kernel with a +-W halo and a stats
    # pre-pass, with generation-specific VMEM budgets (64 MiB on v7x).
    out = pl.pallas_call(
        kernel,
        out_shape=jax.ShapeDtypeStruct((n_steps, out_ch, L), out_dtype),
        grid_spec=pltpu.PrefetchScalarGridSpec(
            num_scalar_prefetch=0,
            grid=(n_steps,),
            in_specs=[
                pl.BlockSpec((1, c_in, L), lambda i: (i, 0, 0)),
                pl.BlockSpec((c_mid + growth, 9 * c_in), lambda i: (0, 0)),
                pl.BlockSpec((growth, 9 * c_mid), lambda i: (0, 0)),
                pl.BlockSpec((9, 1, L), lambda i: (0, 0, 0)),
                pl.BlockSpec((L, spp), lambda i: (0, 0)),
                pl.BlockSpec((spp, L), lambda i: (0, 0)),
            ],
            out_specs=pl.BlockSpec((1, out_ch, L), lambda i: (i, 0, 0)),
            scratch_shapes=[
                pltpu.VMEM((9 * c_in, L), jnp.float32),    # stage-1 stacked taps
                pltpu.VMEM((9 * c_mid, L), jnp.float32),   # stage-2 stacked taps
            ],
        ),
        compiler_params=pltpu.CompilerParams(
            dimension_semantics=("parallel",),
            vmem_limit_bytes=48 * 1024 * 1024,   # above v5e's 16 MiB / v6e-v7x 32 MiB
        ),                                       # defaults, below v7x's 64 MiB physical
    )(x3, wa, wb, masks, seg_r, seg_b)

    return (out.reshape(n_steps, out_ch, spp, hw)
               .transpose(0, 2, 1, 3)
               .reshape(n, out_ch, h, wd))


def _reference(x, w0, w1, conv_dtype=jnp.float32):
    """Pure-JAX reference of the DenseLayer forward (drop_rate=0).

    conv_dtype=bf16 reproduces the kernel's bf16 MXU operands (activations and
    weights rounded to bf16, f32 accumulation) for a like-for-like comparison."""
    def inorm(v):
        m = jnp.mean(v, axis=(2, 3), keepdims=True)
        var = jnp.var(v, axis=(2, 3), keepdims=True)
        return (v - m) * lax.rsqrt(var + EPS)

    dn = ("NCHW", "OIHW", "NCHW")

    def conv3x3(v, w):
        return lax.conv_general_dilated(
            v.astype(conv_dtype), w.astype(conv_dtype), (1, 1), ((1, 1), (1, 1)),
            dimension_numbers=dn, preferred_element_type=jnp.float32,
            precision=lax.Precision.HIGHEST)

    a0 = jnp.maximum(inorm(x), 0.0)
    h0 = conv3x3(a0, w0)                          # dense_layer0
    m = jnp.concatenate([x, h0], axis=1)          # torch.cat([x, out], 1)
    a1 = jnp.maximum(inorm(m), 0.0)
    h1 = conv3x3(a1, w1)                          # dense_layer1
    return jnp.concatenate([x, h1], axis=1)       # torch.cat([x, out], 1)


if __name__ == "__main__":
    # Small shapes consistent with the module:
    # DenseLayer(in_planes=4, out_planes=8, drop_rate=0.0, norm_type='IN');
    # conv0 always has 32 output channels, conv1 has out_planes - in_planes = 4.
    N, C_IN, H, W = 16, 4, 16, 16
    OUT_PLANES = 8
    GROWTH = OUT_PLANES - C_IN
    C_MID = 32

    key = jax.random.PRNGKey(0)
    kx, k0, k1 = jax.random.split(key, 3)
    x = jax.random.normal(kx, (N, C_IN, H, W), jnp.float32)
    w0 = jax.random.normal(k0, (C_MID, C_IN, 3, 3), jnp.float32) * 0.1
    w1 = jax.random.normal(k1, (GROWTH, C_IN + C_MID, 3, 3), jnp.float32) * 0.1

    # TODO(synk): F.dropout (drop_rate > 0, training mode) is not reproduced; the
    # kernel implements drop_rate=0 / eval-mode semantics.
    # TODO(synk): the BatchNorm branch (norm_type != 'IN') is not implemented.

    # Optimized path: bf16 MXU operands, 2 samples lane-stacked per grid step
    # -> grid of 8 steps (>=4 per TensorCore on v7x, DMA stays hidden).
    y = dense_layer_forward(x, w0, w1, mm_dtype=jnp.bfloat16, samples_per_step=2)
    jax.block_until_ready(y)
    assert y.shape == (N, OUT_PLANES, H, W)
    y_ref_bf16 = _reference(x, w0, w1, conv_dtype=jnp.bfloat16)
    assert jnp.allclose(y, y_ref_bf16, atol=1e-2, rtol=1e-2), "bf16 path mismatch"

    # Full-f32 path: tight check of the exact (f32) PyTorch module semantics,
    # with 4 samples lane-stacked per step to exercise a different segment count.
    y32 = dense_layer_forward(x, w0, w1, mm_dtype=jnp.float32, samples_per_step=4)
    jax.block_until_ready(y32)
    y_ref = _reference(x, w0, w1, conv_dtype=jnp.float32)
    assert jnp.allclose(y32, y_ref, atol=1e-3, rtol=1e-3), "f32 path mismatch"

    print("KERNEL_OK")
</pallas_src>

<mosaic_0001>
module attributes {stable_mosaic.version = 11 : i64} {
  func.func @kernel(%arg0: i32, %arg1: memref<1x4x512xf32, #tpu.memory_space<vmem>>, %arg2: memref<36x36xbf16, #tpu.memory_space<vmem>>, %arg3: memref<4x288xbf16, #tpu.memory_space<vmem>>, %arg4: memref<9x1x512xf32, #tpu.memory_space<vmem>>, %arg5: memref<512x2xf32, #tpu.memory_space<vmem>>, %arg6: memref<2x512xf32, #tpu.memory_space<vmem>>, %arg7: memref<1x8x512xf32, #tpu.memory_space<vmem>>, %arg8: memref<36x512xf32, #tpu.memory_space<vmem>>, %arg9: memref<288x512xf32, #tpu.memory_space<vmem>>) attributes {dimension_semantics = [#tpu.dimension_semantics<parallel>], iteration_bounds = array<i64: 8>, scalar_prefetch = 0 : i64, scratch_operands = 2 : i64, tpu.core_type = #tpu.core_type<tc>, window_params = [{transform_indices = @transform_0, window_bounds = array<i64: 1, 4, 512>}, {pipeline_mode = #tpu.pipeline_mode<synchronous>, transform_indices = @transform_1, window_bounds = array<i64: 36, 36>}, {pipeline_mode = #tpu.pipeline_mode<synchronous>, transform_indices = @transform_2, window_bounds = array<i64: 4, 288>}, {pipeline_mode = #tpu.pipeline_mode<synchronous>, transform_indices = @transform_3, window_bounds = array<i64: 9, 1, 512>}, {pipeline_mode = #tpu.pipeline_mode<synchronous>, transform_indices = @transform_4, window_bounds = array<i64: 512, 2>}, {pipeline_mode = #tpu.pipeline_mode<synchronous>, transform_indices = @transform_5, window_bounds = array<i64: 2, 512>}, {transform_indices = @transform_6, window_bounds = array<i64: 1, 8, 512>}]} {
    %c0 = arith.constant 0 : index
    %c0_0 = arith.constant 0 : index
    %c0_1 = arith.constant 0 : index
    %0 = vector.load %arg1[%c0, %c0_0, %c0_1] : memref<1x4x512xf32, #tpu.memory_space<vmem>>, vector<1x4x512xf32>
    %1 = vector.shape_cast %0 : vector<1x4x512xf32> to vector<4x512xf32>
    %c0_2 = arith.constant 0 : index
    %c0_3 = arith.constant 0 : index
    %c0_4 = arith.constant 0 : index
    %2 = vector.load %arg4[%c0_2, %c0_3, %c0_4] : memref<9x1x512xf32, #tpu.memory_space<vmem>>, vector<9x1x512xf32>
    %c0_5 = arith.constant 0 : index
    %c0_6 = arith.constant 0 : index
    %3 = vector.load %arg5[%c0_5, %c0_6] : memref<512x2xf32, #tpu.memory_space<vmem>>, vector<512x2xf32>
    %c0_7 = arith.constant 0 : index
    %c0_8 = arith.constant 0 : index
    %4 = vector.load %arg6[%c0_7, %c0_8] : memref<2x512xf32, #tpu.memory_space<vmem>>, vector<2x512xf32>
    %cst = arith.constant dense<0.000000e+00> : vector<4x2xf32>
    %5 = tpu.matmul %1, %3, %cst {dimension_numbers = #tpu.dot_dimension_numbers<[1], [0], [0], [1], [0, 0, 1, 1], [], []>} : vector<4x512xf32>, vector<512x2xf32>, vector<4x2xf32> -> vector<4x2xf32>
    %cst_9 = arith.constant 3.906250e-03 : f32
    %6 = vector.broadcast %cst_9 : f32 to vector<4x2xf32>
    %7 = arith.mulf %5, %6 : vector<4x2xf32>
    %8 = arith.mulf %1, %1 : vector<4x512xf32>
    %cst_10 = arith.constant dense<0.000000e+00> : vector<4x2xf32>
    %9 = tpu.matmul %8, %3, %cst_10 {dimension_numbers = #tpu.dot_dimension_numbers<[1], [0], [0], [1], [0, 0, 1, 1], [], []>} : vector<4x512xf32>, vector<512x2xf32>, vector<4x2xf32> -> vector<4x2xf32>
    %cst_11 = arith.constant 3.906250e-03 : f32
    %10 = vector.broadcast %cst_11 : f32 to vector<4x2xf32>
    %11 = arith.mulf %9, %10 : vector<4x2xf32>
    %12 = arith.mulf %7, %7 : vector<4x2xf32>
    %13 = arith.subf %11, %12 : vector<4x2xf32>
    %cst_12 = arith.constant 9.99999974E-6 : f32
    %14 = vector.broadcast %cst_12 : f32 to vector<4x2xf32>
    %15 = arith.addf %13, %14 : vector<4x2xf32>
    %16 = math.rsqrt %15 : vector<4x2xf32>
    %17 = arith.mulf %7, %16 : vector<4x2xf32>
    %cst_13 = arith.constant dense<0.000000e+00> : vector<4x512xf32>
    %18 = tpu.matmul %16, %4, %cst_13 {dimension_numbers = #tpu.dot_dimension_numbers<[1], [0], [0], [1], [0, 0, 1, 1], [], []>} : vector<4x2xf32>, vector<2x512xf32>, vector<4x512xf32> -> vector<4x512xf32>
    %cst_14 = arith.constant dense<0.000000e+00> : vector<4x512xf32>
    %19 = tpu.matmul %17, %4, %cst_14 {dimension_numbers = #tpu.dot_dimension_numbers<[1], [0], [0], [1], [0, 0, 1, 1], [], []>} : vector<4x2xf32>, vector<2x512xf32>, vector<4x512xf32> -> vector<4x512xf32>
    %20 = arith.mulf %1, %18 : vector<4x512xf32>
    %21 = arith.subf %20, %19 : vector<4x512xf32>
    %cst_15 = arith.constant 0.000000e+00 : f32
    %22 = vector.broadcast %cst_15 : f32 to vector<4x512xf32>
    %23 = arith.maximumf %21, %22 : vector<4x512xf32>
    %c0_16 = arith.constant 0 : index
    %c0_17 = arith.constant 0 : index
    %24 = vector.load %arg2[%c0_16, %c0_17] : memref<36x36xbf16, #tpu.memory_space<vmem>>, vector<36x36xbf16>
    %c17_i32 = arith.constant 17 : i32
    %25 = tpu.dynamic_rotate %23 by %c17_i32 dim 1 : vector<4x512xf32>, i32 -> vector<4x512xf32>
    %26 = vector.extract_strided_slice %2 {offsets = [0, 0, 0], sizes = [1, 1, 512], strides = [1, 1, 1]} : vector<9x1x512xf32> to vector<1x1x512xf32>
    %27 = vector.shape_cast %26 : vector<1x1x512xf32> to vector<1x512xf32>
    %28 = vector.broadcast %27 : vector<1x512xf32> to vector<4x512xf32>
    %29 = arith.mulf %25, %28 : vector<4x512xf32>
    %c0_18 = arith.constant 0 : index
    %c0_19 = arith.constant 0 : index
    %30 = vector.load %arg8[%c0_18, %c0_19] : memref<36x512xf32, #tpu.memory_space<vmem>>, vector<4x512xf32>
    tpu.vector_store %arg8[%c0_18, %c0_19], %29 {strides = array<i32>} : memref<36x512xf32, #tpu.memory_space<vmem>>, vector<4x512xf32>,
    %c16_i32 = arith.constant 16 : i32
    %31 = tpu.dynamic_rotate %23 by %c16_i32 dim 1 : vector<4x512xf32>, i32 -> vector<4x512xf32>
    %32 = vector.extract_strided_slice %2 {offsets = [1, 0, 0], sizes = [1, 1, 512], strides = [1, 1, 1]} : vector<9x1x512xf32> to vector<1x1x512xf32>
    %33 = vector.shape_cast %32 : vector<1x1x512xf32> to vector<1x512xf32>
    %34 = vector.broadcast %33 : vector<1x512xf32> to vector<4x512xf32>
    %35 = arith.mulf %31, %34 : vector<4x512xf32>
    %c4 = arith.constant 4 : index
    %c0_20 = arith.constant 0 : index
    %36 = vector.load %arg8[%c4, %c0_20] : memref<36x512xf32, #tpu.memory_space<vmem>>, vector<4x512xf32>
    tpu.vector_store %arg8[%c4, %c0_20], %35 {strides = array<i32>} : memref<36x512xf32, #tpu.memory_space<vmem>>, vector<4x512xf32>,
    %c15_i32 = arith.constant 15 : i32
    %37 = tpu.dynamic_rotate %23 by %c15_i32 dim 1 : vector<4x512xf32>, i32 -> vector<4x512xf32>
    %38 = vector.extract_strided_slice %2 {offsets = [2, 0, 0], sizes = [1, 1, 512], strides = [1, 1, 1]} : vector<9x1x512xf32> to vector<1x1x512xf32>
    %39 = vector.shape_cast %38 : vector<1x1x512xf32> to vector<1x512xf32>
    %40 = vector.broadcast %39 : vector<1x512xf32> to vector<4x512xf32>
    %41 = arith.mulf %37, %40 : vector<4x512xf32>
    %c8 = arith.constant 8 : index
    %c0_21 = arith.constant 0 : index
    %42 = vector.load %arg8[%c8, %c0_21] : memref<36x512xf32, #tpu.memory_space<vmem>>, vector<4x512xf32>
    tpu.vector_store %arg8[%c8, %c0_21], %41 {strides = array<i32>} : memref<36x512xf32, #tpu.memory_space<vmem>>, vector<4x512xf32>,
    %c1_i32 = arith.constant 1 : i32
    %43 = tpu.dynamic_rotate %23 by %c1_i32 dim 1 : vector<4x512xf32>, i32 -> vector<4x512xf32>
    %44 = vector.extract_strided_slice %2 {offsets = [3, 0, 0], sizes = [1, 1, 512], strides = [1, 1, 1]} : vector<9x1x512xf32> to vector<1x1x512xf32>
    %45 = vector.shape_cast %44 : vector<1x1x512xf32> to vector<1x512xf32>
    %46 = vector.broadcast %45 : vector<1x512xf32> to vector<4x512xf32>
    %47 = arith.mulf %43, %46 : vector<4x512xf32>
    %c12 = arith.constant 12 : index
    %c0_22 = arith.constant 0 : index
    %48 = vector.load %arg8[%c12, %c0_22] : memref<36x512xf32, #tpu.memory_space<vmem>>, vector<4x512xf32>
    tpu.vector_store %arg8[%c12, %c0_22], %47 {strides = array<i32>} : memref<36x512xf32, #tpu.memory_space<vmem>>, vector<4x512xf32>,
    %c16 = arith.constant 16 : index
    %c0_23 = arith.constant 0 : index
    %49 = vector.load %arg8[%c16, %c0_23] : memref<36x512xf32, #tpu.memory_space<vmem>>, vector<4x512xf32>
    tpu.vector_store %arg8[%c16, %c0_23], %23 {strides = array<i32>} : memref<36x512xf32, #tpu.memory_space<vmem>>, vector<4x512xf32>,
    %c511_i32 = arith.constant 511 : i32
    %50 = tpu.dynamic_rotate %23 by %c511_i32 dim 1 : vector<4x512xf32>, i32 -> vector<4x512xf32>
    %51 = vector.extract_strided_slice %2 {offsets = [5, 0, 0], sizes = [1, 1, 512], strides = [1, 1, 1]} : vector<9x1x512xf32> to vector<1x1x512xf32>
    %52 = vector.shape_cast %51 : vector<1x1x512xf32> to vector<1x512xf32>
    %53 = vector.broadcast %52 : vector<1x512xf32> to vector<4x512xf32>
    %54 = arith.mulf %50, %53 : vector<4x512xf32>
    %c20 = arith.constant 20 : index
    %c0_24 = arith.constant 0 : index
    %55 = vector.load %arg8[%c20, %c0_24] : memref<36x512xf32, #tpu.memory_space<vmem>>, vector<4x512xf32>
    tpu.vector_store %arg8[%c20, %c0_24], %54 {strides = array<i32>} : memref<36x512xf32, #tpu.memory_space<vmem>>, vector<4x512xf32>,
    %c497_i32 = arith.constant 497 : i32
    %56 = tpu.dynamic_rotate %23 by %c497_i32 dim 1 : vector<4x512xf32>, i32 -> vector<4x512xf32>
    %57 = vector.extract_strided_slice %2 {offsets = [6, 0, 0], sizes = [1, 1, 512], strides = [1, 1, 1]} : vector<9x1x512xf32> to vector<1x1x512xf32>
    %58 = vector.shape_cast %57 : vector<1x1x512xf32> to vector<1x512xf32>
    %59 = vector.broadcast %58 : vector<1x512xf32> to vector<4x512xf32>
    %60 = arith.mulf %56, %59 : vector<4x512xf32>
    %c24 = arith.constant 24 : index
    %c0_25 = arith.constant 0 : index
    %61 = vector.load %arg8[%c24, %c0_25] : memref<36x512xf32, #tpu.memory_space<vmem>>, vector<4x512xf32>
    tpu.vector_store %arg8[%c24, %c0_25], %60 {strides = array<i32>} : memref<36x512xf32, #tpu.memory_space<vmem>>, vector<4x512xf32>,
    %c496_i32 = arith.constant 496 : i32
    %62 = tpu.dynamic_rotate %23 by %c496_i32 dim 1 : vector<4x512xf32>, i32 -> vector<4x512xf32>
    %63 = vector.extract_strided_slice %2 {offsets = [7, 0, 0], sizes = [1, 1, 512], strides = [1, 1, 1]} : vector<9x1x512xf32> to vector<1x1x512xf32>
    %64 = vector.shape_cast %63 : vector<1x1x512xf32> to vector<1x512xf32>
    %65 = vector.broadcast %64 : vector<1x512xf32> to vector<4x512xf32>
    %66 = arith.mulf %62, %65 : vector<4x512xf32>
    %c28 = arith.constant 28 : index
    %c0_26 = arith.constant 0 : index
    %67 = vector.load %arg8[%c28, %c0_26] : memref<36x512xf32, #tpu.memory_space<vmem>>, vector<4x512xf32>
    tpu.vector_store %arg8[%c28, %c0_26], %66 {strides = array<i32>} : memref<36x512xf32, #tpu.memory_space<vmem>>, vector<4x512xf32>,
    %c495_i32 = arith.constant 495 : i32
    %68 = tpu.dynamic_rotate %23 by %c495_i32 dim 1 : vector<4x512xf32>, i32 -> vector<4x512xf32>
    %69 = vector.extract_strided_slice %2 {offsets = [8, 0, 0], sizes = [1, 1, 512], strides = [1, 1, 1]} : vector<9x1x512xf32> to vector<1x1x512xf32>
    %70 = vector.shape_cast %69 : vector<1x1x512xf32> to vector<1x512xf32>
    %71 = vector.broadcast %70 : vector<1x512xf32> to vector<4x512xf32>
    %72 = arith.mulf %68, %71 : vector<4x512xf32>
    %c32 = arith.constant 32 : index
    %c0_27 = arith.constant 0 : index
    %73 = vector.load %arg8[%c32, %c0_27] : memref<36x512xf32, #tpu.memory_space<vmem>>, vector<4x512xf32>
    tpu.vector_store %arg8[%c32, %c0_27], %72 {strides = array<i32>} : memref<36x512xf32, #tpu.memory_space<vmem>>, vector<4x512xf32>,
    %c0_28 = arith.constant 0 : index
    %c0_29 = arith.constant 0 : index
    %74 = vector.load %arg8[%c0_28, %c0_29] : memref<36x512xf32, #tpu.memory_space<vmem>>, vector<36x512xf32>
    %75 = arith.truncf %74 : vector<36x512xf32> to vector<36x512xbf16>
    %cst_30 = arith.constant dense<0.000000e+00> : vector<36x512xf32>
    %76 = tpu.matmul %24, %75, %cst_30 {dimension_numbers = #tpu.dot_dimension_numbers<[1], [0], [0], [1], [0, 0, 1, 1], [], []>} : vector<36x36xbf16>, vector<36x512xbf16>, vector<36x512xf32> -> vector<36x512xf32>
    %77 = vector.extract_strided_slice %76 {offsets = [0, 0], sizes = [32, 512], strides = [1, 1]} : vector<36x512xf32> to vector<32x512xf32>
    %78 = vector.extract_strided_slice %76 {offsets = [32, 0], sizes = [4, 512], strides = [1, 1]} : vector<36x512xf32> to vector<4x512xf32>
    %cst_31 = arith.constant dense<0.000000e+00> : vector<32x2xf32>
    %79 = tpu.matmul %77, %3, %cst_31 {dimension_numbers = #tpu.dot_dimension_numbers<[1], [0], [0], [1], [0, 0, 1, 1], [], []>} : vector<32x512xf32>, vector<512x2xf32>, vector<32x2xf32> -> vector<32x2xf32>
    %cst_32 = arith.constant 3.906250e-03 : f32
    %80 = vector.broadcast %cst_32 : f32 to vector<32x2xf32>
    %81 = arith.mulf %79, %80 : vector<32x2xf32>
    %82 = arith.mulf %77, %77 : vector<32x512xf32>
    %cst_33 = arith.constant dense<0.000000e+00> : vector<32x2xf32>
    %83 = tpu.matmul %82, %3, %cst_33 {dimension_numbers = #tpu.dot_dimension_numbers<[1], [0], [0], [1], [0, 0, 1, 1], [], []>} : vector<32x512xf32>, vector<512x2xf32>, vector<32x2xf32> -> vector<32x2xf32>
    %cst_34 = arith.constant 3.906250e-03 : f32
    %84 = vector.broadcast %cst_34 : f32 to vector<32x2xf32>
    %85 = arith.mulf %83, %84 : vector<32x2xf32>
    %86 = arith.mulf %81, %81 : vector<32x2xf32>
    %87 = arith.subf %85, %86 : vector<32x2xf32>
    %cst_35 = arith.constant 9.99999974E-6 : f32
    %88 = vector.broadcast %cst_35 : f32 to vector<32x2xf32>
    %89 = arith.addf %87, %88 : vector<32x2xf32>
    %90 = math.rsqrt %89 : vector<32x2xf32>
    %91 = arith.mulf %81, %90 : vector<32x2xf32>
    %cst_36 = arith.constant dense<0.000000e+00> : vector<32x512xf32>
    %92 = tpu.matmul %90, %4, %cst_36 {dimension_numbers = #tpu.dot_dimension_numbers<[1], [0], [0], [1], [0, 0, 1, 1], [], []>} : vector<32x2xf32>, vector<2x512xf32>, vector<32x512xf32> -> vector<32x512xf32>
    %cst_37 = arith.constant dense<0.000000e+00> : vector<32x512xf32>
    %93 = tpu.matmul %91, %4, %cst_37 {dimension_numbers = #tpu.dot_dimension_numbers<[1], [0], [0], [1], [0, 0, 1, 1], [], []>} : vector<32x2xf32>, vector<2x512xf32>, vector<32x512xf32> -> vector<32x512xf32>
    %94 = arith.mulf %77, %92 : vector<32x512xf32>
    %95 = arith.subf %94, %93 : vector<32x512xf32>
    %cst_38 = arith.constant 0.000000e+00 : f32
    %96 = vector.broadcast %cst_38 : f32 to vector<32x512xf32>
    %97 = arith.maximumf %95, %96 : vector<32x512xf32>
    %c0_39 = arith.constant 0 : index
    %c0_40 = arith.constant 0 : index
    %98 = vector.load %arg3[%c0_39, %c0_40] : memref<4x288xbf16, #tpu.memory_space<vmem>>, vector<4x288xbf16>
    %c17_i32_41 = arith.constant 17 : i32
    %99 = tpu.dynamic_rotate %97 by %c17_i32_41 dim 1 : vector<32x512xf32>, i32 -> vector<32x512xf32>
    %100 = vector.extract_strided_slice %2 {offsets = [0, 0, 0], sizes = [1, 1, 512], strides = [1, 1, 1]} : vector<9x1x512xf32> to vector<1x1x512xf32>
    %101 = vector.shape_cast %100 : vector<1x1x512xf32> to vector<1x512xf32>
    %102 = vector.broadcast %101 : vector<1x512xf32> to vector<32x512xf32>
    %103 = arith.mulf %99, %102 : vector<32x512xf32>
    %c0_42 = arith.constant 0 : index
    %c0_43 = arith.constant 0 : index
    %104 = vector.load %arg9[%c0_42, %c0_43] : memref<288x512xf32, #tpu.memory_space<vmem>>, vector<32x512xf32>
    tpu.vector_store %arg9[%c0_42, %c0_43], %103 {strides = array<i32>} : memref<288x512xf32, #tpu.memory_space<vmem>>, vector<32x512xf32>,
    %c16_i32_44 = arith.constant 16 : i32
    %105 = tpu.dynamic_rotate %97 by %c16_i32_44 dim 1 : vector<32x512xf32>, i32 -> vector<32x512xf32>
    %106 = vector.extract_strided_slice %2 {offsets = [1, 0, 0], sizes = [1, 1, 512], strides = [1, 1, 1]} : vector<9x1x512xf32> to vector<1x1x512xf32>
    %107 = vector.shape_cast %106 : vector<1x1x512xf32> to vector<1x512xf32>
    %108 = vector.broadcast %107 : vector<1x512xf32> to vector<32x512xf32>
    %109 = arith.mulf %105, %108 : vector<32x512xf32>
    %c32_45 = arith.constant 32 : index
    %c0_46 = arith.constant 0 : index
    %110 = vector.load %arg9[%c32_45, %c0_46] : memref<288x512xf32, #tpu.memory_space<vmem>>, vector<32x512xf32>
    tpu.vector_store %arg9[%c32_45, %c0_46], %109 {strides = array<i32>} : memref<288x512xf32, #tpu.memory_space<vmem>>, vector<32x512xf32>,
    %c15_i32_47 = arith.constant 15 : i32
    %111 = tpu.dynamic_rotate %97 by %c15_i32_47 dim 1 : vector<32x512xf32>, i32 -> vector<32x512xf32>
    %112 = vector.extract_strided_slice %2 {offsets = [2, 0, 0], sizes = [1, 1, 512], strides = [1, 1, 1]} : vector<9x1x512xf32> to vector<1x1x512xf32>
    %113 = vector.shape_cast %112 : vector<1x1x512xf32> to vector<1x512xf32>
    %114 = vector.broadcast %113 : vector<1x512xf32> to vector<32x512xf32>
    %115 = arith.mulf %111, %114 : vector<32x512xf32>
    %c64 = arith.constant 64 : index
    %c0_48 = arith.constant 0 : index
    %116 = vector.load %arg9[%c64, %c0_48] : memref<288x512xf32, #tpu.memory_space<vmem>>, vector<32x512xf32>
    tpu.vector_store %arg9[%c64, %c0_48], %115 {strides = array<i32>} : memref<288x512xf32, #tpu.memory_space<vmem>>, vector<32x512xf32>,
    %c1_i32_49 = arith.constant 1 : i32
    %117 = tpu.dynamic_rotate %97 by %c1_i32_49 dim 1 : vector<32x512xf32>, i32 -> vector<32x512xf32>
    %118 = vector.extract_strided_slice %2 {offsets = [3, 0, 0], sizes = [1, 1, 512], strides = [1, 1, 1]} : vector<9x1x512xf32> to vector<1x1x512xf32>
    %119 = vector.shape_cast %118 : vector<1x1x512xf32> to vector<1x512xf32>
    %120 = vector.broadcast %119 : vector<1x512xf32> to vector<32x512xf32>
    %121 = arith.mulf %117, %120 : vector<32x512xf32>
    %c96 = arith.constant 96 : index
    %c0_50 = arith.constant 0 : index
    %122 = vector.load %arg9[%c96, %c0_50] : memref<288x512xf32, #tpu.memory_space<vmem>>, vector<32x512xf32>
    tpu.vector_store %arg9[%c96, %c0_50], %121 {strides = array<i32>} : memref<288x512xf32, #tpu.memory_space<vmem>>, vector<32x512xf32>,
    %c128 = arith.constant 128 : index
    %c0_51 = arith.constant 0 : index
    %123 = vector.load %arg9[%c128, %c0_51] : memref<288x512xf32, #tpu.memory_space<vmem>>, vector<32x512xf32>
    tpu.vector_store %arg9[%c128, %c0_51], %97 {strides = array<i32>} : memref<288x512xf32, #tpu.memory_space<vmem>>, vector<32x512xf32>,
    %c511_i32_52 = arith.constant 511 : i32
    %124 = tpu.dynamic_rotate %97 by %c511_i32_52 dim 1 : vector<32x512xf32>, i32 -> vector<32x512xf32>
    %125 = vector.extract_strided_slice %2 {offsets = [5, 0, 0], sizes = [1, 1, 512], strides = [1, 1, 1]} : vector<9x1x512xf32> to vector<1x1x512xf32>
    %126 = vector.shape_cast %125 : vector<1x1x512xf32> to vector<1x512xf32>
    %127 = vector.broadcast %126 : vector<1x512xf32> to vector<32x512xf32>
    %128 = arith.mulf %124, %127 : vector<32x512xf32>
    %c160 = arith.constant 160 : index
    %c0_53 = arith.constant 0 : index
    %129 = vector.load %arg9[%c160, %c0_53] : memref<288x512xf32, #tpu.memory_space<vmem>>, vector<32x512xf32>
    tpu.vector_store %arg9[%c160, %c0_53], %128 {strides = array<i32>} : memref<288x512xf32, #tpu.memory_space<vmem>>, vector<32x512xf32>,
    %c497_i32_54 = arith.constant 497 : i32
    %130 = tpu.dynamic_rotate %97 by %c497_i32_54 dim 1 : vector<32x512xf32>, i32 -> vector<32x512xf32>
    %131 = vector.extract_strided_slice %2 {offsets = [6, 0, 0], sizes = [1, 1, 512], strides = [1, 1, 1]} : vector<9x1x512xf32> to vector<1x1x512xf32>
    %132 = vector.shape_cast %131 : vector<1x1x512xf32> to vector<1x512xf32>
    %133 = vector.broadcast %132 : vector<1x512xf32> to vector<32x512xf32>
    %134 = arith.mulf %130, %133 : vector<32x512xf32>
    %c192 = arith.constant 192 : index
    %c0_55 = arith.constant 0 : index
    %135 = vector.load %arg9[%c192, %c0_55] : memref<288x512xf32, #tpu.memory_space<vmem>>, vector<32x512xf32>
    tpu.vector_store %arg9[%c192, %c0_55], %134 {strides = array<i32>} : memref<288x512xf32, #tpu.memory_space<vmem>>, vector<32x512xf32>,
    %c496_i32_56 = arith.constant 496 : i32
    %136 = tpu.dynamic_rotate %97 by %c496_i32_56 dim 1 : vector<32x512xf32>, i32 -> vector<32x512xf32>
    %137 = vector.extract_strided_slice %2 {offsets = [7, 0, 0], sizes = [1, 1, 512], strides = [1, 1, 1]} : vector<9x1x512xf32> to vector<1x1x512xf32>
    %138 = vector.shape_cast %137 : vector<1x1x512xf32> to vector<1x512xf32>
    %139 = vector.broadcast %138 : vector<1x512xf32> to vector<32x512xf32>
    %140 = arith.mulf %136, %139 : vector<32x512xf32>
    %c224 = arith.constant 224 : index
    %c0_57 = arith.constant 0 : index
    %141 = vector.load %arg9[%c224, %c0_57] : memref<288x512xf32, #tpu.memory_space<vmem>>, vector<32x512xf32>
    tpu.vector_store %arg9[%c224, %c0_57], %140 {strides = array<i32>} : memref<288x512xf32, #tpu.memory_space<vmem>>, vector<32x512xf32>,
    %c495_i32_58 = arith.constant 495 : i32
    %142 = tpu.dynamic_rotate %97 by %c495_i32_58 dim 1 : vector<32x512xf32>, i32 -> vector<32x512xf32>
    %143 = vector.extract_strided_slice %2 {offsets = [8, 0, 0], sizes = [1, 1, 512], strides = [1, 1, 1]} : vector<9x1x512xf32> to vector<1x1x512xf32>
    %144 = vector.shape_cast %143 : vector<1x1x512xf32> to vector<1x512xf32>
    %145 = vector.broadcast %144 : vector<1x512xf32> to vector<32x512xf32>
    %146 = arith.mulf %142, %145 : vector<32x512xf32>
    %c256 = arith.constant 256 : index
    %c0_59 = arith.constant 0 : index
    %147 = vector.load %arg9[%c256, %c0_59] : memref<288x512xf32, #tpu.memory_space<vmem>>, vector<32x512xf32>
    tpu.vector_store %arg9[%c256, %c0_59], %146 {strides = array<i32>} : memref<288x512xf32, #tpu.memory_space<vmem>>, vector<32x512xf32>,
    %c0_60 = arith.constant 0 : index
    %c0_61 = arith.constant 0 : index
    %148 = vector.load %arg9[%c0_60, %c0_61] : memref<288x512xf32, #tpu.memory_space<vmem>>, vector<288x512xf32>
    %149 = arith.truncf %148 : vector<288x512xf32> to vector<288x512xbf16>
    %cst_62 = arith.constant dense<0.000000e+00> : vector<4x512xf32>
    %150 = tpu.matmul %98, %149, %cst_62 {dimension_numbers = #tpu.dot_dimension_numbers<[1], [0], [0], [1], [0, 0, 1, 1], [], []>} : vector<4x288xbf16>, vector<288x512xbf16>, vector<4x512xf32> -> vector<4x512xf32>
    %151 = arith.addf %78, %150 : vector<4x512xf32>
    %c0_63 = arith.constant 0 : index
    %c0_64 = arith.constant 0 : index
    %c0_65 = arith.constant 0 : index
    %152 = vector.load %arg7[%c0_63, %c0_64, %c0_65] : memref<1x8x512xf32, #tpu.memory_space<vmem>>, vector<1x4x512xf32>
    %153 = vector.shape_cast %152 : vector<1x4x512xf32> to vector<4x512xf32>
    %154 = vector.shape_cast %1 : vector<4x512xf32> to vector<1x4x512xf32>
    tpu.vector_store %arg7[%c0_63, %c0_64, %c0_65], %154 {strides = array<i32>} : memref<1x8x512xf32, #tpu.memory_space<vmem>>, vector<1x4x512xf32>,
    %c0_66 = arith.constant 0 : index
    %c4_67 = arith.constant 4 : index
    %c0_68 = arith.constant 0 : index
    %155 = vector.load %arg7[%c0_66, %c4_67, %c0_68] : memref<1x8x512xf32, #tpu.memory_space<vmem>>, vector<1x4x512xf32>
    %156 = vector.shape_cast %155 : vector<1x4x512xf32> to vector<4x512xf32>
    %157 = vector.shape_cast %151 : vector<4x512xf32> to vector<1x4x512xf32>
    tpu.vector_store %arg7[%c0_66, %c4_67, %c0_68], %157 {strides = array<i32>} : memref<1x8x512xf32, #tpu.memory_space<vmem>>, vector<1x4x512xf32>,
    return
  }
  func.func @transform_0(%arg0: i32) -> (i32, i32, i32) {
    %c0_i32 = arith.constant 0 : i32
    %c0_i32_0 = arith.constant 0 : i32
    %c0_i32_1 = arith.constant 0 : i32
    return %arg0, %c0_i32, %c0_i32_0 : i32, i32, i32
  }
  func.func @transform_1(%arg0: i32) -> (i32, i32) {
    %c0_i32 = arith.constant 0 : i32
    %c0_i32_0 = arith.constant 0 : i32
    %c0_i32_1 = arith.constant 0 : i32
    return %c0_i32, %c0_i32_0 : i32, i32
  }
  func.func @transform_2(%arg0: i32) -> (i32, i32) {
    %c0_i32 = arith.constant 0 : i32
    %c0_i32_0 = arith.constant 0 : i32
    %c0_i32_1 = arith.constant 0 : i32
    return %c0_i32, %c0_i32_0 : i32, i32
  }
  func.func @transform_3(%arg0: i32) -> (i32, i32, i32) {
    %c0_i32 = arith.constant 0 : i32
    %c0_i32_0 = arith.constant 0 : i32
    %c0_i32_1 = arith.constant 0 : i32
    %c0_i32_2 = arith.constant 0 : i32
    return %c0_i32, %c0_i32_0, %c0_i32_1 : i32, i32, i32
  }
  func.func @transform_4(%arg0: i32) -> (i32, i32) {
    %c0_i32 = arith.constant 0 : i32
    %c0_i32_0 = arith.constant 0 : i32
    %c0_i32_1 = arith.constant 0 : i32
    return %c0_i32, %c0_i32_0 : i32, i32
  }
  func.func @transform_5(%arg0: i32) -> (i32, i32) {
    %c0_i32 = arith.constant 0 : i32
    %c0_i32_0 = arith.constant 0 : i32
    %c0_i32_1 = arith.constant 0 : i32
    return %c0_i32, %c0_i32_0 : i32, i32
  }
  func.func @transform_6(%arg0: i32) -> (i32, i32, i32) {
    %c0_i32 = arith.constant 0 : i32
    %c0_i32_0 = arith.constant 0 : i32
    %c0_i32_1 = arith.constant 0 : i32
    return %arg0, %c0_i32, %c0_i32_0 : i32, i32, i32
  }
}

</mosaic_0001>

<bundles_post_ra>
// kernel: tpu_custom_call.1
= control target key start
LH: loop header
LB: loop body
LE: loop exit
PB: predicated region body
PF: predicated region fallthrough
CT: control target
= control target key end

     0   :  { %11 = vsyncpa [#allocation5], 0  ;;  %s7014_s0 = inlined_call_operand.vmem [shape: f32[8,4,512], index: 0, kind: input, shape index: {}]   ;;  %s7015_s1 = inlined_call_operand.vmem [shape: bf16[36,36], index: 1, kind: input, shape index: {}]   ;;  %s7016_s2 = inlined_call_operand.vmem [shape: bf16[4,288], index: 2, kind: input, shape index: {}]   ;;  %s7017_s3 = inlined_call_operand.vmem [shape: f32[9,1,512], index: 3, kind: input, shape index: {}]   ;;  %s7018_s4 = inlined_call_operand.vmem [shape: f32[512,2], index: 4, kind: input, shape index: {}]   ;;  %s7019_s5 = inlined_call_operand.vmem [shape: f32[2,512], index: 5, kind: input, shape index: {}]   ;;  %s7020_s6 = inlined_call_operand.hbm [shape: f32[8,8,512], index: 6, kind: output, shape index: {}]  }
   0x1   :  { %13 = vsyncpa [#allocation5 + $0x1], 0  ;;  %s4146_s21 = smov 0   ;;  %s4148_s22 = smov 0  }
   0x2   :  { %s4150_s23 = smov 0   ;;  %s4152_s24 = smov 0  }
   0x3 LB: > { %s4167_s25 = sadd.s32 4294967295, %s4097_s24   ;;  %s3527_s26 = sadd.s32 4294967294, %s4097_s24   ;;  %s4097_s24 = sphi %s4152_s24, %s7523_s24   ;;  %s4093_s23 = sphi %s4150_s23, %s7522_s23   ;;  %s4089_s22 = sphi %s4148_s22, %s7521_s22   ;;  %s4085_s21 = sphi %s4146_s21, %s7520_s21  }
   0x4   : > { %s4171_s27 = sadd.s32 1, %s4097_s24   ;;  %s157_s28 = sadd.s32 1, %s4093_s23 }
   0x5   : > { %s154_s29 = ssub.s32 %s4097_s24, %s4171_s27  ;;  %p167_p0 = scmp.ne.s32.totalorder %s4093_s23, %s4089_s22 }
   0x6   : > { %p155_p1 = scmp.eq.s32.totalorder %s154_s29, 0  ;;  %p168_p2 = scmp.eq.s32.totalorder %s4167_s25, 7 }
   0x7   : > { %p173_p3 = scmp.ne.s32.totalorder %s4089_s22, %s4085_s21  ;;  %p174_p4 = scmp.eq.s32.totalorder %s3527_s26, 7 }
   0x8   : > { %s4182_s30 = scalar_select %p155_p1, %s4093_s23, %s157_s28  }
   0x9   : > { %p4184_p5 = por %p168_p2, %p167_p0  ;;  %p4188_p6 = por %p174_p4, %p173_p3 }
   0xa   : > { %p3530_p7 = scmp.ge.s32.totalorder %s4097_s24, 1  ;;  %p215_p8 = scmp.lt.s32.totalorder %s4097_s24, 9 }
   0xc   : > { %p216_p9 = pnand %p3530_p7, %p215_p8 }
   0xe   : > { %219 = sbr.rel (%p216_p9) target bundleno = 1971 (0x7b3), region = 44 }
  0x13   : > { %v4197_v0 = vld [vmem:[%s7018_s4 + $0xf8] sm:$0xff]  ;;  %v4219_v4 = vld [vmem:[%s7018_s4 + $0xf0] sm:$0xff]  ;;  %v4241_v8 = vld [vmem:[%s7018_s4 + $0xe8] sm:$0xff]  ;;  %p245_p10 = scmp.lt.s32.totalorder %s4167_s25, 7  ;;  %s7025_s29 = sand.u32 1, %s4089_s22   ;;  %vm649_vm0 = vcmask 1041408  }
  0x14   : > { %v4202_v1 = vld [vmem:[%s7018_s4 + $0x1f8] sm:$0xff]  ;;  %3590 = vmatprep.subr.mxu0 %v4197_v0  ;;  %v4224_v5 = vld [vmem:[%s7018_s4 + $0x1f0] sm:$0xff]  ;;  %v4248_v9 = vld [vmem:[%s7018_s4 + $0x1e8] sm:$0xff]  ;;  %s3531_s13 = sshll.u32 %s7025_s29, 5  ;;  %vm645_vm1 = vcmask 15360   ;;  %s4102_s26 = smov 111  }
  0x15   : > { %v4207_v2 = vld [vmem:[%s7018_s4 + $0x78] sm:$0xff]  ;;  %3625 = vmatprep.subr.mxu1 %v4202_v1  ;;  %v4231_v6 = vld [vmem:[%s7018_s4 + $0x70] sm:$0xff]  ;;  %v4253_v10 = vld [vmem:[%s7018_s4 + $0x68] sm:$0xff]  ;;  %s4360_s20 = scalar_select %p245_p10, %s4167_s25, 7  ;;  %vm1413_vm10 = vcmask 293888   ;;  %vm3261_vm11 = vcmask 261120  }
  0x16   : > { %v4214_v3 = vld [vmem:[%s7018_s4 + $0x178] sm:$0xff]  ;;  %3591 = vmatpush3.msra.mxu0 %v4207_v2  ;;  %v4236_v7 = vld [vmem:[%s7018_s4 + $0x170] sm:$0xff]  ;;  %v4258_v11 = vld [vmem:[%s7018_s4 + $0x168] sm:$0xff]  ;;  %s4512_s18 = scalar_lea.vmem [#allocation4], %s3531_s13  ;;  %s7026_s13 = smov 127  }
  0x17   : > { %3626 = vmatpush3.msra.mxu1 %v4214_v3  ;;  %3592 = vmatprep.subr.mxu0 %v4219_v4  ;;  %v4265_v12 = vld [vmem:[%s7018_s4 + $0xe0] sm:$0xff]  ;;  %v4289_v16 = vld [vmem:[%s7018_s4 + $0xd8] sm:$0xff]  ;;  %v4314_v20 = vld [vmem:[%s7018_s4 + $0xd0] sm:$0xff]  ;;  %s3588_s9 = sshll.u32 %s4360_s20, 4  ;;  %s4103_s28 = smov 112  }
  0x18   : > { %3627 = vmatprep.subr.mxu1 %v4224_v5  ;;  %3593 = vmatpush3.msra.mxu0 %v4231_v6  ;;  %v4270_v13 = vld [vmem:[%s7018_s4 + $0x1e0] sm:$0xff]  ;;  %v4294_v17 = vld [vmem:[%s7018_s4 + $0x1d8] sm:$0xff]  ;;  %v4319_v21 = vld [vmem:[%s7018_s4 + $0x1d0] sm:$0xff]  ;;  %s249_s15 = scalar_lea.vmem %s7014_s0, %s3588_s9  ;;  %s7028_s9 = smov 113  }
  0x19   : > { %3628 = vmatpush3.msra.mxu1 %v4236_v7  ;;  %3594 = vmatprep.subr.mxu0 %v4241_v8  ;;  %v4277_v14 = vld [vmem:[%s7018_s4 + $0x60] sm:$0xff]  ;;  %v4301_v18 = vld [vmem:[%s7018_s4 + $0x58] sm:$0xff]  ;;  %v4326_v22 = vld [vmem:[%s7018_s4 + $0x50] sm:$0xff]  ;;  %s4105_s10 = smov 16   ;;  %s4106_s11 = smov 1  }
  0x1a   : > { %3629 = vmatprep.subr.mxu1 %v4248_v9  ;;  %v4282_v15 = vld [vmem:[%s7018_s4 + $0x160] sm:$0xff]  ;;  %3595 = vmatpush3.msra.mxu0 %v4253_v10  ;;  %v4306_v19 = vld [vmem:[%s7018_s4 + $0x158] sm:$0xff]  ;;  %v4331_v23 = vld [vmem:[%s7018_s4 + $0x150] sm:$0xff]  ;;  %s4107_s12 = smov 17   ;;  %s4108_s14 = smov 15  }
  0x1b   : > { %3630 = vmatpush3.msra.mxu1 %v4258_v11  ;;  %3596 = vmatprep.subr.mxu0 %v4265_v12  ;;  %v4338_v24 = vld [vmem:[%s7018_s4 + $0xc8] sm:$0xff]  ;;  %v4367_v28 = vld [vmem:[%s7018_s4 + $0xc0] sm:$0xff]  ;;  %v4391_v32 = vld [vmem:[%s7018_s4 + $0xb8] sm:$0xff]  ;;  %s7286_s17 = smov 113  }
  0x1c   : > { %3631 = vmatprep.subr.mxu1 %v4270_v13  ;;  %3597 = vmatpush3.msra.mxu0 %v4277_v14  ;;  %v4343_v25 = vld [vmem:[%s7018_s4 + $0x1c8] sm:$0xff]  ;;  %v4372_v29 = vld [vmem:[%s7018_s4 + $0x1c0] sm:$0xff]  ;;  %v4396_v33 = vld [vmem:[%s7018_s4 + $0x1b8] sm:$0xff] }
  0x1d   : > { %3632 = vmatpush3.msra.mxu1 %v4282_v15  ;;  %3598 = vmatprep.subr.mxu0 %v4289_v16  ;;  %v4350_v26 = vld [vmem:[%s7018_s4 + $0x48] sm:$0xff]  ;;  %v4379_v30 = vld [vmem:[%s7018_s4 + $0x40] sm:$0xff]  ;;  %v4403_v34 = vld [vmem:[%s7018_s4 + $0x38] sm:$0xff] }
  0x1e   : > { %3633 = vmatprep.subr.mxu1 %v4294_v17  ;;  %3599 = vmatpush3.msra.mxu0 %v4301_v18  ;;  %v4355_v27 = vld [vmem:[%s7018_s4 + $0x148] sm:$0xff]  ;;  %v4384_v31 = vld [vmem:[%s7018_s4 + $0x140] sm:$0xff]  ;;  %v4408_v35 = vld [vmem:[%s7018_s4 + $0x138] sm:$0xff] }
  0x1f   : > { %3634 = vmatpush3.msra.mxu1 %v4306_v19  ;;  %3600 = vmatprep.subr.mxu0 %v4314_v20  ;;  %v4417_v36 = vld [vmem:[%s7018_s4 + $0xb0] sm:$0xff]  ;;  %v4439_v40 = vld [vmem:[%s7018_s4 + $0xa8] sm:$0xff]  ;;  %v4468_v44 = vld [vmem:[%s7018_s4 + $0xa0] sm:$0xff] }
  0x20   : > { %3635 = vmatprep.subr.mxu1 %v4319_v21  ;;  %3601 = vmatpush3.msra.mxu0 %v4326_v22  ;;  %v4422_v37 = vld [vmem:[%s7018_s4 + $0x1b0] sm:$0xff]  ;;  %v4446_v41 = vld [vmem:[%s7018_s4 + $0x1a8] sm:$0xff]  ;;  %v4473_v45 = vld [vmem:[%s7018_s4 + $0x1a0] sm:$0xff] }
  0x21   : > { %3636 = vmatpush3.msra.mxu1 %v4331_v23  ;;  %3602 = vmatprep.subr.mxu0 %v4338_v24  ;;  %v4429_v38 = vld [vmem:[%s7018_s4 + $0x30] sm:$0xff]  ;;  %v4451_v42 = vld [vmem:[%s7018_s4 + $0x28] sm:$0xff]  ;;  %v4478_v46 = vld [vmem:[%s7018_s4 + $0x20] sm:$0xff] }
  0x22   : > { %3637 = vmatprep.subr.mxu1 %v4343_v25  ;;  %3603 = vmatpush3.msra.mxu0 %v4350_v26  ;;  %v4434_v39 = vld [vmem:[%s7018_s4 + $0x130] sm:$0xff]  ;;  %v4456_v43 = vld [vmem:[%s7018_s4 + $0x128] sm:$0xff]  ;;  %v4485_v47 = vld [vmem:[%s7018_s4 + $0x120] sm:$0xff] }
  0x23   : > { %3638 = vmatpush3.msra.mxu1 %v4355_v27  ;;  %3604 = vmatprep.subr.mxu0 %v4367_v28  ;;  %v4490_v48 = vld [vmem:[%s7018_s4 + $0x98] sm:$0xff]  ;;  %v4504_v51 = vld [vmem:[%s249_s15] sm:$0xff]  ;;  %v4506_v52 = vld [vmem:[%s249_s15 + $0x8] sm:$0xff]  ;;  %s7519_s15 = sand.u32 1, %s4089_s22  }
  0x24   : > { %3639 = vmatprep.subr.mxu1 %v4372_v29  ;;  %3605 = vmatpush3.msra.mxu0 %v4379_v30  ;;  %v4495_v49 = vld [vmem:[%s7018_s4 + $0x198] sm:$0xff]  ;;  %v328_v53 = vcombine.high %v4504_v51, %v4504_v51  ;;  %3433 = vst [vmem:[%s4512_s18] sm:$0xf] %v4504_v51  ;;  %v329_v54 = vcombine.high %v4506_v52, %v4506_v52  ;;  %3435 = vst [vmem:[%s4512_s18 + $0x10] sm:$0xf] %v4506_v52  ;;  %v4532_v56 = vld [vmem:[%s7018_s4 + $0x90] sm:$0xff]  ;;  %s3454_s19 = scalar_lea.sflag [#allocation5], %s7519_s15 }
  0x25   : > { %3640 = vmatpush3.msra.mxu1 %v4384_v31  ;;  %3606 = vmatprep.subr.mxu0 %v4391_v32  ;;  %v4502_v50 = vld [vmem:[%s7018_s4 + $0x18] sm:$0xff]  ;;  %7211 = vst [vmem:[#allocation7_spill] sm:$0xff] %v4532_v56  ;;  %v4537_v57 = vld [vmem:[%s7018_s4 + $0x190] sm:$0xff]  ;;  %v4558_v60 = vld [vmem:[%s7018_s4 + $0x88] sm:$0xff] }
  0x26   : > { %3641 = vmatprep.subr.mxu1 %v4396_v33  ;;  %3607 = vmatpush3.msra.mxu0 %v4403_v34  ;;  %v4525_v55 = vld [vmem:[%s7018_s4 + $0x118] sm:$0xff]  ;;  %7212 = vst [vmem:[#allocation8_spill] sm:$0xff] %v4537_v57  ;;  %3434 = vst [vmem:[%s4512_s18 + $0x8] sm:$0xf] %v328_v53  ;;  %v4546_v58 = vld [vmem:[%s7018_s4 + $0x10] sm:$0xff] }
  0x27   : > { %3642 = vmatpush3.msra.mxu1 %v4408_v35  ;;  %3608 = vmatprep.subr.mxu0 %v4417_v36  ;;  %3436 = vst [vmem:[%s4512_s18 + $0x18] sm:$0xf] %v329_v54  ;;  %7213 = vst [vmem:[#allocation9_spill] sm:$0xff] %v4546_v58  ;;  %v4551_v59 = vld [vmem:[%s7018_s4 + $0x110] sm:$0xff]  ;;  %v4563_v61 = vld [vmem:[%s7018_s4 + $0x188] sm:$0xff] }
  0x28   : > { %3643 = vmatprep.subr.mxu1 %v4422_v37  ;;  %3609 = vmatpush3.msra.mxu0 %v4429_v38  ;;  %7214 = vst [vmem:[#allocation10_spill] sm:$0xff] %v4551_v59  ;;  %v4570_v62 = vld [vmem:[%s7018_s4 + $0x8] sm:$0xff] }
  0x29   : > { %3644 = vmatpush3.msra.mxu1 %v4434_v39  ;;  %3610 = vmatprep.subr.mxu0 %v4439_v40  ;;  %v4575_v63 = vld [vmem:[%s7018_s4 + $0x108] sm:$0xff] }
  0x2a   : > { %3645 = vmatprep.subr.mxu1 %v4446_v41  ;;  %3611 = vmatpush3.msra.mxu0 %v4451_v42 }
  0x2b   : > { %3646 = vmatpush3.msra.mxu1 %v4456_v43  ;;  %3612 = vmatprep.subr.mxu0 %v4468_v44 }
  0x2c   : > { %3647 = vmatprep.subr.mxu1 %v4473_v45  ;;  %3613 = vmatpush3.msra.mxu0 %v4478_v46 }
  0x2d   : > { %3648 = vmatpush3.msra.mxu1 %v4485_v47  ;;  %3614 = vmatprep.subr.mxu0 %v4490_v48 }
  0x2e   : > { %3649 = vmatprep.subr.mxu1 %v4495_v49  ;;  %3615 = vmatpush3.msra.mxu0 %v4502_v50 }
  0x2f   : > { %3650 = vmatpush3.msra.mxu1 %v4525_v55  ;;  %3616 = vmatprep.subr.mxu0 %v4532_v56  ;;  %v4582_v56 = vld [vmem:[%s7018_s4 + $0x80] sm:$0xff] }
  0x30   : > { %3651 = vmatprep.subr.mxu1 %v4537_v57  ;;  %3617 = vmatpush3.msra.mxu0 %v4546_v58  ;;  %v4587_v57 = vld [vmem:[%s7018_s4 + $0x180] sm:$0xff] }
  0x31   : > { %3652 = vmatpush3.msra.mxu1 %v4551_v59  ;;  %3618 = vmatprep.subr.mxu0 %v4558_v60  ;;  %v4594_v58 = vld [vmem:[%s7018_s4] sm:$0xff] }
  0x32   : > { %3653 = vmatprep.subr.mxu1 %v4563_v61  ;;  %3619 = vmatpush3.msra.mxu0 %v4570_v62  ;;  %v4601_v59 = vld [vmem:[%s7018_s4 + $0x100] sm:$0xff] }
  0x33   : > { %3654 = vmatpush3.msra.mxu1 %v4575_v63  ;;  %3620 = vmatprep.subr.mxu0 %v4582_v56 }
  0x34   : > { %3655 = vmatprep.subr.mxu1 %v4587_v57  ;;  %3621 = vmatpush3.msra.mxu0 %v4594_v58 }
  0x35   : > { %396 = vmatprep.mubr.f32.mxu0 %v328_v53  ;;  %3656 = vmatpush3.msra.mxu1 %v4601_v59 }
  0x36   : > { %466 = vmatprep.mubr.f32.mxu1 %v329_v54  ;;  %397 = vmatmul.mubr.f32.vlgmr.msra.gmra.mxu0 %v4504_v51 }
  0x37   : > { %467 = vmatmul.mubr.f32.vlgmr.msra.gmra.mxu1 %v4506_v52  ;;  %3660 = vmatprep.subr.mxu0 %v4197_v0  ;;  %v473_v0 = vmul.f32 %v4504_v51, %v4504_v51 }
  0x38   : > { %3695 = vmatprep.subr.mxu1 %v4202_v1  ;;  %3661 = vmatpush3.msra.mxu0 %v4207_v2  ;;  %v474_v1 = vmul.f32 %v4506_v52, %v4506_v52  ;;  %v7215_v2 = vld [vmem:[#allocation7_spill] sm:$0xff] }
  0x39   : > { %3696 = vmatpush3.msra.mxu1 %v4214_v3  ;;  %3662 = vmatprep.subr.mxu0 %v4219_v4  ;;  %v7216_v3 = vld [vmem:[#allocation8_spill] sm:$0xff]  ;;  %v7217_v4 = vld [vmem:[#allocation9_spill] sm:$0xff] }
  0x3a   : > { %3697 = vmatprep.subr.mxu1 %v4224_v5  ;;  %3663 = vmatpush3.msra.mxu0 %v4231_v6  ;;  %v7218_v5 = vld [vmem:[#allocation10_spill] sm:$0xff]  ;;  %v477_v6 = vcombine.high %v473_v0, %v473_v0 }
  0x3b   : > { %3698 = vmatpush3.msra.mxu1 %v4236_v7  ;;  %3664 = vmatprep.subr.mxu0 %v4241_v8  ;;  %v478_v7 = vcombine.high %v474_v1, %v474_v1  ;;  %v632_v8 = vlaneseq }
  0x3c   : > { %3699 = vmatprep.subr.mxu1 %v4248_v9  ;;  %3665 = vmatpush3.msra.mxu0 %v4253_v10  ;;  %v4099_v9 = vmov 1983009808  }
  0x3d   : > { %3700 = vmatpush3.msra.mxu1 %v4258_v11  ;;  %3666 = vmatprep.subr.mxu0 %v4265_v12  ;;  %v630_v10 = vunpack.c.l.s4 %v4099_v9  ;;  %v7030_v11 = vmov 0.0   ;;  %v4680_v12 = vshrl.u32 %v632_v8, 7 }
  0x3e   : > { %3701 = vmatprep.subr.mxu1 %v4270_v13  ;;  %3667 = vmatpush3.msra.mxu0 %v4277_v14  ;;  %v325_v14 = vld [vmem:[%s7019_s5] sm:$0xff] }
  0x3f   : > { %3702 = vmatpush3.msra.mxu1 %v4282_v15  ;;  %3668 = vmatprep.subr.mxu0 %v4289_v16  ;;  %v631_v13 = vunpack.c.0.s8 %v630_v10 }
  0x40   : > { %3703 = vmatprep.subr.mxu1 %v4294_v17  ;;  %3669 = vmatpush3.msra.mxu0 %v4301_v18  ;;  %v628_v17 = vcombine.high %v325_v14, %v325_v14 }
  0x41   : > { %3704 = vmatpush3.msra.mxu1 %v4306_v19  ;;  %3670 = vmatprep.subr.mxu0 %v4314_v20  ;;  %v4686_v15 = vsub.s32 %v631_v13, %v4680_v12  ;;  %v4799_v13 = vld [vmem:[%s7017_s3 + $0x1c] sm:$0xf] }
  0x42   : > { %3705 = vmatprep.subr.mxu1 %v4319_v21  ;;  %3671 = vmatpush3.msra.mxu0 %v4326_v22 }
  0x43   : > { %3706 = vmatpush3.msra.mxu1 %v4331_v23  ;;  %3672 = vmatprep.subr.mxu0 %v4338_v24  ;;  %7219 = vst [vmem:[#allocation7_spill] sm:$0xff] %v4686_v15  ;;  %v4689_v16 = vrot.slane %v325_v14, %v4686_v15  ;;  %v4696_v19 = vrot.slane %v628_v17, %v4686_v15  ;;  %v3961_v15 = vld [vmem:[%s7015_s1 + $0x10] ss:$0 sps:$4 sm:$0x33]  }
  0x44   : > { %3707 = vmatprep.subr.mxu1 %v4343_v25  ;;  %3673 = vmatpush3.msra.mxu0 %v4350_v26 }
  0x45   : > { %3708 = vmatpush3.msra.mxu1 %v4355_v27  ;;  %3674 = vmatprep.subr.mxu0 %v4367_v28  ;;  %7220 = vst [vmem:[#allocation8_spill] sm:$0xff] %v4689_v16  ;;  %v4693_v18 = vcombine.high %v4689_v16, %v4689_v16  ;;  %7222 = vst [vmem:[#allocation10_spill] sm:$0xff] %v4696_v19  ;;  %v4704_v20 = vcombine.high %v4696_v19, %v4696_v19 }
  0x46   : > { %3709 = vmatprep.subr.mxu1 %v4372_v29  ;;  %3675 = vmatpush3.msra.mxu0 %v4379_v30 }
  0x47   : > { %3710 = vmatpush3.msra.mxu1 %v4384_v31  ;;  %3676 = vmatprep.subr.mxu0 %v4391_v32  ;;  %7221 = vst [vmem:[#allocation9_spill] sm:$0xff] %v4693_v18  ;;  %7223 = vst [vmem:[#allocation11_spill] sm:$0xff] %v4704_v20 }
  0x48   : > { %3711 = vmatprep.subr.mxu1 %v4396_v33  ;;  %3677 = vmatpush3.msra.mxu0 %v4403_v34 }
  0x49   : > { %3712 = vmatpush3.msra.mxu1 %v4408_v35  ;;  %3678 = vmatprep.subr.mxu0 %v4417_v36 }
  0x4a   : > { %3713 = vmatprep.subr.mxu1 %v4422_v37  ;;  %3679 = vmatpush3.msra.mxu0 %v4429_v38 }
  0x4b   : > { %3714 = vmatpush3.msra.mxu1 %v4434_v39  ;;  %3680 = vmatprep.subr.mxu0 %v4439_v40 }
  0x4c   : > { %3715 = vmatprep.subr.mxu1 %v4446_v41  ;;  %3681 = vmatpush3.msra.mxu0 %v4451_v42 }
  0x4d   : > { %3716 = vmatpush3.msra.mxu1 %v4456_v43  ;;  %3682 = vmatprep.subr.mxu0 %v4468_v44 }
  0x4e   : > { %3717 = vmatprep.subr.mxu1 %v4473_v45  ;;  %3683 = vmatpush3.msra.mxu0 %v4478_v46 }
  0x4f   : > { %3718 = vmatpush3.msra.mxu1 %v4485_v47  ;;  %3684 = vmatprep.subr.mxu0 %v4490_v48 }
  0x50   : > { %3719 = vmatprep.subr.mxu1 %v4495_v49  ;;  %3685 = vmatpush3.msra.mxu0 %v4502_v50 }
  0x51   : > { %3720 = vmatpush3.msra.mxu1 %v4525_v55  ;;  %3686 = vmatprep.subr.mxu0 %v7215_v2 }
  0x52   : > { %3721 = vmatprep.subr.mxu1 %v7216_v3  ;;  %3687 = vmatpush3.msra.mxu0 %v7217_v4 }
  0x53   : > { %3722 = vmatpush3.msra.mxu1 %v7218_v5  ;;  %3688 = vmatprep.subr.mxu0 %v4558_v60  ;;  %v4783_v5 = vld [vmem:[%s7017_s3 + $0x14] sm:$0xf] }
  0x54   : > { %3723 = vmatprep.subr.mxu1 %v4563_v61  ;;  %3689 = vmatpush3.msra.mxu0 %v4570_v62 }
  0x55   : > { %3724 = vmatpush3.msra.mxu1 %v4575_v63  ;;  %3690 = vmatprep.subr.mxu0 %v4582_v56 }
  0x56   : > { %3725 = vmatprep.subr.mxu1 %v4587_v57  ;;  %3691 = vmatpush3.msra.mxu0 %v4594_v58 }
  0x57   : > { %545 = vmatprep.mubr.f32.mxu0 %v477_v6  ;;  %3726 = vmatpush3.msra.mxu1 %v4601_v59 }
  0x58   : > { %615 = vmatprep.mubr.f32.mxu1 %v478_v7  ;;  %546 = vmatmul.mubr.f32.vlgmr.msra.gmra.mxu0 %v473_v0  ;;  %v4764_v0 = vsub.s32 2, %v4680_v12 }
  0x59   : > { %616 = vmatmul.mubr.f32.vlgmr.msra.gmra.mxu1 %v474_v1  ;;  %722 = vmatprep.mubr.f32.mxu0 %v7030_v11  ;;  %v4769_v1 = vld [vmem:[%s7017_s3 + $0x20] sm:$0xf] }
  0x5a   : > { %938 = vmatprep.mubr.f32.mxu1 %v7030_v11  ;;  %3534 = vmatprep.subr.msk.mxu0 %vm649_vm0, %v4693_v18  ;;  %v4778_v4 = vrot.slane %v4769_v1, %v4764_v0  ;;  %v4794_v10 = vrot.slane %v4783_v5, %v4764_v0 }
  0x5b   : > { %3535 = vmatpush1.msk.msra.mxu0 %vm649_vm0, %v4689_v16  ;;  %3543 = vmatprep.subr.msk.mxu1 %vm649_vm0, %v4704_v20 }
  0x5c   : > { %3537 = vmatprep.subr.msk.mxu0 %vm649_vm0, %v4704_v20  ;;  %3544 = vmatpush1.msk.msra.mxu1 %vm649_vm0, %v4696_v19  ;;  %7225 = vst [vmem:[#allocation13_spill] sm:$0xff] %v4778_v4  ;;  %7226 = vst [vmem:[#allocation14_spill] sm:$0xff] %v4794_v10  ;;  %v5487_v20 = vld [vmem:[%s7018_s4] sm:$0xff] }
  0x5d   : > { %7263 = vst [vmem:[#allocation50_spill] sm:$0xff] %v5487_v20 }
  0xf6   : > { %v3622_v21 = vpop.f32.mrf.mxu0 }
  0xf7   : > { %v3657_v22 = vpop.f32.mrf.mxu1 }
  0xf8   : > { %v3623_v23 = vpop.f32.mrf.mxu0 }
  0xf9   : > { %v3658_v24 = vpop.f32.mrf.mxu1  ;;  %v3624_v25 = vadd.f32 %v3623_v23, %v3622_v21  ;;  %v4810_v23 = vrot.slane %v4799_v13, %v4764_v0 }
  0xfa   : > { %v3659_v26 = vadd.f32 %v3658_v24, %v3657_v22  ;;  %v4815_v24 = vld [vmem:[%s7017_s3 + $0x18] sm:$0xf] }
  0xfb   : > { %7227 = vst [vmem:[#allocation15_spill] sm:$0xff] %v4810_v23 }
  0xfc   : > { %v469_v27 = vadd.f32 %v3659_v26, %v3624_v25 }
  0xfe   : > { %v472_v32 = vmul.f32 0.00390625, %v469_v27 }
 0x100   : > { %v622_v36 = vmul.f32 %v472_v32, %v472_v32 }
 0x118   : > { %v3692_v28 = vpop.f32.mrf.mxu0 }
 0x119   : > { %v3727_v29 = vpop.f32.mrf.mxu1 }
 0x11a   : > { %v3693_v30 = vpop.f32.mrf.mxu0 }
 0x11b   : > { %v3728_v31 = vpop.f32.mrf.mxu1  ;;  %v3694_v33 = vadd.f32 %v3693_v30, %v3692_v28  ;;  %v4826_v30 = vrot.slane %v4815_v24, %v4764_v0 }
 0x11c   : > { %v3729_v34 = vadd.f32 %v3728_v31, %v3727_v29  ;;  %v4829_v31 = vsub.s32 3, %v4680_v12 }
 0x11d   : > { %7228 = vst [vmem:[#allocation16_spill] sm:$0xff] %v4826_v30 }
 0x11e   : > { %v618_v35 = vadd.f32 %v3729_v34, %v3694_v33 }
 0x120   : > { %v621_v37 = vmul.f32 0.00390625, %v618_v35 }
 0x122   : > { %v623_v38 = vsub.f32 %v621_v37, %v622_v36 }
 0x124   : > { %v624_v39 = vadd.f32 1e-05, %v623_v38 }
 0x126   : > { %3963 = vrsqrt.f32 %v624_v39  ;;  %v4853_v39 = vld [vmem:[%s7017_s3 + $0xc] sm:$0xf] }
 0x133   : > { %v3964_v40 = vpop.eup %3963 }
 0x134   : > { %3536 = vmatmul.mubr.msk.f32.vlgmr.msra.gmra.mxu0 %vm645_vm1, %v3964_v40  ;;  %v626_v41 = vmul.f32 %v3964_v40, %v472_v32  ;;  %v4834_v32 = vld [vmem:[%s7017_s3 + $0x4] sm:$0xf] }
 0x135   : > { %3538 = vmatpush1.msk.msra.mxu0 %vm649_vm0, %v4696_v19  ;;  %793 = vmatprep.mubr.f32.mxu0 %v7030_v11  ;;  %v4848_v38 = vrot.slane %v4834_v32, %v4829_v31  ;;  %v5475_v19 = vld [vmem:[%s7018_s4 + $0x80] sm:$0xff] }
 0x136   : > { %3545 = vmatmul.mubr.msk.f32.vlgmr.msra.gmra.mxu1 %vm645_vm1, %v626_v41  ;;  %3540 = vmatprep.subr.msk.mxu0 %vm649_vm0, %v4693_v18  ;;  %7261 = vst [vmem:[#allocation48_spill] sm:$0xff] %v5475_v19  ;;  %v5493_v18 = vld [vmem:[%s7018_s4 + $0x100] sm:$0xff] }
 0x137   : > { %7229 = vst [vmem:[#allocation17_spill] sm:$0xff] %v4848_v38  ;;  %7264 = vst [vmem:[#allocation51_spill] sm:$0xff] %v5493_v18 }
 0x138   : > { %3539 = vmatmul.mubr.msk.f32.vlgmr.msra.gmra.mxu0 %vm645_vm1, %v3964_v40 }
 0x139   : > { %3541 = vmatpush1.msk.msra.mxu0 %vm649_vm0, %v4689_v16  ;;  %867 = vmatprep.mubr.f32.mxu0 %v7030_v11  ;;  %v5252_v11 = vld [vmem:[%s7018_s4 + $0xc8] sm:$0xff]  ;;  %v5481_v16 = vld [vmem:[%s7018_s4 + $0x180] sm:$0xff] }
 0x13a   : > { %7262 = vst [vmem:[#allocation49_spill] sm:$0xff] %v5481_v16 }
 0x13c   : > { %3542 = vmatmul.mubr.msk.f32.vlgmr.msra.gmra.mxu0 %vm645_vm1, %v626_v41 }
 0x1f4   : > { %v724_v42 = vpop.f32.mrf.mxu0 }
 0x1f6   : > { %v726_v43 = vpop.f32.mrf.mxu0  ;;  %v940_v44 = vpop.f32.mrf.mxu1 }
 0x1f7   : > { %v949_v48 = vcombine.low %v724_v42, %v726_v43 }
 0x1f8   : > { %v795_v45 = vpop.f32.mrf.mxu0  ;;  %v942_v46 = vpop.f32.mrf.mxu1 }
 0x1f9   : > { %v960_v53 = vcombine.low %v940_v44, %v942_v46  ;;  %v953_v56 = vmul.f32 %v949_v48, %v4504_v51  ;;  %v7032_v51 = vmov 0   ;;  %v4867_v44 = vrot.slane %v4853_v39, %v4829_v31  ;;  %v4876_v46 = vld [vmem:[%s7017_s3] sm:$0xf] }
 0x1fa   : > { %v797_v47 = vpop.f32.mrf.mxu0  ;;  %1467 = vmatprep.mubr.bf16.mxu0 %v7032_v51  ;;  %1528 = vmatprep.mubr.bf16.mxu1 %v7032_v51 }
 0x1fb   : > { %v950_v49 = vcombine.low %v795_v45, %v797_v47  ;;  %7230 = vst [vmem:[#allocation18_spill] sm:$0xff] %v4867_v44  ;;  %v4871_v45 = vrot.slane %v4769_v1, %v4829_v31 }
 0x1fc   : > { %v869_v50 = vpop.f32.mrf.mxu0 }
 0x1fd   : > { %v954_v54 = vmul.f32 %v950_v49, %v4506_v52  ;;  %v4761_v52 = vand.u32 127, %v632_v8  ;;  %7231 = vst [vmem:[#allocation19_spill] sm:$0xff] %v4871_v45 }
 0x1fe   : > { %v871_v55 = vpop.f32.mrf.mxu0 }
 0x1ff   : > { %v964_v57 = vsub.f32 %v954_v54, %v960_v53  ;;  %v959_v58 = vcombine.low %v869_v50, %v871_v55  ;;  %7224 = vst [vmem:[#allocation12_spill] sm:$0xff] %v4761_v52  ;;  %vm1334_vm2 = vcmp.lt.s32.totalorder %v4761_v52, 111  ;;  %vm1184_vm3 = vcmp.lt.s32.totalorder %v4761_v52, 127 }
 0x200   : > { %vm1280_vm4 = vcmp.lt.s32.totalorder %v4761_v52, 112  ;;  %vm1238_vm5 = vcmp.lt.s32.totalorder %v4761_v52, 113  ;;  %vm1030_vm6 = vcmp.lt.s32.totalorder %v4761_v52, 16  ;;  %vm1126_vm7 = vcmp.lt.s32.totalorder %v4761_v52, 1 }
 0x201   : > { %v966_v59 = vmax.f32 %v964_v57, 0.0  ;;  %v963_v60 = vsub.f32 %v953_v56, %v959_v58  ;;  %vm988_vm8 = vcmp.lt.s32.totalorder %v4761_v52, 17  ;;  %v4892_v54 = vrot.slane %v4876_v46, %v4829_v31 }
 0x202   : > { %v4896_v55 = vrot.slane %v4783_v5, %v4829_v31  ;;  %v4901_v58 = vsub.s32 0, %v4680_v12  ;;  %vm1084_vm9 = vcmp.lt.s32.totalorder %v4761_v52, 15  ;;  %v5463_v52 = vld [vmem:[%s7018_s4 + $0x8] sm:$0xff] }
 0x203   : > { %1174 = vst [vmem:[#allocation2 + $0x28] sm:$0xf] %v966_v59  ;;  %v965_v61 = vmax.f32 %v963_v60, 0.0  ;;  %1180 = vrot.lane.b32.xlu0 %v966_v59, %s7026_s13  ;;  %1330 = vrot.lane.b32.xlu1 %v966_v59, %s4102_s26  ;;  %v975_v62 = vcombine.high %v966_v59, %v966_v59  ;;  %7232 = vst [vmem:[#allocation20_spill] sm:$0xff] %v4892_v54 }
 0x204   : > { %7233 = vst [vmem:[#allocation21_spill] sm:$0xff] %v4896_v55  ;;  %7259 = vst [vmem:[#allocation46_spill] sm:$0xff] %v5463_v52 }
 0x205   : > { %1172 = vst [vmem:[#allocation2 + $0x8] sm:$0xf] %v965_v61  ;;  %1175 = vst [vmem:[#allocation2 + $0x40] sm:$0xf] %v975_v62  ;;  %v974_v63 = vcombine.high %v965_v61, %v965_v61 }
 0x207   : > { %1276 = vrot.lane.b32.xlu0 %v966_v59, %s4103_s28  ;;  %1332 = vrot.lane.b32.xlu1 %v975_v62, %s4102_s26  ;;  %1173 = vst [vmem:[#allocation2 + $0x88] sm:$0xf] %v974_v63 }
 0x20b   : > { %1234 = vrot.lane.b32.xlu0 %v966_v59, %s7028_s9  ;;  %1182 = vrot.lane.b32.xlu1 %v975_v62, %s7026_s13 }
 0x20f   : > { %1026 = vrot.lane.b32.xlu0 %v966_v59, %s4105_s10  ;;  %1278 = vrot.lane.b32.xlu1 %v975_v62, %s4103_s28 }
 0x213   : > { %1122 = vrot.lane.b32.xlu0 %v966_v59, %s4106_s11  ;;  %1236 = vrot.lane.b32.xlu1 %v975_v62, %s7028_s9 }
 0x217   : > { %982 = vrot.lane.b32.xlu0 %v966_v59, %s4107_s12  ;;  %1028 = vrot.lane.b32.xlu1 %v975_v62, %s4105_s10 }
 0x21b   : > { %1124 = vrot.lane.b32.xlu1 %v975_v62, %s4106_s11  ;;  %1326 = vrot.lane.b32.xlu0 %v965_v61, %s4102_s26 }
 0x21f   : > { %984 = vrot.lane.b32.xlu1 %v975_v62, %s4107_s12  ;;  %1176 = vrot.lane.b32.xlu0 %v965_v61, %s7026_s13 }
 0x223   : > { %1272 = vrot.lane.b32.xlu0 %v965_v61, %s4103_s28  ;;  %1178 = vrot.lane.b32.xlu1 %v974_v63, %s7026_s13 }
 0x227   : > { %1230 = vrot.lane.b32.xlu0 %v965_v61, %s7028_s9  ;;  %1274 = vrot.lane.b32.xlu1 %v974_v63, %s4103_s28 }
 0x22b   : > { %1022 = vrot.lane.b32.xlu0 %v965_v61, %s4105_s10  ;;  %1232 = vrot.lane.b32.xlu1 %v974_v63, %s7028_s9  ;;  %s7287_s9 = smov 127  }
 0x22f   : > { %1118 = vrot.lane.b32.xlu0 %v965_v61, %s4106_s11  ;;  %1024 = vrot.lane.b32.xlu1 %v974_v63, %s4105_s10 }
 0x233   : > { %978 = vrot.lane.b32.xlu0 %v965_v61, %s4107_s12  ;;  %1120 = vrot.lane.b32.xlu1 %v974_v63, %s4106_s11 }
 0x237   : > { %980 = vrot.lane.b32.xlu1 %v974_v63, %s4107_s12  ;;  %1328 = vrot.lane.b32.xlu0 %v974_v63, %s4102_s26 }
 0x23b   : > { %1078 = vrot.lane.b32.xlu1 %v974_v63, %s4108_s14  ;;  %1076 = vrot.lane.b32.xlu0 %v965_v61, %s4108_s14 }
 0x23f   : > { %1082 = vrot.lane.b32.xlu1 %v975_v62, %s4108_s14  ;;  %1080 = vrot.lane.b32.xlu0 %v966_v59, %s4108_s14  ;;  %v4904_v59 = vsub.s32 1, %v4680_v12 }
 0x275   : > { %v4771_v2 = vpop.permute.xlu0 %1180  ;;  %v4773_v3 = vpop.permute.xlu1 %1330 }
 0x279   : > { %v4785_v6 = vpop.permute.xlu0 %1276  ;;  %v1333_v7 = vpop.permute.xlu1 %1332 }
 0x27a   : > { %v1335_v8 = vsel %vm1334_vm2, %v4773_v3, %v1333_v7 }
 0x27b   : > { %v1362_v9 = vmul.f32 %v4778_v4, %v1335_v8  ;;  %v4916_v8 = vrot.slane %v4799_v13, %v4829_v31  ;;  %v5270_v4 = vld [vmem:[%s7018_s4 + $0x148] sm:$0xff] }
 0x27d   : > { %1366 = vst [vmem:[#allocation2 + $0x70] sm:$0xf] %v1362_v9  ;;  %v4801_v14 = vpop.permute.xlu0 %1234  ;;  %v1183_v17 = vpop.permute.xlu1 %1182  ;;  %7234 = vst [vmem:[#allocation22_spill] sm:$0xff] %v4916_v8 }
 0x27e   : > { %v1185_v21 = vsel %vm1184_vm3, %v4771_v2, %v1183_v17 }
 0x27f   : > { %v1212_v22 = vmul.f32 %v4794_v10, %v1185_v21  ;;  %v4922_v21 = vrot.slane %v4783_v5, %v4901_v58  ;;  %v5282_v10 = vld [vmem:[%s7018_s4 + $0x1c0] sm:$0xff] }
 0x281   : > { %v1220_v25 = vrot.slane %v1212_v22, 4  ;;  %v4817_v26 = vpop.permute.xlu0 %1026  ;;  %v1279_v27 = vpop.permute.xlu1 %1278  ;;  %7235 = vst [vmem:[#allocation23_spill] sm:$0xff] %v4922_v21  ;;  %v4926_v22 = vrot.slane %v4783_v5, %v4904_v59 }
 0x282   : > { %v1281_v28 = vsel %vm1280_vm4, %v4785_v6, %v1279_v27 }
 0x283   : > { %1228 = vst [vmem:[#allocation2 + $0x28] sm:$0xf0] %v1220_v25  ;;  %v1308_v29 = vmul.f32 %v4810_v23, %v1281_v28  ;;  %7236 = vst [vmem:[#allocation24_spill] sm:$0xff] %v4926_v22  ;;  %v5321_v23 = vld [vmem:[%s7018_s4 + $0x138] sm:$0xff] }
 0x284   : > { %v1386_v25 = vld [vmem:[#allocation2 + $0x70] sm:$0xf] }
 0x285   : > { %v1316_v33 = vrot.slane %v1308_v29, 4  ;;  %v4836_v34 = vpop.permute.xlu0 %1122  ;;  %v4838_v35 = vpop.permute.xlu1 %1236 }
 0x286   : > { %v1239_v36 = vsel %vm1238_vm5, %v4801_v14, %v4838_v35 }
 0x287   : > { %1324 = vst [vmem:[#allocation2 + $0x98] sm:$0xf0] %v1316_v33  ;;  %v1266_v37 = vmul.f32 %v4826_v30, %v1239_v36  ;;  %v4930_v33 = vrot.slane %v4815_v24, %v4829_v31  ;;  %v4934_v36 = vrot.slane %v4799_v13, %v4901_v58  ;;  %v5294_v30 = vld [vmem:[%s7018_s4 + $0x140] sm:$0xff] }
 0x289   : > { %1270 = vst [vmem:[#allocation2 + $0x98] sm:$0xf] %v1266_v37  ;;  %v4855_v40 = vpop.permute.xlu0 %982  ;;  %v4857_v41 = vpop.permute.xlu1 %1028  ;;  %7237 = vst [vmem:[#allocation25_spill] sm:$0xff] %v4930_v33 }
 0x28a   : > { %v1031_v42 = vsel %vm1030_vm6, %v4817_v26, %v4857_v41  ;;  %7238 = vst [vmem:[#allocation26_spill] sm:$0xff] %v4934_v36 }
 0x28b   : > { %v1059_v43 = vmul.f32 %v4848_v38, %v1031_v42  ;;  %v5379_v38 = vld [vmem:[%s7018_s4 + $0xa0] sm:$0xff] }
 0x28d   : > { %v1067_v47 = vrot.slane %v1059_v43, 4  ;;  %v4879_v48 = vpop.permute.xlu1 %1124  ;;  %v4881_v49 = vpop.permute.xlu0 %1326  ;;  %v4945_v43 = vrot.slane %v4799_v13, %v4904_v59 }
 0x28e   : > { %v1127_v50 = vsel %vm1126_vm7, %v4836_v34, %v4879_v48  ;;  %v1338_v53 = vsel %vm1334_vm2, %v1333_v7, %v4881_v49 }
 0x28f   : > { %1075 = vst [vmem:[#allocation2 + $0x18] sm:$0xf0] %v1067_v47  ;;  %v1155_v56 = vmul.f32 %v4867_v44, %v1127_v50  ;;  %v1363_v57 = vmul.f32 %v4871_v45, %v1338_v53  ;;  %7239 = vst [vmem:[#allocation27_spill] sm:$0xff] %v4945_v43  ;;  %v5264_v45 = vld [vmem:[%s7018_s4 + $0x48] sm:$0xff]  ;;  %v5427_v44 = vld [vmem:[%s7018_s4 + $0x90] sm:$0xff] }
 0x291   : > { %v1163_v60 = vrot.slane %v1155_v56, 4  ;;  %1367 = vst [vmem:[#allocation2 + $0x90] sm:$0xf] %v1363_v57  ;;  %v4906_v61 = vpop.permute.xlu1 %984  ;;  %v1177_v62 = vpop.permute.xlu0 %1176  ;;  %v1398_v56 = vpack.c.bf16 %v1386_v25, %v1386_v25  ;;  %v4952_v57 = vrot.slane %v4834_v32, %v4901_v58 }
 0x292   : > { %v989_v63 = vsel %vm988_vm8, %v4855_v40, %v4906_v61  ;;  %v1188_v7 = vsel %vm1184_vm3, %v1183_v17, %v1177_v62 }
 0x293   : > { %1171 = vst [vmem:[#allocation2 + $0x80] sm:$0xf0] %v1163_v60  ;;  %v1017_v12 = vmul.f32 %v4892_v54, %v989_v63  ;;  %v1213_v9 = vmul.f32 %v4896_v55, %v1188_v7  ;;  %7240 = vst [vmem:[#allocation28_spill] sm:$0xff] %v4952_v57  ;;  %v5276_v55 = vld [vmem:[%s7018_s4 + $0xc0] sm:$0xff]  ;;  %v5349_v54 = vld [vmem:[%s7018_s4 + $0x130] sm:$0xff] }
 0x295   : > { %1021 = vst [vmem:[#allocation2 + $0x18] sm:$0xf] %v1017_v12  ;;  %v1221_v17 = vrot.slane %v1213_v9, 4  ;;  %v1273_v28 = vpop.permute.xlu0 %1272  ;;  %v1179_v29 = vpop.permute.xlu1 %1178 }
 0x296   : > { %v1284_v37 = vsel %vm1280_vm4, %v1279_v27, %v1273_v28  ;;  %v1186_v5 = vsel %vm1184_vm3, %v1179_v29, %v4771_v2  ;;  %v1187_v42 = vsel %vm1184_vm3, %v1177_v62, %v1179_v29  ;;  %v4956_v2 = vrot.slane %v4815_v24, %v4901_v58 }
 0x297   : > { %1229 = vst [vmem:[#allocation2 + $0x40] sm:$0xf0] %v1221_v17  ;;  %v1309_v47 = vmul.f32 %v4916_v8, %v1284_v37  ;;  %v1210_v50 = vmul.f32 %v4922_v21, %v1187_v42  ;;  %v1211_v53 = vmul.f32 %v4926_v22, %v1186_v5  ;;  %v4968_v29 = vrot.slane %v4815_v24, %v4904_v59  ;;  %v5288_v21 = vld [vmem:[%s7018_s4 + $0x40] sm:$0xff]  ;;  %v5306_v22 = vld [vmem:[%s7018_s4 + $0x1b8] sm:$0xff] }
 0x298   : > { %v1387_v27 = vld [vmem:[#allocation2 + $0x90] sm:$0xf]  ;;  %7241 = vst [vmem:[#allocation29_spill] sm:$0xff] %v4956_v2  ;;  %v5315_v8 = vld [vmem:[%s7018_s4 + $0x38] sm:$0xff] }
 0x299   : > { %v1317_v60 = vrot.slane %v1309_v47, 4  ;;  %v1218_v13 = vrot.slane %v1210_v50, 4  ;;  %v1219_v62 = vrot.slane %v1211_v53, 4  ;;  %v1231_v63 = vpop.permute.xlu0 %1230  ;;  %v1275_v7 = vpop.permute.xlu1 %1274  ;;  %v1399_v12 = vpack.c.bf16 %v1387_v27, %v1387_v27  ;;  %7242 = vst [vmem:[#allocation30_spill] sm:$0xff] %v4968_v29 }
 0x29a   : > { %v1242_v9 = vsel %vm1238_vm5, %v4838_v35, %v1231_v63  ;;  %v1282_v25 = vsel %vm1280_vm4, %v1275_v7, %v4785_v6  ;;  %v1283_v17 = vsel %vm1280_vm4, %v1273_v28, %v1275_v7  ;;  %v1430_v6 = vsel %vm649_vm0, %v1398_v56, 0 }
 0x29b   : > { %1325 = vst [vmem:[#allocation2 + $0x60] sm:$0xf0] %v1317_v60  ;;  %1226 = vst [vmem:[#allocation2 + $0x8] sm:$0xf0] %v1218_v13  ;;  %v1267_v37 = vmul.f32 %v4930_v33, %v1242_v9  ;;  %v1306_v5 = vmul.f32 %v4934_v36, %v1283_v17  ;;  %v1307_v35 = vmul.f32 %v4945_v43, %v1282_v25  ;;  %3553 = vmatprep.subr.msk.bf16.mxu1 %vm649_vm0, %v1399_v12  ;;  %v5300_v33 = vld [vmem:[%s7018_s4 + $0xb8] sm:$0xff]  ;;  %v5335_v43 = vld [vmem:[%s7018_s4 + $0x1b0] sm:$0xff] }
 0x29c   : > { %1227 = vst [vmem:[#allocation2 + $0x88] sm:$0xf0] %v1219_v62  ;;  %1507 = vmatpush1.bf16.msra.mxu1 %v1430_v6  ;;  %v4977_v50 = vrot.slane %v4853_v39, %v4901_v58  ;;  %v4989_v60 = vrot.slane %v4834_v32, %v4904_v59  ;;  %v5000_v9 = vrot.slane %v4876_v46, %v4901_v58  ;;  %v5343_v36 = vld [vmem:[%s7018_s4 + $0x30] sm:$0xff] }
 0x29d   : > { %1271 = vst [vmem:[#allocation2 + $0x60] sm:$0xf] %v1267_v37  ;;  %v1314_v28 = vrot.slane %v1306_v5, 4  ;;  %v1315_v42 = vrot.slane %v1307_v35, 4  ;;  %v1023_v47 = vpop.permute.xlu0 %1022  ;;  %v1233_v24 = vpop.permute.xlu1 %1232  ;;  %v5012_v37 = vrot.slane %v4853_v39, %v4904_v59 }
 0x29e   : > { %7243 = vst [vmem:[#allocation31_spill] sm:$0xff] %v4977_v50  ;;  %v1034_v53 = vsel %vm1030_vm6, %v4857_v41, %v1023_v47  ;;  %v1240_v27 = vsel %vm1238_vm5, %v1233_v24, %v4801_v14  ;;  %v1241_v56 = vsel %vm1238_vm5, %v1231_v63, %v1233_v24  ;;  %7244 = vst [vmem:[#allocation32_spill] sm:$0xff] %v4989_v60 }
 0x29f   : > { %1322 = vst [vmem:[#allocation2 + $0x58] sm:$0xf0] %v1314_v28  ;;  %1323 = vst [vmem:[#allocation2 + $0x10] sm:$0xf0] %v1315_v42  ;;  %v1056_v13 = vmul.f32 %v4952_v57, %v1034_v53  ;;  %v1264_v62 = vmul.f32 %v4956_v2, %v1241_v56  ;;  %v1265_v7 = vmul.f32 %v4968_v29, %v1240_v27  ;;  %v1382_v28 = vld [vmem:[#allocation2 + $0x98] sm:$0xff]  ;;  %v7257_v29 = vmov 0  }
 0x2a0   : > { %v4996_v41 = vrot.slane %v4834_v32, %v4764_v0  ;;  %7246 = vst [vmem:[#allocation34_spill] sm:$0xff] %v5000_v9  ;;  %7247 = vst [vmem:[#allocation35_spill] sm:$0xff] %v5012_v37  ;;  %v5027_v24 = vrot.slane %v4876_v46, %v4764_v0  ;;  %v5031_v53 = vrot.slane %v4769_v1, %v4901_v58  ;;  %v5329_v2 = vld [vmem:[%s7018_s4 + $0xb0] sm:$0xff]  ;;  %v5385_v57 = vld [vmem:[%s7018_s4 + $0x1a0] sm:$0xff] }
 0x2a1   : > { %v1064_v14 = vrot.slane %v1056_v13, 4  ;;  %1268 = vst [vmem:[#allocation2 + $0x58] sm:$0xf] %v1264_v62  ;;  %1269 = vst [vmem:[#allocation2 + $0x10] sm:$0xf] %v1265_v7  ;;  %v1119_v63 = vpop.permute.xlu0 %1118  ;;  %v1025_v12 = vpop.permute.xlu1 %1024 }
 0x2a2   : > { %7245 = vst [vmem:[#allocation33_spill] sm:$0xff] %v4996_v41  ;;  %v1130_v25 = vsel %vm1126_vm7, %v4879_v48, %v1119_v63  ;;  %v1032_v17 = vsel %vm1030_vm6, %v1025_v12, %v4817_v26  ;;  %v1033_v32 = vsel %vm1030_vm6, %v1023_v47, %v1025_v12  ;;  %v5019_v48 = vrot.slane %v4853_v39, %v4764_v0  ;;  %v1379_v26 = vld [vmem:[#allocation2 + $0x40] sm:$0xff] }
 0x2a3   : > { %1072 = vst [vmem:[#allocation2] sm:$0xf0] %v1064_v14  ;;  %v1152_v5 = vmul.f32 %v4977_v50, %v1130_v25  ;;  %v1057_v35 = vmul.f32 %v4989_v60, %v1033_v32  ;;  %v1058_v6 = vmul.f32 %v4996_v41, %v1032_v17  ;;  %v5023_v47 = vrot.slane %v4876_v46, %v4904_v59  ;;  %v1378_v14 = vld [vmem:[#allocation2 + $0x28] sm:$0xff]  ;;  %v5391_v41 = vld [vmem:[%s7018_s4 + $0x20] sm:$0xff]  ;;  %v5433_v50 = vld [vmem:[%s7018_s4 + $0x190] sm:$0xff] }
 0x2a4   : > { %7248 = vst [vmem:[#allocation36_spill] sm:$0xff] %v5019_v48  ;;  %v1383_v42 = vld [vmem:[#allocation2 + $0x60] sm:$0xff]  ;;  %7250 = vst [vmem:[#allocation38_spill] sm:$0xff] %v5027_v24  ;;  %v1394_v17 = vpack.c.bf16 %v1382_v28, %v1378_v14  ;;  %v255_v32 = vld [vmem:[%s7017_s3 + $0x8] sm:$0xf] }
 0x2a5   : > { %7249 = vst [vmem:[#allocation37_spill] sm:$0xff] %v5023_v47  ;;  %7251 = vst [vmem:[#allocation39_spill] sm:$0xff] %v5031_v53  ;;  %v1160_v27 = vrot.slane %v1152_v5, 4  ;;  %v1065_v56 = vrot.slane %v1057_v35, 4  ;;  %v1066_v13 = vrot.slane %v1058_v6, 4  ;;  %v979_v39 = vpop.permute.xlu0 %978  ;;  %v1121_v62 = vpop.permute.xlu1 %1120  ;;  %v1395_v7 = vpack.c.bf16 %v1383_v42, %v1379_v26  ;;  %v5397_v60 = vld [vmem:[%s7018_s4 + $0x120] sm:$0xff] }
 0x2a6   : > { %v992_v12 = vsel %vm988_vm8, %v4906_v61, %v979_v39  ;;  %v1128_v46 = vsel %vm1126_vm7, %v1121_v62, %v4836_v34  ;;  %v1129_v25 = vsel %vm1126_vm7, %v1119_v63, %v1121_v62  ;;  %v5049_v34 = vrot.slane %v4769_v1, %v4904_v59 }
 0x2a7   : > { %1168 = vst [vmem:[#allocation2 + $0x30] sm:$0xf0] %v1160_v27  ;;  %1073 = vst [vmem:[#allocation2 + $0x38] sm:$0xf0] %v1065_v56  ;;  %v1014_v5 = vmul.f32 %v5000_v9, %v992_v12  ;;  %v1153_v35 = vmul.f32 %v5012_v37, %v1129_v25  ;;  %v1154_v61 = vmul.f32 %v5019_v48, %v1128_v46  ;;  %1508 = vmatprep.subr.bf16.mxu1 %v1395_v7  ;;  %v5355_v9 = vld [vmem:[%s7018_s4 + $0xa8] sm:$0xff] }
 0x2a8   : > { %1074 = vst [vmem:[#allocation2 + $0x50] sm:$0xf0] %v1066_v13  ;;  %7252 = vst [vmem:[#allocation40_spill] sm:$0xff] %v5049_v34  ;;  %1509 = vmatpush1.bf16.msra.mxu1 %v1394_v17  ;;  %v5053_v42 = vrot.slane %v255_v32, %v4904_v59  ;;  %v5074_v12 = vrot.slane %v255_v32, %v4901_v58  ;;  %v5077_v46 = vrot.slane %v255_v32, %v4764_v0  ;;  %v5451_v48 = vld [vmem:[%s7018_s4 + $0x88] sm:$0xff] }
 0x2a9   : > { %1018 = vst [vmem:[#allocation2] sm:$0xf] %v1014_v5  ;;  %v1161_v63 = vrot.slane %v1153_v35, 4  ;;  %v1162_v6 = vrot.slane %v1154_v61, 4  ;;  %v981_v28 = vpop.permute.xlu1 %980  ;;  %v1329_v26 = vpop.permute.xlu0 %1328  ;;  %v5080_v25 = vrot.slane %v255_v32, %v4829_v31  ;;  %v5457_v37 = vld [vmem:[%s7018_s4 + $0x188] sm:$0xff] }
 0x2aa   : > { %7253 = vst [vmem:[#allocation41_spill] sm:$0xff] %v5053_v42  ;;  %v990_v27 = vsel %vm988_vm8, %v981_v28, %v4855_v40  ;;  %v991_v56 = vsel %vm988_vm8, %v979_v39, %v981_v28  ;;  %v1336_v1 = vsel %vm1334_vm2, %v1329_v26, %v4773_v3  ;;  %v1337_v13 = vsel %vm1334_vm2, %v4881_v49, %v1329_v26  ;;  %v1381_v28 = vld [vmem:[#allocation2 + $0x10] sm:$0xff] }
 0x2ab   : > { %1169 = vst [vmem:[#allocation2 + $0x68] sm:$0xf0] %v1161_v63  ;;  %1170 = vst [vmem:[#allocation2 + $0x78] sm:$0xf0] %v1162_v6  ;;  %v1015_v59 = vmul.f32 %v5023_v47, %v991_v56  ;;  %v1016_v62 = vmul.f32 %v5027_v24, %v990_v27  ;;  %v1360_v7 = vmul.f32 %v5031_v53, %v1337_v13  ;;  %v1377_v56 = vld [vmem:[#allocation2 + $0x88] sm:$0xff]  ;;  %v5445_v53 = vld [vmem:[%s7018_s4 + $0x110] sm:$0xff] }
 0x2ac   : > { %v1361_v40 = vmul.f32 %v5049_v34, %v1336_v1  ;;  %7254 = vst [vmem:[#allocation42_spill] sm:$0xff] %v5074_v12  ;;  %7255 = vst [vmem:[#allocation43_spill] sm:$0xff] %v5077_v46  ;;  %v1393_v13 = vpack.c.bf16 %v1381_v28, %v1377_v56  ;;  %v5115_v28 = vld [vmem:[%s7018_s4 + $0x78] sm:$0xff]  ;;  %v5133_v56 = vld [vmem:[%s7018_s4 + $0x1f0] sm:$0xff] }
 0x2ad   : > { %1019 = vst [vmem:[#allocation2 + $0x38] sm:$0xf] %v1015_v59  ;;  %1020 = vst [vmem:[#allocation2 + $0x50] sm:$0xf] %v1016_v62  ;;  %v1079_v39 = vpop.permute.xlu1 %1078  ;;  %v1077_v3 = vpop.permute.xlu0 %1076  ;;  %v1380_v59 = vld [vmem:[#allocation2 + $0x58] sm:$0xff]  ;;  %v5367_v24 = vld [vmem:[%s7018_s4 + $0x28] sm:$0xff] }
 0x2ae   : > { %1364 = vst [vmem:[#allocation2 + $0x20] sm:$0xf] %v1360_v7  ;;  %1365 = vst [vmem:[#allocation2 + $0x48] sm:$0xf] %v1361_v40  ;;  %v1087_v14 = vsel %vm1084_vm9, %v1077_v3, %v1079_v39  ;;  %v1376_v7 = vld [vmem:[#allocation2 + $0x8] sm:$0xff]  ;;  %v5439_v34 = vld [vmem:[%s7018_s4 + $0x10] sm:$0xff] }
 0x2af   : > { %v1111_v49 = vmul.f32 %v5053_v42, %v1087_v14  ;;  %7256 = vst [vmem:[#allocation44_spill] sm:$0xff] %v5080_v25  ;;  %v1392_v40 = vpack.c.bf16 %v1380_v59, %v1376_v7  ;;  %v1371_v14 = vld [vmem:[#allocation2 + $0x18] sm:$0xff]  ;;  %v5148_v59 = vld [vmem:[%s7018_s4 + $0x170] sm:$0xff]  ;;  %v5160_v7 = vld [vmem:[%s7018_s4 + $0x1e8] sm:$0xff] }
 0x2b0   : > { %v5373_v47 = vld [vmem:[%s7018_s4 + $0x128] sm:$0xff]  ;;  %v5421_v42 = vld [vmem:[%s7018_s4 + $0x118] sm:$0xff]  ;;  %7258 = vst [vmem:[#allocation45_spill] sm:$0xff] %v5457_v37 }
 0x2b1   : > { %1115 = vst [vmem:[#allocation2 + $0x68] sm:$0xf] %v1111_v49  ;;  %v1083_v17 = vpop.permute.xlu1 %1082  ;;  %v1081_v5 = vpop.permute.xlu0 %1080  ;;  %v1368_v49 = vld [vmem:[#allocation2] sm:$0xff] }
 0x2b2   : > { %v1088_v35 = vsel %vm1084_vm9, %v1083_v17, %v1077_v3  ;;  %v1085_v61 = vsel %vm1084_vm9, %v1081_v5, %v1083_v17  ;;  %v1086_v63 = vsel %vm1084_vm9, %v1079_v39, %v1081_v5 }
 0x2b3   : > { %v1110_v58 = vmul.f32 %v5074_v12, %v1088_v35  ;;  %v1112_v0 = vmul.f32 %v5077_v46, %v1086_v63  ;;  %v1113_v6 = vmul.f32 %v5080_v25, %v1085_v61  ;;  %v5403_v25 = vld [vmem:[%s7018_s4 + $0x98] sm:$0xff] }
 0x2b4   : > { %v1369_v39 = vld [vmem:[#allocation2 + $0x38] sm:$0xff]  ;;  %v1370_v17 = vld [vmem:[#allocation2 + $0x50] sm:$0xff] }
 0x2b5   : > { %v1385_v31 = vld [vmem:[#allocation2 + $0x48] sm:$0xf]  ;;  %v1384_v32 = vld [vmem:[#allocation2 + $0x20] sm:$0xf]  ;;  %1114 = vst [vmem:[#allocation2 + $0x30] sm:$0xf] %v1110_v58 }
 0x2b6   : > { %1116 = vst [vmem:[#allocation2 + $0x78] sm:$0xf] %v1112_v0  ;;  %1117 = vst [vmem:[#allocation2 + $0x80] sm:$0xf] %v1113_v6  ;;  %v1397_v26 = vpack.c.bf16 %v1385_v31, %v1385_v31  ;;  %v1396_v27 = vpack.c.bf16 %v1384_v32, %v1384_v32  ;;  %v3959_v6 = vld [vmem:[%s7015_s1] sm:$0xff]   ;;  %v5099_v31 = vld [vmem:[%s7018_s4 + $0xf8] sm:$0xff] }
 0x2b7   : > { %v5105_v32 = vld [vmem:[%s7018_s4 + $0x1f8] sm:$0xff] }
 0x2b8   : > { %3549 = vmatprep.subr.msk.bf16.mxu0 %vm649_vm0, %v1397_v26  ;;  %v1424_v1 = vsel %vm649_vm0, %v1396_v27, 0  ;;  %v1373_v62 = vld [vmem:[#allocation2 + $0x68] sm:$0xff]  ;;  %v5121_v26 = vld [vmem:[%s7018_s4 + $0x178] sm:$0xff]  ;;  %v5127_v27 = vld [vmem:[%s7018_s4 + $0xf0] sm:$0xff] }
 0x2b9   : > { %1446 = vmatpush1.bf16.msra.mxu0 %v1424_v1  ;;  %v1389_v3 = vpack.c.bf16 %v1373_v62, %v1369_v39  ;;  %v3960_v1 = vld [vmem:[%s7015_s1 + $0x8] sm:$0xff]   ;;  %v5409_v12 = vld [vmem:[%s7018_s4 + $0x198] sm:$0xff] }
 0x2ba   : > { %1447 = vmatprep.subr.bf16.mxu0 %v1393_v13  ;;  %v5142_v13 = vld [vmem:[%s7018_s4 + $0x70] sm:$0xff]  ;;  %v5154_v62 = vld [vmem:[%s7018_s4 + $0xe8] sm:$0xff]  ;;  %v5415_v46 = vld [vmem:[%s7018_s4 + $0x18] sm:$0xff] }
 0x2bb   : > { %v5172_v39 = vld [vmem:[%s7018_s4 + $0x168] sm:$0xff] }
 0x2bc   : > { %v1372_v35 = vld [vmem:[#allocation2 + $0x30] sm:$0xff] }
 0x2bd   : > { %1448 = vmatpush1.bf16.msra.mxu0 %v1392_v40  ;;  %v1375_v5 = vld [vmem:[#allocation2 + $0x80] sm:$0xff]  ;;  %v1374_v61 = vld [vmem:[#allocation2 + $0x78] sm:$0xff]  ;;  %v1388_v58 = vpack.c.bf16 %v1372_v35, %v1368_v49  ;;  %v5166_v40 = vld [vmem:[%s7018_s4 + $0x68] sm:$0xff] }
 0x2be   : > { %1449 = vmatprep.subr.bf16.mxu0 %v1389_v3  ;;  %v1391_v63 = vpack.c.bf16 %v1375_v5, %v1371_v14  ;;  %v1390_v0 = vpack.c.bf16 %v1374_v61, %v1370_v17  ;;  %v5178_v3 = vld [vmem:[%s7018_s4 + $0xe0] sm:$0xff]  ;;  %v5204_v5 = vld [vmem:[%s7018_s4 + $0xd8] sm:$0xff] }
 0x2bf   : > { %v5184_v14 = vld [vmem:[%s7018_s4 + $0x1e0] sm:$0xff]  ;;  %v5210_v35 = vld [vmem:[%s7018_s4 + $0x1d8] sm:$0xff] }
 0x2c0   : > { %1510 = vmatprep.subr.bf16.mxu1 %v1391_v63  ;;  %v5192_v49 = vld [vmem:[%s7018_s4 + $0x60] sm:$0xff]  ;;  %v5216_v61 = vld [vmem:[%s7018_s4 + $0x58] sm:$0xff] }
 0x2c1   : > { %1450 = vmatpush1.bf16.msra.mxu0 %v1388_v58  ;;  %1511 = vmatpush1.bf16.msra.mxu1 %v1390_v0  ;;  %v5198_v17 = vld [vmem:[%s7018_s4 + $0x160] sm:$0xff]  ;;  %v5222_v63 = vld [vmem:[%s7018_s4 + $0x158] sm:$0xff]  ;;  %v5228_v58 = vld [vmem:[%s7018_s4 + $0xd0] sm:$0xff] }
 0x2c2   : > { %3730 = vmatprep.subr.mxu0 %v5099_v31  ;;  %3774 = vmatprep.subr.mxu1 %v5105_v32  ;;  %v5234_v0 = vld [vmem:[%s7018_s4 + $0x1d0] sm:$0xff] }
 0x2c4   : > { %3550 = vmatmul.mubr.msk.bf16.vlgmr.msra.gmra.mxu0 %vm1413_vm10, %v3959_v6  ;;  %3554 = vmatmul.mubr.msk.bf16.vlgmr.msra.gmra.mxu1 %vm1413_vm10, %v3959_v6  ;;  %v5240_v6 = vld [vmem:[%s7018_s4 + $0x50] sm:$0xff] }
 0x2c5   : > { %1477 = vmatprep.mubr.bf16.mxu0 %v7032_v51  ;;  %1538 = vmatprep.mubr.bf16.mxu1 %v7032_v51  ;;  %v5258_v51 = vld [vmem:[%s7018_s4 + $0x1c8] sm:$0xff] }
 0x2c6   : > { %3731 = vmatpush3.msra.mxu0 %v5115_v28  ;;  %3775 = vmatpush3.msra.mxu1 %v5121_v26 }
 0x2c7   : > { %3732 = vmatprep.subr.mxu0 %v5127_v27  ;;  %3776 = vmatprep.subr.mxu1 %v5133_v56 }
 0x2c8   : > { %3733 = vmatpush3.msra.mxu0 %v5142_v13  ;;  %3777 = vmatpush3.msra.mxu1 %v5148_v59 }
 0x2c9   : > { %3734 = vmatprep.subr.mxu0 %v5154_v62  ;;  %3778 = vmatprep.subr.mxu1 %v5160_v7 }
 0x2ca   : > { %3735 = vmatpush3.msra.mxu0 %v5166_v40  ;;  %3779 = vmatpush3.msra.mxu1 %v5172_v39 }
 0x2cb   : > { %3736 = vmatprep.subr.mxu0 %v5178_v3  ;;  %3780 = vmatprep.subr.mxu1 %v5184_v14 }
 0x2cc   : > { %3551 = vmatmul.mubr.msk.bf16.gmra.mxu0 %vm1413_vm10, %v3960_v1  ;;  %3555 = vmatmul.mubr.msk.bf16.gmra.mxu1 %vm1413_vm10, %v3960_v1  ;;  %v5246_v1 = vld [vmem:[%s7018_s4 + $0x150] sm:$0xff] }
 0x2cd   : > { %3737 = vmatpush3.msra.mxu0 %v5192_v49  ;;  %3781 = vmatpush3.msra.mxu1 %v5198_v17 }
 0x2ce   : > { %3738 = vmatprep.subr.mxu0 %v5204_v5  ;;  %3782 = vmatprep.subr.mxu1 %v5210_v35 }
 0x2cf   : > { %3739 = vmatpush3.msra.mxu0 %v5216_v61  ;;  %3783 = vmatpush3.msra.mxu1 %v5222_v63 }
 0x2d0   : > { %3740 = vmatprep.subr.mxu0 %v5228_v58  ;;  %3784 = vmatprep.subr.mxu1 %v5234_v0 }
 0x2d1   : > { %3741 = vmatpush3.msra.mxu0 %v5240_v6  ;;  %3785 = vmatpush3.msra.mxu1 %v5246_v1 }
 0x2d2   : > { %3742 = vmatprep.subr.mxu0 %v5252_v11  ;;  %3786 = vmatprep.subr.mxu1 %v5258_v51 }
 0x2d3   : > { %3743 = vmatpush3.msra.mxu0 %v5264_v45  ;;  %3787 = vmatpush3.msra.mxu1 %v5270_v4 }
 0x2d4   : > { %3744 = vmatprep.subr.mxu0 %v5276_v55  ;;  %3788 = vmatprep.subr.mxu1 %v5282_v10 }
 0x2d5   : > { %3745 = vmatpush3.msra.mxu0 %v5288_v21  ;;  %3789 = vmatpush3.msra.mxu1 %v5294_v30 }
 0x2d6   : > { %3746 = vmatprep.subr.mxu0 %v5300_v33  ;;  %3790 = vmatprep.subr.mxu1 %v5306_v22 }
 0x2d7   : > { %3747 = vmatpush3.msra.mxu0 %v5315_v8  ;;  %3791 = vmatpush3.msra.mxu1 %v5321_v23 }
 0x2d8   : > { %1487 = vmatprep.mubr.bf16.mxu0 %v7257_v29  ;;  %1548 = vmatprep.mubr.bf16.mxu1 %v7257_v29  ;;  %v5469_v29 = vld [vmem:[%s7018_s4 + $0x108] sm:$0xff] }
 0x2d9   : > { %3748 = vmatprep.subr.mxu0 %v5329_v2  ;;  %3792 = vmatprep.subr.mxu1 %v5335_v43  ;;  %7260 = vst [vmem:[#allocation47_spill] sm:$0xff] %v5469_v29 }
 0x2da   : > { %3552 = vmatmul.mubr.msk.bf16.gmra.mxu0 %vm1413_vm10, %v3961_v15  ;;  %3556 = vmatmul.mubr.msk.bf16.gmra.mxu1 %vm1413_vm10, %v3961_v15  ;;  %v5361_v15 = vld [vmem:[%s7018_s4 + $0x1a8] sm:$0xff] }
 0x2db   : > { %3749 = vmatpush3.msra.mxu0 %v5343_v36  ;;  %3793 = vmatpush3.msra.mxu1 %v5349_v54 }
 0x2dc   : > { %3750 = vmatprep.subr.mxu0 %v5355_v9  ;;  %3794 = vmatprep.subr.mxu1 %v5361_v15 }
 0x2dd   : > { %3751 = vmatpush3.msra.mxu0 %v5367_v24  ;;  %3795 = vmatpush3.msra.mxu1 %v5373_v47 }
 0x2de   : > { %3752 = vmatprep.subr.mxu0 %v5379_v38  ;;  %3796 = vmatprep.subr.mxu1 %v5385_v57 }
 0x2df   : > { %3753 = vmatpush3.msra.mxu0 %v5391_v41  ;;  %3797 = vmatpush3.msra.mxu1 %v5397_v60 }
 0x2e0   : > { %3754 = vmatprep.subr.mxu0 %v5403_v25  ;;  %3798 = vmatprep.subr.mxu1 %v5409_v12 }
 0x2e1   : > { %3755 = vmatpush3.msra.mxu0 %v5415_v46  ;;  %3799 = vmatpush3.msra.mxu1 %v5421_v42 }
 0x2e2   : > { %3756 = vmatprep.subr.mxu0 %v5427_v44  ;;  %3800 = vmatprep.subr.mxu1 %v5433_v50 }
 0x2e3   : > { %3757 = vmatpush3.msra.mxu0 %v5439_v34  ;;  %3801 = vmatpush3.msra.mxu1 %v5445_v53 }
 0x2e4   : > { %3758 = vmatprep.subr.mxu0 %v5451_v48  ;;  %3802 = vmatprep.subr.mxu1 %v5457_v37 }
 0x2e5   : > { %3759 = vmatpush3.msra.mxu0 %v5463_v52  ;;  %3803 = vmatpush3.msra.mxu1 %v5469_v29 }
 0x2e6   : > { %3760 = vmatprep.subr.mxu0 %v5475_v19  ;;  %3804 = vmatprep.subr.mxu1 %v5481_v16 }
 0x2e7   : > { %3761 = vmatpush3.msra.mxu0 %v5487_v20  ;;  %3805 = vmatpush3.msra.mxu1 %v5493_v18 }
 0x2e8   : > { %3818 = vmatprep.subr.mxu0 %v5099_v31  ;;  %3862 = vmatprep.subr.mxu1 %v5105_v32 }
 0x384   : > { %v5498_v19 = vpop.f32.mrf.mxu0  ;;  %v5500_v16 = vpop.f32.mrf.mxu1 }
 0x386   : > { %v5502_v29 = vpop.f32.mrf.mxu0  ;;  %v5504_v52 = vpop.f32.mrf.mxu1 }
 0x387   : > { %1621 = vmatprep.mubr.f32.mxu0 %v5502_v29  ;;  %1706 = vmatprep.mubr.f32.mxu1 %v5504_v52 }
 0x388   : > { %v5508_v20 = vpop.f32.mrf.mxu0  ;;  %v5510_v37 = vpop.f32.mrf.mxu1  ;;  %1622 = vmatmul.mubr.f32.vlgmr.msra.gmra.mxu0 %v5498_v19  ;;  %1707 = vmatmul.mubr.f32.vlgmr.msra.gmra.mxu1 %v5500_v16 }
 0x389   : > { %3819 = vmatpush3.msra.mxu0 %v5115_v28  ;;  %3863 = vmatpush3.msra.mxu1 %v5121_v26 }
 0x38a   : > { %3820 = vmatprep.subr.mxu0 %v5127_v27  ;;  %3864 = vmatprep.subr.mxu1 %v5133_v56  ;;  %v5518_v31 = vpop.f32.mrf.mxu0  ;;  %v5520_v32 = vpop.f32.mrf.mxu1 }
 0x38b   : > { %3821 = vmatpush3.msra.mxu0 %v5142_v13  ;;  %3865 = vmatpush3.msra.mxu1 %v5148_v59 }
 0x38c   : > { %1626 = vmatprep.mubr.f32.mxu0 %v5518_v31  ;;  %1711 = vmatprep.mubr.f32.mxu1 %v5520_v32  ;;  %v5526_v18 = vpop.f32.mrf.mxu0  ;;  %v5528_v28 = vpop.f32.mrf.mxu1 }
 0x38d   : > { %3822 = vmatprep.subr.mxu0 %v5154_v62  ;;  %3866 = vmatprep.subr.mxu1 %v5160_v7  ;;  %v1732_v7 = vmul.f32 %v5502_v29, %v5502_v29 }
 0x38e   : > { %1627 = vmatmul.mubr.f32.gmra.mxu0 %v5508_v20  ;;  %1712 = vmatmul.mubr.f32.gmra.mxu1 %v5510_v37  ;;  %v5534_v26 = vpop.f32.mrf.mxu0  ;;  %v5536_v27 = vpop.f32.mrf.mxu1 }
 0x38f   : > { %3823 = vmatpush3.msra.mxu0 %v5166_v40  ;;  %3867 = vmatpush3.msra.mxu1 %v5172_v39 }
 0x390   : > { %3824 = vmatprep.subr.mxu0 %v5178_v3  ;;  %3868 = vmatprep.subr.mxu1 %v5184_v14  ;;  %v5544_v56 = vpop.f32.mrf.mxu0  ;;  %v5546_v13 = vpop.f32.mrf.mxu1  ;;  %v1734_v3 = vmul.f32 %v5504_v52, %v5504_v52 }
 0x391   : > { %3825 = vmatpush3.msra.mxu0 %v5192_v49  ;;  %3869 = vmatpush3.msra.mxu1 %v5198_v17 }
 0x392   : > { %1631 = vmatprep.mubr.f32.mxu0 %v5534_v26  ;;  %1716 = vmatprep.mubr.f32.mxu1 %v5536_v27  ;;  %v5556_v59 = vpop.f32.mrf.mxu0  ;;  %v5558_v62 = vpop.f32.mrf.mxu1 }
 0x393   : > { %3826 = vmatprep.subr.mxu0 %v5204_v5  ;;  %3870 = vmatprep.subr.mxu1 %v5210_v35 }
 0x394   : > { %1632 = vmatmul.mubr.f32.gmra.mxu0 %v5526_v18  ;;  %1717 = vmatmul.mubr.f32.gmra.mxu1 %v5528_v28 }
 0x395   : > { %3827 = vmatpush3.msra.mxu0 %v5216_v61  ;;  %3871 = vmatpush3.msra.mxu1 %v5222_v63 }
 0x396   : > { %3828 = vmatprep.subr.mxu0 %v5228_v58  ;;  %3872 = vmatprep.subr.mxu1 %v5234_v0 }
 0x397   : > { %3829 = vmatpush3.msra.mxu0 %v5240_v6  ;;  %3873 = vmatpush3.msra.mxu1 %v5246_v1 }
 0x398   : > { %1636 = vmatprep.mubr.f32.mxu0 %v5556_v59  ;;  %1721 = vmatprep.mubr.f32.mxu1 %v5558_v62 }
 0x399   : > { %3830 = vmatprep.subr.mxu0 %v5252_v11  ;;  %3874 = vmatprep.subr.mxu1 %v5258_v51 }
 0x39a   : > { %1637 = vmatmul.mubr.f32.gmra.mxu0 %v5544_v56  ;;  %1722 = vmatmul.mubr.f32.gmra.mxu1 %v5546_v13  ;;  %v5572_v40 = vpop.f32.mrf.mxu0  ;;  %v5574_v39 = vpop.f32.mrf.mxu1 }
 0x39b   : > { %7265 = vst [vmem:[#allocation52_spill] sm:$0xff] %v5572_v40  ;;  %7266 = vst [vmem:[#allocation53_spill] sm:$0xff] %v5574_v39  ;;  %3831 = vmatpush3.msra.mxu0 %v5264_v45  ;;  %3875 = vmatpush3.msra.mxu1 %v5270_v4  ;;  %v7310_v39 = vld [vmem:[#allocation36_spill] sm:$0xff] }
 0x39c   : > { %3832 = vmatprep.subr.mxu0 %v5276_v55  ;;  %1811 = vmatprep.mubr.f32.mxu0 %v1732_v7  ;;  %v5581_v11 = vpop.f32.mrf.mxu0  ;;  %v5583_v51 = vpop.f32.mrf.mxu1  ;;  %v7273_v55 = vld [vmem:[#allocation49_spill] sm:$0xff] }
 0x39d   : > { %7267 = vst [vmem:[#allocation54_spill] sm:$0xff] %v5581_v11  ;;  %7268 = vst [vmem:[#allocation55_spill] sm:$0xff] %v5583_v51  ;;  %3876 = vmatprep.subr.mxu1 %v5282_v10  ;;  %1896 = vmatprep.mubr.f32.mxu1 %v1734_v3  ;;  %v7269_v10 = vld [vmem:[#allocation45_spill] sm:$0xff] }
 0x39e   : > { %3833 = vmatpush3.msra.mxu0 %v5288_v21  ;;  %3877 = vmatpush3.msra.mxu1 %v5294_v30  ;;  %v1493_v14 = vpop.f32.mrf.mxu0  ;;  %v1554_v49 = vpop.f32.mrf.mxu1  ;;  %v7271_v30 = vld [vmem:[#allocation47_spill] sm:$0xff]  ;;  %v1738_v21 = vmul.f32 %v5520_v32, %v5520_v32 }
 0x39f   : > { %3834 = vmatprep.subr.mxu0 %v5300_v33  ;;  %3878 = vmatprep.subr.mxu1 %v5306_v22  ;;  %v7274_v22 = vld [vmem:[#allocation50_spill] sm:$0xff]  ;;  %v7275_v33 = vld [vmem:[#allocation51_spill] sm:$0xff] }
 0x3a0   : > { %3835 = vmatpush3.msra.mxu0 %v5315_v8  ;;  %3879 = vmatpush3.msra.mxu1 %v5321_v23  ;;  %v1494_v4 = vpop.f32.mrf.mxu0  ;;  %v1555_v45 = vpop.f32.mrf.mxu1  ;;  %v7270_v23 = vld [vmem:[#allocation46_spill] sm:$0xff]  ;;  %v1736_v8 = vmul.f32 %v5518_v31, %v5518_v31 }
 0x3a1   : > { %3836 = vmatprep.subr.mxu0 %v5329_v2  ;;  %3880 = vmatprep.subr.mxu1 %v5335_v43  ;;  %v1737_v43 = vmul.f32 %v5510_v37, %v5510_v37  ;;  %v7277_v2 = vld [vmem:[#allocation11_spill] sm:$0xff] }
 0x3a2   : > { %3837 = vmatpush3.msra.mxu0 %v5343_v36  ;;  %3881 = vmatpush3.msra.mxu1 %v5349_v54  ;;  %v7272_v54 = vld [vmem:[#allocation48_spill] sm:$0xff]  ;;  %v1735_v36 = vmul.f32 %v5508_v20, %v5508_v20 }
 0x3a3   : > { %3838 = vmatprep.subr.mxu0 %v5355_v9  ;;  %3882 = vmatprep.subr.mxu1 %v5361_v15  ;;  %v7279_v9 = vld [vmem:[#allocation10_spill] sm:$0xff] }
 0x3a4   : > { %3839 = vmatpush3.msra.mxu0 %v5367_v24  ;;  %3883 = vmatpush3.msra.mxu1 %v5373_v47  ;;  %v1741_v47 = vmul.f32 %v5528_v28, %v5528_v28  ;;  %v1744_v24 = vmul.f32 %v5556_v59, %v5556_v59 }
 0x3a5   : > { %3840 = vmatprep.subr.mxu0 %v5379_v38  ;;  %3884 = vmatprep.subr.mxu1 %v5385_v57  ;;  %v1731_v38 = vmul.f32 %v5498_v19, %v5498_v19  ;;  %v7276_v57 = vld [vmem:[#allocation9_spill] sm:$0xff] }
 0x3a6   : > { %3841 = vmatpush3.msra.mxu0 %v5391_v41  ;;  %3885 = vmatpush3.msra.mxu1 %v5397_v60  ;;  %v1742_v60 = vmul.f32 %v5536_v27, %v5536_v27  ;;  %v7278_v41 = vld [vmem:[#allocation8_spill] sm:$0xff] }
 0x3a7   : > { %3842 = vmatprep.subr.mxu0 %v5403_v25  ;;  %3886 = vmatprep.subr.mxu1 %v5409_v12  ;;  %v7280_v12 = vmov 0.0  }
 0x3a8   : > { %3843 = vmatpush3.msra.mxu0 %v5415_v46  ;;  %3887 = vmatpush3.msra.mxu1 %v5421_v42  ;;  %v1745_v42 = vmul.f32 %v5546_v13, %v5546_v13 }
 0x3a9   : > { %3844 = vmatprep.subr.mxu0 %v5427_v44  ;;  %3888 = vmatprep.subr.mxu1 %v5433_v50  ;;  %v1733_v44 = vmul.f32 %v5500_v16, %v5500_v16  ;;  %v1740_v50 = vmul.f32 %v5534_v26, %v5534_v26 }
 0x3aa   : > { %3845 = vmatpush3.msra.mxu0 %v5439_v34  ;;  %3889 = vmatpush3.msra.mxu1 %v5445_v53  ;;  %v1746_v53 = vmul.f32 %v5558_v62, %v5558_v62  ;;  %v1743_v34 = vmul.f32 %v5544_v56, %v5544_v56 }
 0x3ab   : > { %3846 = vmatprep.subr.mxu0 %v5451_v48  ;;  %3890 = vmatprep.subr.mxu1 %v7269_v10  ;;  %v1739_v48 = vmul.f32 %v5526_v18, %v5526_v18 }
 0x3ac   : > { %3847 = vmatpush3.msra.mxu0 %v7270_v23  ;;  %3891 = vmatpush3.msra.mxu1 %v7271_v30 }
 0x3ad   : > { %3848 = vmatprep.subr.mxu0 %v7272_v54  ;;  %3892 = vmatprep.subr.mxu1 %v7273_v55 }
 0x3ae   : > { %3849 = vmatpush3.msra.mxu0 %v7274_v22  ;;  %3893 = vmatpush3.msra.mxu1 %v7275_v33 }
 0x3af   : > { %1812 = vmatmul.mubr.f32.vlgmr.msra.gmra.mxu0 %v1731_v38  ;;  %1897 = vmatmul.mubr.f32.vlgmr.msra.gmra.mxu1 %v1733_v44 }
 0x3b0   : > { %1816 = vmatprep.mubr.f32.mxu0 %v1736_v8  ;;  %1901 = vmatprep.mubr.f32.mxu1 %v1738_v21 }
 0x3b1   : > { %3557 = vmatprep.subr.msk.mxu0 %vm649_vm0, %v7276_v57  ;;  %3563 = vmatprep.subr.msk.mxu1 %vm649_vm0, %v7277_v2 }
 0x3b2   : > { %3558 = vmatpush1.msk.msra.mxu0 %vm649_vm0, %v7278_v41  ;;  %3564 = vmatpush1.msk.msra.mxu1 %vm649_vm0, %v7279_v9 }
 0x3b3   : > { %1817 = vmatmul.mubr.f32.gmra.mxu0 %v1735_v36  ;;  %1902 = vmatmul.mubr.f32.gmra.mxu1 %v1737_v43 }
 0x3b4   : > { %1821 = vmatprep.mubr.f32.mxu0 %v1740_v50  ;;  %1906 = vmatprep.mubr.f32.mxu1 %v1742_v60 }
 0x3b5   : > { %3569 = vmatprep.subr.msk.mxu0 %vm649_vm0, %v7276_v57  ;;  %3575 = vmatprep.subr.msk.mxu1 %vm649_vm0, %v7277_v2 }
 0x3b7   : > { %1822 = vmatmul.mubr.f32.gmra.mxu0 %v1739_v48  ;;  %1907 = vmatmul.mubr.f32.gmra.mxu1 %v1741_v47 }
 0x3b8   : > { %1826 = vmatprep.mubr.f32.mxu0 %v1744_v24  ;;  %1911 = vmatprep.mubr.f32.mxu1 %v1746_v53 }
 0x3bb   : > { %1827 = vmatmul.mubr.f32.gmra.mxu0 %v1743_v34  ;;  %1912 = vmatmul.mubr.f32.gmra.mxu1 %v1745_v42 }
 0x3bc   : > { %2017 = vmatprep.mubr.f32.mxu0 %v7280_v12  ;;  %2106 = vmatprep.mubr.f32.mxu1 %v7280_v12 }
 0x448   : > { %v3762_v46 = vpop.f32.mrf.mxu0  ;;  %v3806_v25 = vpop.f32.mrf.mxu1 }
 0x44a   : > { %v3763_v17 = vpop.f32.mrf.mxu0  ;;  %v3807_v5 = vpop.f32.mrf.mxu1 }
 0x44b   : > { %v3764_v14 = vadd.f32 %v3763_v17, %v3762_v46  ;;  %v3808_v49 = vadd.f32 %v3807_v5, %v3806_v25 }
 0x44d   : > { %v1709_v30 = vadd.f32 %v3808_v49, %v3764_v14 }
 0x44e   : > { %v3765_v35 = vpop.f32.mrf.mxu0  ;;  %v3809_v61 = vpop.f32.mrf.mxu1 }
 0x44f   : > { %v5662_v33 = vmul.f32 0.00390625, %v1709_v30 }
 0x450   : > { %v3766_v63 = vpop.f32.mrf.mxu0  ;;  %v3810_v58 = vpop.f32.mrf.mxu1 }
 0x451   : > { %v3767_v4 = vadd.f32 %v3766_v63, %v3765_v35  ;;  %v3811_v45 = vadd.f32 %v3810_v58, %v3809_v61  ;;  %v1921_v42 = vmul.f32 %v5662_v33, %v5662_v33 }
 0x453   : > { %v1714_v54 = vadd.f32 %v3811_v45, %v3767_v4 }
 0x454   : > { %v3768_v0 = vpop.f32.mrf.mxu0  ;;  %v3812_v6 = vpop.f32.mrf.mxu1 }
 0x455   : > { %v5664_v60 = vmul.f32 0.00390625, %v1714_v54 }
 0x456   : > { %v3769_v1 = vpop.f32.mrf.mxu0  ;;  %v3813_v15 = vpop.f32.mrf.mxu1 }
 0x457   : > { %v3770_v55 = vadd.f32 %v3769_v1, %v3768_v0  ;;  %v3814_v8 = vadd.f32 %v3813_v15, %v3812_v6  ;;  %v1922_v58 = vmul.f32 %v5664_v60, %v5664_v60 }
 0x459   : > { %v1719_v48 = vadd.f32 %v3814_v8, %v3770_v55 }
 0x45a   : > { %v3771_v7 = vpop.f32.mrf.mxu0  ;;  %v3815_v3 = vpop.f32.mrf.mxu1 }
 0x45b   : > { %v5670_v0 = vmul.f32 0.00390625, %v1719_v48 }
 0x45c   : > { %v3772_v10 = vpop.f32.mrf.mxu0  ;;  %v3816_v23 = vpop.f32.mrf.mxu1 }
 0x45d   : > { %v3773_v47 = vadd.f32 %v3772_v10, %v3771_v7  ;;  %v3817_v24 = vadd.f32 %v3816_v23, %v3815_v3  ;;  %v1923_v30 = vmul.f32 %v5670_v0, %v5670_v0 }
 0x45f   : > { %v1724_v6 = vadd.f32 %v3817_v24, %v3773_v47 }
 0x46f   : > { %v3850_v38 = vpop.f32.mrf.mxu0  ;;  %v3894_v44 = vpop.f32.mrf.mxu1 }
 0x471   : > { %v3851_v21 = vpop.f32.mrf.mxu0  ;;  %v3895_v22 = vpop.f32.mrf.mxu1 }
 0x472   : > { %v3852_v36 = vadd.f32 %v3851_v21, %v3850_v38  ;;  %v3896_v43 = vadd.f32 %v3895_v22, %v3894_v44  ;;  %v1730_v38 = vmul.f32 0.00390625, %v1724_v6 }
 0x473   : > { %v3853_v57 = vpop.f32.mrf.mxu0  ;;  %v3897_v2 = vpop.f32.mrf.mxu1 }
 0x474   : > { %v1899_v50 = vadd.f32 %v3896_v43, %v3852_v36 }
 0x475   : > { %v3854_v53 = vpop.f32.mrf.mxu0  ;;  %v3898_v34 = vpop.f32.mrf.mxu1 }
 0x476   : > { %v1917_v46 = vmul.f32 0.00390625, %v1899_v50  ;;  %v3855_v25 = vadd.f32 %v3854_v53, %v3853_v57  ;;  %v3899_v17 = vadd.f32 %v3898_v34, %v3897_v2  ;;  %v1924_v57 = vmul.f32 %v1730_v38, %v1730_v38 }
 0x477   : > { %v3856_v5 = vpop.f32.mrf.mxu0  ;;  %v3900_v35 = vpop.f32.mrf.mxu1 }
 0x478   : > { %v1925_v61 = vsub.f32 %v1917_v46, %v1921_v42  ;;  %v1904_v63 = vadd.f32 %v3899_v17, %v3855_v25 }
 0x479   : > { %v3857_v1 = vpop.f32.mrf.mxu0  ;;  %v3901_v15 = vpop.f32.mrf.mxu1 }
 0x47a   : > { %v1929_v7 = vadd.f32 1e-05, %v1925_v61  ;;  %v1918_v3 = vmul.f32 0.00390625, %v1904_v63  ;;  %v3858_v14 = vadd.f32 %v3857_v1, %v3856_v5  ;;  %v3902_v49 = vadd.f32 %v3901_v15, %v3900_v35 }
 0x47b   : > { %v3859_v4 = vpop.f32.mrf.mxu0  ;;  %v3903_v45 = vpop.f32.mrf.mxu1 }
 0x47c   : > { %3965 = vrsqrt.f32 %v1929_v7  ;;  %v1926_v10 = vsub.f32 %v1918_v3, %v1922_v58  ;;  %v1909_v23 = vadd.f32 %v3902_v49, %v3858_v14 }
 0x47d   : > { %v3860_v44 = vpop.f32.mrf.mxu0  ;;  %v3904_v54 = vpop.f32.mrf.mxu1 }
 0x47e   : > { %v1930_v55 = vadd.f32 1e-05, %v1926_v10  ;;  %v1919_v8 = vmul.f32 0.00390625, %v1909_v23  ;;  %v3861_v21 = vadd.f32 %v3860_v44, %v3859_v4  ;;  %v3905_v22 = vadd.f32 %v3904_v54, %v3903_v45 }
 0x480   : > { %3967 = vrsqrt.f32 %v1930_v55  ;;  %v1927_v36 = vsub.f32 %v1919_v8, %v1923_v30  ;;  %v1914_v43 = vadd.f32 %v3905_v22, %v3861_v21 }
 0x482   : > { %v1931_v2 = vadd.f32 1e-05, %v1927_v36  ;;  %v1920_v50 = vmul.f32 0.00390625, %v1914_v43 }
 0x484   : > { %3969 = vrsqrt.f32 %v1931_v2  ;;  %v1928_v48 = vsub.f32 %v1920_v50, %v1924_v57 }
 0x486   : > { %v1932_v47 = vadd.f32 1e-05, %v1928_v48 }
 0x488   : > { %3971 = vrsqrt.f32 %v1932_v47 }
 0x489   : > { %v3966_v24 = vpop.eup %3965 }
 0x48a   : > { %3559 = vmatmul.mubr.msk.f32.vlgmr.msra.gmra.mxu0 %vm645_vm1, %v3966_v24  ;;  %3565 = vmatmul.mubr.msk.f32.vlgmr.msra.gmra.mxu1 %vm645_vm1, %v3966_v24 }
 0x48b   : > { %2023 = vmatprep.mubr.f32.mxu0 %v7280_v12  ;;  %2112 = vmatprep.mubr.f32.mxu1 %v7280_v12 }
 0x48c   : > { %3570 = vmatpush1.msk.msra.mxu0 %vm649_vm0, %v7278_v41  ;;  %3576 = vmatpush1.msk.msra.mxu1 %vm649_vm0, %v7279_v9  ;;  %v1937_v9 = vmul.f32 %v3966_v24, %v5662_v33  ;;  %v7309_v24 = vld [vmem:[#allocation35_spill] sm:$0xff] }
 0x48d   : > { %v3968_v53 = vpop.eup %3967 }
 0x48e   : > { %3560 = vmatmul.mubr.msk.f32.gmra.mxu0 %vm645_vm1, %v3968_v53  ;;  %3566 = vmatmul.mubr.msk.f32.gmra.mxu1 %vm645_vm1, %v3968_v53  ;;  %v1938_v42 = vmul.f32 %v3968_v53, %v5664_v60  ;;  %v7281_v60 = vmov 0  }
 0x48f   : > { %2029 = vmatprep.mubr.f32.mxu0 %v7280_v12  ;;  %2118 = vmatprep.mubr.f32.mxu1 %v7280_v12 }
 0x491   : > { %v3970_v34 = vpop.eup %3969 }
 0x492   : > { %3561 = vmatmul.mubr.msk.f32.gmra.mxu0 %vm645_vm1, %v3970_v34  ;;  %3567 = vmatmul.mubr.msk.f32.gmra.mxu1 %vm645_vm1, %v3970_v34  ;;  %v1939_v33 = vmul.f32 %v3970_v34, %v5670_v0 }
 0x493   : > { %2035 = vmatprep.mubr.f32.mxu0 %v7280_v12  ;;  %2124 = vmatprep.mubr.f32.mxu1 %v7280_v12 }
 0x495   : > { %v3972_v41 = vpop.eup %3971 }
 0x496   : > { %3562 = vmatmul.mubr.msk.f32.gmra.mxu0 %vm645_vm1, %v3972_v41  ;;  %3568 = vmatmul.mubr.msk.f32.gmra.mxu1 %vm645_vm1, %v3972_v41  ;;  %v1940_v46 = vmul.f32 %v3972_v41, %v1730_v38 }
 0x497   : > { %2207 = vmatprep.mubr.f32.mxu0 %v7280_v12  ;;  %2296 = vmatprep.mubr.f32.mxu1 %v7280_v12 }
 0x49a   : > { %3571 = vmatmul.mubr.msk.f32.vlgmr.msra.gmra.mxu0 %vm645_vm1, %v1937_v9  ;;  %3577 = vmatmul.mubr.msk.f32.vlgmr.msra.gmra.mxu1 %vm645_vm1, %v1937_v9 }
 0x49b   : > { %2213 = vmatprep.mubr.f32.mxu0 %v7280_v12  ;;  %2302 = vmatprep.mubr.f32.mxu1 %v7280_v12 }
 0x49e   : > { %3572 = vmatmul.mubr.msk.f32.gmra.mxu0 %vm645_vm1, %v1938_v42  ;;  %3578 = vmatmul.mubr.msk.f32.gmra.mxu1 %vm645_vm1, %v1938_v42 }
 0x49f   : > { %2219 = vmatprep.mubr.f32.mxu0 %v7280_v12  ;;  %2308 = vmatprep.mubr.f32.mxu1 %v7280_v12 }
 0x4a2   : > { %3573 = vmatmul.mubr.msk.f32.gmra.mxu0 %vm645_vm1, %v1939_v33  ;;  %3579 = vmatmul.mubr.msk.f32.gmra.mxu1 %vm645_vm1, %v1939_v33 }
 0x4a3   : > { %2225 = vmatprep.mubr.f32.mxu0 %v7280_v12  ;;  %2314 = vmatprep.mubr.f32.mxu1 %v7280_v12 }
 0x4a6   : > { %3574 = vmatmul.mubr.msk.f32.gmra.mxu0 %vm645_vm1, %v1940_v46  ;;  %3580 = vmatmul.mubr.msk.f32.gmra.mxu1 %vm645_vm1, %v1940_v46 }
 0x4a7   : > { %3338 = vmatprep.mubr.bf16.mxu1 %v7281_v60 }
 0x54a   : > { %v2019_v25 = vpop.f32.mrf.mxu0  ;;  %v2108_v17 = vpop.f32.mrf.mxu1 }
 0x54b   : > { %v2321_v4 = vmul.f32 %v2019_v25, %v5498_v19  ;;  %v2323_v23 = vmul.f32 %v2108_v17, %v5500_v16 }
 0x54c   : > { %v5712_v5 = vpop.f32.mrf.mxu0  ;;  %v5714_v35 = vpop.f32.mrf.mxu1 }
 0x54d   : > { %v2324_v42 = vmul.f32 %v5714_v35, %v5504_v52 }
 0x54e   : > { %v2025_v61 = vpop.f32.mrf.mxu0  ;;  %v2114_v63 = vpop.f32.mrf.mxu1 }
 0x54f   : > { %v2325_v54 = vmul.f32 %v2025_v61, %v5508_v20  ;;  %v2327_v55 = vmul.f32 %v2114_v63, %v5510_v37 }
 0x550   : > { %v5716_v58 = vpop.f32.mrf.mxu0  ;;  %v5718_v0 = vpop.f32.mrf.mxu1 }
 0x551   : > { %v2326_v41 = vmul.f32 %v5716_v58, %v5518_v31  ;;  %v2328_v46 = vmul.f32 %v5718_v0, %v5520_v32 }
 0x552   : > { %v5720_v12 = vpop.f32.mrf.mxu0  ;;  %v5722_v6 = vpop.f32.mrf.mxu1 }
 0x553   : > { %v2329_v35 = vmul.f32 %v5720_v12, %v5526_v18  ;;  %v2331_v58 = vmul.f32 %v5722_v6, %v5528_v28 }
 0x554   : > { %v5724_v1 = vpop.f32.mrf.mxu0  ;;  %v2122_v15 = vpop.f32.mrf.mxu1 }
 0x555   : > { %v5751_v37 = vmul.f32 %v2122_v15, %v5536_v27  ;;  %v2322_v27 = vmul.f32 %v5712_v5, %v5502_v29 }
 0x556   : > { %v5726_v7 = vpop.f32.mrf.mxu0  ;;  %v5728_v3 = vpop.f32.mrf.mxu1 }
 0x557   : > { %v2333_v0 = vmul.f32 %v5726_v7, %v5544_v56 }
 0x558   : > { %v5730_v14 = vpop.f32.mrf.mxu0  ;;  %v5732_v49 = vpop.f32.mrf.mxu1 }
 0x559   : > { %v2336_v40 = vmul.f32 %v5732_v49, %v5558_v62 }
 0x55a   : > { %v2209_v45 = vpop.f32.mrf.mxu0  ;;  %v2298_v10 = vpop.f32.mrf.mxu1 }
 0x55b   : > { %v2337_v30 = vsub.f32 %v2321_v4, %v2209_v45  ;;  %v2339_v21 = vsub.f32 %v2323_v23, %v2298_v10  ;;  %v2335_v45 = vmul.f32 %v5728_v3, %v5546_v13 }
 0x55c   : > { %v2211_v38 = vpop.f32.mrf.mxu0  ;;  %v2300_v44 = vpop.f32.mrf.mxu1 }
 0x55d   : > { %v5738_v8 = vmax.f32 %v2337_v30, 0.0  ;;  %v5742_v2 = vmax.f32 %v2339_v21, 0.0  ;;  %v2338_v53 = vsub.f32 %v2322_v27, %v2211_v38  ;;  %v2340_v33 = vsub.f32 %v2324_v42, %v2300_v44 }
 0x55e   : > { %v2215_v22 = vpop.f32.mrf.mxu0  ;;  %v2304_v36 = vpop.f32.mrf.mxu1 }
 0x55f   : > { %7282 = vst [vmem:[#allocation45_spill] sm:$0xff] %v5738_v8  ;;  %v2341_v43 = vsub.f32 %v2325_v54, %v2215_v22  ;;  %v2343_v57 = vsub.f32 %v2327_v55, %v2304_v36  ;;  %2610 = vrot.lane.b32.xlu0 %v5738_v8, %s4106_s11  ;;  %7283 = vst [vmem:[#allocation46_spill] sm:$0xff] %v5742_v2  ;;  %v5819_v9 = vmax.f32 %v2338_v53, 0.0  ;;  %v5835_v25 = vmax.f32 %v2340_v33, 0.0 }
 0x560   : > { %v2306_v19 = vpop.f32.mrf.mxu1  ;;  %v2217_v34 = vpop.f32.mrf.mxu0 }
 0x561   : > { %v5744_v16 = vmax.f32 %v2341_v43, 0.0  ;;  %v5746_v50 = vmax.f32 %v2343_v57, 0.0  ;;  %7288 = vst [vmem:[#allocation49_spill] sm:$0xff] %v5819_v9  ;;  %v2342_v29 = vsub.f32 %v2326_v41, %v2217_v34  ;;  %7290 = vst [vmem:[#allocation51_spill] sm:$0xff] %v5835_v25  ;;  %v2344_v52 = vsub.f32 %v2328_v46, %v2306_v19 }
 0x562   : > { %v5748_v20 = vpop.f32.mrf.mxu1  ;;  %v2221_v32 = vpop.f32.mrf.mxu0 }
 0x563   : > { %7284 = vst [vmem:[#allocation47_spill] sm:$0xff] %v5744_v16  ;;  %7285 = vst [vmem:[#allocation48_spill] sm:$0xff] %v5746_v50  ;;  %2962 = vrot.lane.b32.xlu0 %v5742_v2, %s4102_s26  ;;  %2612 = vrot.lane.b32.xlu1 %v5744_v16, %s4106_s11  ;;  %v5827_v31 = vmax.f32 %v2342_v29, 0.0  ;;  %v5841_v17 = vmax.f32 %v2344_v52, 0.0  ;;  %v2345_v61 = vsub.f32 %v2329_v35, %v2221_v32 }
 0x564   : > { %v5757_v48 = vpop.f32.mrf.mxu1  ;;  %v5875_v5 = vpop.f32.mrf.mxu0  ;;  %v2347_v12 = vsub.f32 %v2331_v58, %v5748_v20 }
 0x565   : > { %7289 = vst [vmem:[#allocation50_spill] sm:$0xff] %v5827_v31  ;;  %7291 = vst [vmem:[#allocation9_spill] sm:$0xff] %v5841_v17  ;;  %v5891_v18 = vmax.f32 %v2345_v61, 0.0  ;;  %v2330_v61 = vmul.f32 %v5724_v1, %v5534_v26  ;;  %v2334_v26 = vmul.f32 %v5730_v14, %v5556_v59 }
 0x566   : > { %v2227_v63 = vpop.f32.mrf.mxu0  ;;  %v2316_v4 = vpop.f32.mrf.mxu1  ;;  %v5900_v28 = vmax.f32 %v2347_v12, 0.0 }
 0x567   : > { %2946 = vrot.lane.b32.xlu0 %v5738_v8, %s4102_s26  ;;  %2964 = vrot.lane.b32.xlu1 %v5746_v50, %s4102_s26  ;;  %7292 = vst [vmem:[#allocation11_spill] sm:$0xff] %v5891_v18  ;;  %v2349_v15 = vsub.f32 %v2333_v0, %v2227_v63  ;;  %v2351_v6 = vsub.f32 %v2335_v45, %v2316_v4 }
 0x568   : > { %7293 = vst [vmem:[#allocation8_spill] sm:$0xff] %v5900_v28  ;;  %v2346_v63 = vsub.f32 %v2330_v61, %v5875_v5  ;;  %v2229_v12 = vpop.f32.mrf.mxu0  ;;  %v2318_v47 = vpop.f32.mrf.mxu1 }
 0x569   : > { %v5902_v56 = vmax.f32 %v2349_v15, 0.0  ;;  %v5910_v13 = vmax.f32 %v2351_v6, 0.0  ;;  %v2350_v5 = vsub.f32 %v2334_v26, %v2229_v12 }
 0x56a   : > { %v6029_v1 = vmax.f32 %v2346_v63, 0.0  ;;  %v7512_v45 = vld [vmem:[#allocation48_spill] sm:$0xff] }
 0x56b   : > { %2530 = vrot.lane.b32.xlu0 %v5738_v8, %s4108_s14  ;;  %2948 = vrot.lane.b32.xlu1 %v5744_v16, %s4102_s26  ;;  %7294 = vst [vmem:[#allocation10_spill] sm:$0xff] %v5902_v56  ;;  %7295 = vst [vmem:[#allocation56_spill] sm:$0xff] %v5910_v13  ;;  %v6043_v63 = vmax.f32 %v2350_v5, 0.0 }
 0x56c   : > { %7305 = vst [vmem:[#allocation66_spill] sm:$0xff] %v6029_v1 }
 0x56d   : > { %7308 = vst [vmem:[#allocation12_spill] sm:$0xff] %v6043_v63 }
 0x56f   : > { %2626 = vrot.lane.b32.xlu0 %v5742_v2, %s4106_s11  ;;  %2532 = vrot.lane.b32.xlu1 %v5744_v16, %s4108_s14 }
 0x573   : > { %2450 = vrot.lane.b32.xlu0 %v5738_v8, %s4105_s10  ;;  %2628 = vrot.lane.b32.xlu1 %v5746_v50, %s4106_s11 }
 0x577   : > { %2546 = vrot.lane.b32.xlu0 %v5742_v2, %s4108_s14  ;;  %2452 = vrot.lane.b32.xlu1 %v5744_v16, %s4105_s10 }
 0x57b   : > { %2370 = vrot.lane.b32.xlu0 %v5738_v8, %s4107_s12  ;;  %2548 = vrot.lane.b32.xlu1 %v5746_v50, %s4108_s14 }
 0x57f   : > { %2466 = vrot.lane.b32.xlu0 %v5742_v2, %s4105_s10  ;;  %2372 = vrot.lane.b32.xlu1 %v5744_v16, %s4107_s12 }
 0x583   : > { %2386 = vrot.lane.b32.xlu0 %v5742_v2, %s4107_s12  ;;  %2468 = vrot.lane.b32.xlu1 %v5746_v50, %s4105_s10 }
 0x587   : > { %2882 = vrot.lane.b32.xlu0 %v5742_v2, %s4103_s28  ;;  %2388 = vrot.lane.b32.xlu1 %v5746_v50, %s4107_s12 }
 0x58b   : > { %2866 = vrot.lane.b32.xlu0 %v5738_v8, %s4103_s28  ;;  %2884 = vrot.lane.b32.xlu1 %v5746_v50, %s4103_s28 }
 0x58f   : > { %2802 = vrot.lane.b32.xlu0 %v5742_v2, %s7286_s17  ;;  %2868 = vrot.lane.b32.xlu1 %v5744_v16, %s4103_s28 }
 0x593   : > { %2786 = vrot.lane.b32.xlu0 %v5738_v8, %s7286_s17  ;;  %2804 = vrot.lane.b32.xlu1 %v5746_v50, %s7286_s17 }
 0x597   : > { %2722 = vrot.lane.b32.xlu0 %v5742_v2, %s7287_s9  ;;  %2788 = vrot.lane.b32.xlu1 %v5744_v16, %s7286_s17 }
 0x59b   : > { %2618 = vrot.lane.b32.xlu0 %v5819_v9, %s4106_s11  ;;  %2724 = vrot.lane.b32.xlu1 %v5746_v50, %s7287_s9  ;;  %v2352_v50 = vsub.f32 %v2336_v40, %v2318_v47 }
 0x59f   : > { %2954 = vrot.lane.b32.xlu0 %v5819_v9, %s4102_s26  ;;  %2620 = vrot.lane.b32.xlu1 %v5827_v31, %s4106_s11 }
 0x5a3   : > { %2634 = vrot.lane.b32.xlu0 %v5835_v25, %s4106_s11  ;;  %2956 = vrot.lane.b32.xlu1 %v5827_v31, %s4102_s26 }
 0x5a7   : > { %2538 = vrot.lane.b32.xlu0 %v5819_v9, %s4108_s14  ;;  %2636 = vrot.lane.b32.xlu1 %v5841_v17, %s4106_s11 }
 0x5ab   : > { %2554 = vrot.lane.b32.xlu0 %v5835_v25, %s4108_s14  ;;  %2540 = vrot.lane.b32.xlu1 %v5827_v31, %s4108_s14 }
 0x5af   : > { %2458 = vrot.lane.b32.xlu0 %v5819_v9, %s4105_s10  ;;  %2556 = vrot.lane.b32.xlu1 %v5841_v17, %s4108_s14 }
 0x5b3   : > { %2474 = vrot.lane.b32.xlu0 %v5835_v25, %s4105_s10  ;;  %2460 = vrot.lane.b32.xlu1 %v5827_v31, %s4105_s10 }
 0x5b7   : > { %2378 = vrot.lane.b32.xlu0 %v5819_v9, %s4107_s12  ;;  %2476 = vrot.lane.b32.xlu1 %v5841_v17, %s4105_s10 }
 0x5bb   : > { %2394 = vrot.lane.b32.xlu0 %v5835_v25, %s4107_s12  ;;  %2380 = vrot.lane.b32.xlu1 %v5827_v31, %s4107_s12 }
 0x5bf   : > { %2874 = vrot.lane.b32.xlu0 %v5819_v9, %s4103_s28  ;;  %2396 = vrot.lane.b32.xlu1 %v5841_v17, %s4107_s12 }
 0x5c3   : > { %2794 = vrot.lane.b32.xlu0 %v5819_v9, %s7286_s17  ;;  %2876 = vrot.lane.b32.xlu1 %v5827_v31, %s4103_s28 }
 0x5c7   : > { %2890 = vrot.lane.b32.xlu0 %v5835_v25, %s4103_s28  ;;  %2796 = vrot.lane.b32.xlu1 %v5827_v31, %s7286_s17 }
 0x5cb   : > { %2714 = vrot.lane.b32.xlu0 %v5819_v9, %s7287_s9  ;;  %2892 = vrot.lane.b32.xlu1 %v5841_v17, %s4103_s28  ;;  %v7325_v9 = vld [vmem:[#allocation44_spill] sm:$0xff] }
 0x5cf   : > { %2716 = vrot.lane.b32.xlu1 %v5827_v31, %s7287_s9  ;;  %2614 = vrot.lane.b32.xlu0 %v5891_v18, %s4106_s11 }
 0x5d1   : > { %v5904_v7 = vpop.permute.xlu0 %2610 }
 0x5d3   : > { %2966 = vrot.lane.b32.xlu0 %v5900_v28, %s4102_s26  ;;  %2616 = vrot.lane.b32.xlu1 %v5902_v56, %s4106_s11 }
 0x5d5   : > { %v5912_v3 = vpop.permute.xlu0 %2962  ;;  %v5914_v10 = vpop.permute.xlu1 %2612 }
 0x5d6   : > { %7296 = vst [vmem:[#allocation57_spill] sm:$0xff] %v5912_v3 }
 0x5d7   : > { %2950 = vrot.lane.b32.xlu0 %v5891_v18, %s4102_s26  ;;  %2968 = vrot.lane.b32.xlu1 %v5910_v13, %s4102_s26 }
 0x5d9   : > { %v5920_v23 = vpop.permute.xlu0 %2946  ;;  %v5922_v30 = vpop.permute.xlu1 %2964 }
 0x5da   : > { %7297 = vst [vmem:[#allocation58_spill] sm:$0xff] %v5920_v23  ;;  %7298 = vst [vmem:[#allocation59_spill] sm:$0xff] %v5922_v30 }
 0x5db   : > { %2534 = vrot.lane.b32.xlu0 %v5891_v18, %s4108_s14  ;;  %2952 = vrot.lane.b32.xlu1 %v5902_v56, %s4102_s26 }
 0x5dd   : > { %v5928_v38 = vpop.permute.xlu0 %2530  ;;  %v5930_v44 = vpop.permute.xlu1 %2948 }
 0x5de   : > { %7299 = vst [vmem:[#allocation60_spill] sm:$0xff] %v5930_v44 }
 0x5df   : > { %2630 = vrot.lane.b32.xlu0 %v5900_v28, %s4106_s11  ;;  %2536 = vrot.lane.b32.xlu1 %v5902_v56, %s4108_s14 }
 0x5e1   : > { %v5936_v54 = vpop.permute.xlu0 %2626  ;;  %v5938_v55 = vpop.permute.xlu1 %2532 }
 0x5e3   : > { %2454 = vrot.lane.b32.xlu0 %v5891_v18, %s4105_s10  ;;  %2632 = vrot.lane.b32.xlu1 %v5910_v13, %s4106_s11 }
 0x5e5   : > { %v5944_v21 = vpop.permute.xlu0 %2450  ;;  %v5946_v22 = vpop.permute.xlu1 %2628 }
 0x5e7   : > { %2550 = vrot.lane.b32.xlu0 %v5900_v28, %s4108_s14  ;;  %2456 = vrot.lane.b32.xlu1 %v5902_v56, %s4105_s10 }
 0x5e9   : > { %v5952_v36 = vpop.permute.xlu0 %2546  ;;  %v5954_v43 = vpop.permute.xlu1 %2452 }
 0x5eb   : > { %2374 = vrot.lane.b32.xlu0 %v5891_v18, %s4107_s12  ;;  %2552 = vrot.lane.b32.xlu1 %v5910_v13, %s4108_s14 }
 0x5ed   : > { %v5960_v57 = vpop.permute.xlu0 %2370  ;;  %v5962_v19 = vpop.permute.xlu1 %2548 }
 0x5ef   : > { %2470 = vrot.lane.b32.xlu0 %v5900_v28, %s4105_s10  ;;  %2376 = vrot.lane.b32.xlu1 %v5902_v56, %s4107_s12 }
 0x5f1   : > { %v5968_v20 = vpop.permute.xlu0 %2466  ;;  %v5970_v27 = vpop.permute.xlu1 %2372 }
 0x5f3   : > { %2390 = vrot.lane.b32.xlu0 %v5900_v28, %s4107_s12  ;;  %2472 = vrot.lane.b32.xlu1 %v5910_v13, %s4105_s10 }
 0x5f5   : > { %v5976_v53 = vpop.permute.xlu0 %2386  ;;  %v5978_v34 = vpop.permute.xlu1 %2468 }
 0x5f7   : > { %2886 = vrot.lane.b32.xlu0 %v5900_v28, %s4103_s28  ;;  %2392 = vrot.lane.b32.xlu1 %v5910_v13, %s4107_s12 }
 0x5f9   : > { %v5984_v41 = vpop.permute.xlu0 %2882  ;;  %v5986_v29 = vpop.permute.xlu1 %2388 }
 0x5fb   : > { %2870 = vrot.lane.b32.xlu0 %v5891_v18, %s4103_s28  ;;  %2888 = vrot.lane.b32.xlu1 %v5910_v13, %s4103_s28 }
 0x5fd   : > { %v5992_v42 = vpop.permute.xlu0 %2866  ;;  %v5994_v33 = vpop.permute.xlu1 %2884 }
 0x5ff   : > { %2806 = vrot.lane.b32.xlu0 %v5900_v28, %s7286_s17  ;;  %2872 = vrot.lane.b32.xlu1 %v5902_v56, %s4103_s28 }
 0x601   : > { %v6000_v46 = vpop.permute.xlu0 %2802  ;;  %v6002_v52 = vpop.permute.xlu1 %2868 }
 0x602   : > { %7300 = vst [vmem:[#allocation61_spill] sm:$0xff] %v6000_v46 }
 0x603   : > { %2790 = vrot.lane.b32.xlu0 %v5891_v18, %s7286_s17  ;;  %2808 = vrot.lane.b32.xlu1 %v5910_v13, %s7286_s17 }
 0x605   : > { %v6008_v32 = vpop.permute.xlu0 %2786  ;;  %v6010_v35 = vpop.permute.xlu1 %2804 }
 0x606   : > { %7301 = vst [vmem:[#allocation62_spill] sm:$0xff] %v6008_v32  ;;  %7302 = vst [vmem:[#allocation63_spill] sm:$0xff] %v6010_v35 }
 0x607   : > { %2726 = vrot.lane.b32.xlu0 %v5900_v28, %s7287_s9  ;;  %2792 = vrot.lane.b32.xlu1 %v5902_v56, %s7286_s17 }
 0x609   : > { %v6019_v58 = vpop.permute.xlu0 %2722  ;;  %v6021_v0 = vpop.permute.xlu1 %2788 }
 0x60a   : > { %7303 = vst [vmem:[#allocation64_spill] sm:$0xff] %v6019_v58  ;;  %7304 = vst [vmem:[#allocation65_spill] sm:$0xff] %v6021_v0 }
 0x60b   : > { %2710 = vrot.lane.b32.xlu0 %v5891_v18, %s7287_s9  ;;  %2728 = vrot.lane.b32.xlu1 %v5910_v13, %s7287_s9 }
 0x60d   : > { %v2619_v15 = vpop.permute.xlu0 %2618  ;;  %v6031_v4 = vpop.permute.xlu1 %2724 }
 0x60e   : > { %7306 = vst [vmem:[#allocation67_spill] sm:$0xff] %v6031_v4  ;;  %v2646_v6 = vsel %vm1126_vm7, %v2619_v15, %v5936_v54  ;;  %v2650_v59 = vsel %vm1126_vm7, %v5904_v7, %v2619_v15 }
 0x60f   : > { %2622 = vrot.lane.b32.xlu0 %v6029_v1, %s4106_s11  ;;  %2712 = vrot.lane.b32.xlu1 %v5902_v56, %s7287_s9  ;;  %v6052_v51 = vmul.f32 %v2650_v59, %v7309_v24  ;;  %v6055_v11 = vmul.f32 %v2646_v6, %v7310_v39 }
 0x611   : > { %v2955_v14 = vpop.permute.xlu0 %2954  ;;  %v2621_v61 = vpop.permute.xlu1 %2620  ;;  %7311 = vst [vmem:[#allocation35_spill] sm:$0xff] %v6055_v11 }
 0x612   : > { %v2647_v12 = vsel %vm1126_vm7, %v2621_v61, %v5946_v22  ;;  %v2651_v26 = vsel %vm1126_vm7, %v5914_v10, %v2621_v61  ;;  %v2982_v59 = vsel %vm1334_vm2, %v2955_v14, %v5912_v3  ;;  %v2986_v6 = vsel %vm1334_vm2, %v5920_v23, %v2955_v14  ;;  %v7320_v3 = vld [vmem:[#allocation43_spill] sm:$0xff] }
 0x613   : > { %v6058_v15 = vmul.f32 %v2651_v26, %v7309_v24  ;;  %v6061_v5 = vmul.f32 %v2647_v12, %v7310_v39  ;;  %2958 = vrot.lane.b32.xlu0 %v6029_v1, %s4102_s26  ;;  %2624 = vrot.lane.b32.xlu1 %v6043_v63, %s4106_s11  ;;  %v7312_v61 = vsub.f32 %v5751_v37, %v5757_v48  ;;  %v7314_v37 = vld [vmem:[#allocation39_spill] sm:$0xff] }
 0x614   : > { %v6091_v48 = vmul.f32 %v2986_v6, %v7314_v37 }
 0x615   : > { %v6078_v12 = vmax.f32 %v7312_v61, 0.0  ;;  %v2635_v62 = vpop.permute.xlu0 %2634  ;;  %v2957_v49 = vpop.permute.xlu1 %2956  ;;  %v7315_v61 = vld [vmem:[#allocation40_spill] sm:$0xff] }
 0x616   : > { %v2983_v14 = vsel %vm1334_vm2, %v2957_v49, %v5922_v30  ;;  %v2987_v60 = vsel %vm1334_vm2, %v5930_v44, %v2957_v49  ;;  %v6094_v13 = vmul.f32 %v2982_v59, %v7315_v61  ;;  %v2642_v40 = vsel %vm1126_vm7, %v5936_v54, %v2635_v62  ;;  %v7318_v44 = vld [vmem:[#allocation18_spill] sm:$0xff] }
 0x617   : > { %7313 = vst [vmem:[#allocation36_spill] sm:$0xff] %v6078_v12  ;;  %v6097_v26 = vmul.f32 %v2987_v60, %v7314_v37  ;;  %v6100_v2 = vmul.f32 %v2983_v14, %v7315_v61  ;;  %2638 = vrot.lane.b32.xlu0 %v6078_v12, %s4106_s11  ;;  %v2654_v47 = vsel %vm1126_vm7, %v2635_v62, %v5904_v7  ;;  %v6116_v14 = vmax.f32 %v2352_v50, 0.0  ;;  %v7317_v62 = vld [vmem:[#allocation31_spill] sm:$0xff] }
 0x618   : > { %2960 = vrot.lane.b32.xlu1 %v6043_v63, %s4102_s26  ;;  %v6125_v28 = vmul.f32 %v2654_v47, %v7317_v62  ;;  %v6128_v60 = vmul.f32 %v2642_v40, %v7318_v44 }
 0x619   : > { %v2539_v59 = vpop.permute.xlu0 %2538  ;;  %v2637_v6 = vpop.permute.xlu1 %2636  ;;  %7316 = vst [vmem:[#allocation39_spill] sm:$0xff] %v6116_v14 }
 0x61a   : > { %v2643_v54 = vsel %vm1126_vm7, %v5946_v22, %v2637_v6  ;;  %v2655_v7 = vsel %vm1126_vm7, %v2637_v6, %v5914_v10  ;;  %v2566_v22 = vsel %vm1084_vm9, %v2539_v59, %v5952_v36  ;;  %v2570_v10 = vsel %vm1084_vm9, %v5928_v38, %v2539_v59  ;;  %v7319_v59 = vld [vmem:[#allocation41_spill] sm:$0xff] }
 0x61b   : > { %v6131_v30 = vmul.f32 %v2655_v7, %v7317_v62  ;;  %v6134_v50 = vmul.f32 %v2643_v54, %v7318_v44  ;;  %2542 = vrot.lane.b32.xlu0 %v6029_v1, %s4108_s14  ;;  %v6157_v23 = vmul.f32 %v2570_v10, %v7319_v59  ;;  %v6160_v56 = vmul.f32 %v2566_v22, %v7320_v3 }
 0x61c   : > { %2640 = vrot.lane.b32.xlu1 %v6116_v14, %s4106_s11  ;;  %s3468_s11 = sshll.u32 %s4512_s18, 4  ;;  %s3469_s11 = int_to_ptr.vmem [resolvable:$true] %s3468_s11 }
 0x61d   : > { %v2555_v47 = vpop.permute.xlu0 %2554  ;;  %v2541_v6 = vpop.permute.xlu1 %2540  ;;  %7321 = vst [vmem:[#allocation40_spill] sm:$0xff] %v6160_v56  ;;  %s4037_s20 = scalar_lea.vmem %s3469_s11, 512 }
 0x61e   : > { %v2567_v7 = vsel %vm1084_vm9, %v2541_v6, %v5962_v19  ;;  %v2571_v49 = vsel %vm1084_vm9, %v5938_v55, %v2541_v6  ;;  %v2562_v54 = vsel %vm1084_vm9, %v5952_v36, %v2555_v47  ;;  %v2574_v10 = vsel %vm1084_vm9, %v2555_v47, %v5928_v38  ;;  %v7323_v38 = vld [vmem:[#allocation42_spill] sm:$0xff]  ;;  %p4038_p11 = scmp.ne.s32.totalorder %s3469_s11, %s4037_s20 }
 0x61f   : > { %v6163_v40 = vmul.f32 %v2571_v49, %v7319_v59  ;;  %v6166_v18 = vmul.f32 %v2567_v7, %v7320_v3  ;;  %2558 = vrot.lane.b32.xlu0 %v6078_v12, %s4108_s14  ;;  %v6189_v47 = vmul.f32 %v2574_v10, %v7323_v38  ;;  %v6192_v58 = vmul.f32 %v2562_v54, %v7325_v9 }
 0x620   : > { %2544 = vrot.lane.b32.xlu1 %v6043_v63, %s4108_s14  ;;  %p4039_p12 = pnand %p4038_p11, %p4184_p5 }
 0x621   : > { %7322 = vst [vmem:[#allocation31_spill] sm:$0xff] %v6166_v18  ;;  %v2459_v22 = vpop.permute.xlu0 %2458  ;;  %v2557_v6 = vpop.permute.xlu1 %2556  ;;  %7324 = vst [vmem:[#allocation18_spill] sm:$0xff] %v6189_v47  ;;  %v7330_v18 = vld [vmem:[#allocation33_spill] sm:$0xff] }
 0x622   : > { %v2563_v31 = vsel %vm1084_vm9, %v5962_v19, %v2557_v6  ;;  %v2575_v36 = vsel %vm1084_vm9, %v2557_v6, %v5938_v55  ;;  %7326 = vst [vmem:[#allocation41_spill] sm:$0xff] %v6192_v58  ;;  %v2486_v19 = vsel %vm1030_vm6, %v2459_v22, %v5968_v20  ;;  %v2490_v55 = vsel %vm1030_vm6, %v5944_v21, %v2459_v22  ;;  %v7328_v22 = vld [vmem:[#allocation32_spill] sm:$0xff]  ;;  %v7336_v58 = vld [vmem:[#allocation17_spill] sm:$0xff]  ;;  %p4040_p13 = pneg %p4039_p12 }
 0x623   : > { %v6195_v49 = vmul.f32 %v2575_v36, %v7323_v38  ;;  %v6198_v4 = vmul.f32 %v2563_v31, %v7325_v9  ;;  %2462 = vrot.lane.b32.xlu0 %v6029_v1, %s4105_s10  ;;  %v6221_v56 = vmul.f32 %v2490_v55, %v7328_v22  ;;  %v6224_v11 = vmul.f32 %v2486_v19, %v7330_v18 }
 0x624   : > { %2560 = vrot.lane.b32.xlu1 %v6116_v14, %s4108_s14 }
 0x625   : > { %7327 = vst [vmem:[#allocation43_spill] sm:$0xff] %v6198_v4  ;;  %v2475_v10 = vpop.permute.xlu0 %2474  ;;  %v2461_v31 = vpop.permute.xlu1 %2460  ;;  %7329 = vst [vmem:[#allocation42_spill] sm:$0xff] %v6221_v56  ;;  %v7342_v56 = vld [vmem:[#allocation38_spill] sm:$0xff] }
 0x626   : > { %v2487_v36 = vsel %vm1030_vm6, %v2461_v31, %v5978_v34  ;;  %v2491_v7 = vsel %vm1030_vm6, %v5954_v43, %v2461_v31  ;;  %7331 = vst [vmem:[#allocation44_spill] sm:$0xff] %v6224_v11  ;;  %v2482_v6 = vsel %vm1030_vm6, %v5968_v20, %v2475_v10  ;;  %v2494_v55 = vsel %vm1030_vm6, %v2475_v10, %v5944_v21  ;;  %v7334_v21 = vld [vmem:[#allocation28_spill] sm:$0xff] }
 0x627   : > { %v6227_v54 = vmul.f32 %v2491_v7, %v7328_v22  ;;  %v6230_v47 = vmul.f32 %v2487_v36, %v7330_v18  ;;  %2478 = vrot.lane.b32.xlu0 %v6078_v12, %s4105_s10  ;;  %v6253_v10 = vmul.f32 %v2494_v55, %v7334_v21  ;;  %v6256_v4 = vmul.f32 %v2482_v6, %v7336_v58 }
 0x628   : > { %2464 = vrot.lane.b32.xlu1 %v6043_v63, %s4105_s10 }
 0x629   : > { %7332 = vst [vmem:[#allocation32_spill] sm:$0xff] %v6227_v54  ;;  %7333 = vst [vmem:[#allocation68_spill] sm:$0xff] %v6230_v47  ;;  %v2379_v19 = vpop.permute.xlu0 %2378  ;;  %v2477_v31 = vpop.permute.xlu1 %2476 }
 0x62a   : > { %v2483_v18 = vsel %vm1030_vm6, %v5978_v34, %v2477_v31  ;;  %v2495_v20 = vsel %vm1030_vm6, %v2477_v31, %v5954_v43  ;;  %7335 = vst [vmem:[#allocation28_spill] sm:$0xff] %v6253_v10  ;;  %7337 = vst [vmem:[#allocation17_spill] sm:$0xff] %v6256_v4  ;;  %v2406_v34 = vsel %vm988_vm8, %v2379_v19, %v5976_v53 }
 0x62b   : > { %v6259_v7 = vmul.f32 %v2495_v20, %v7334_v21  ;;  %v6262_v11 = vmul.f32 %v2483_v18, %v7336_v58  ;;  %2382 = vrot.lane.b32.xlu0 %v6029_v1, %s4107_s12  ;;  %v2410_v43 = vsel %vm988_vm8, %v5960_v57, %v2379_v19  ;;  %v7340_v19 = vld [vmem:[#allocation37_spill] sm:$0xff]  ;;  %v6288_v54 = vmul.f32 %v2406_v34, %v7342_v56 }
 0x62c   : > { %2480 = vrot.lane.b32.xlu1 %v6116_v14, %s4105_s10  ;;  %v6285_v47 = vmul.f32 %v2410_v43, %v7340_v19 }
 0x62d   : > { %7338 = vst [vmem:[#allocation69_spill] sm:$0xff] %v6259_v7  ;;  %7339 = vst [vmem:[#allocation70_spill] sm:$0xff] %v6262_v11  ;;  %v2395_v55 = vpop.permute.xlu0 %2394  ;;  %v2381_v18 = vpop.permute.xlu1 %2380  ;;  %v7348_v11 = vld [vmem:[#allocation20_spill] sm:$0xff] }
 0x62e   : > { %v2407_v20 = vsel %vm988_vm8, %v2381_v18, %v5986_v29  ;;  %v2411_v36 = vsel %vm988_vm8, %v5970_v27, %v2381_v18  ;;  %7341 = vst [vmem:[#allocation37_spill] sm:$0xff] %v6285_v47  ;;  %7343 = vst [vmem:[#allocation71_spill] sm:$0xff] %v6288_v54  ;;  %v2402_v31 = vsel %vm988_vm8, %v5976_v53, %v2395_v55  ;;  %v7354_v47 = vld [vmem:[#allocation27_spill] sm:$0xff] }
 0x62f   : > { %v6291_v6 = vmul.f32 %v2411_v36, %v7340_v19  ;;  %v6294_v10 = vmul.f32 %v2407_v20, %v7342_v56  ;;  %2398 = vrot.lane.b32.xlu0 %v6078_v12, %s4107_s12  ;;  %v2414_v43 = vsel %vm988_vm8, %v2395_v55, %v5960_v57  ;;  %v7346_v57 = vld [vmem:[#allocation34_spill] sm:$0xff]  ;;  %v6320_v7 = vmul.f32 %v2402_v31, %v7348_v11 }
 0x630   : > { %2384 = vrot.lane.b32.xlu1 %v6043_v63, %s4107_s12  ;;  %v6317_v55 = vmul.f32 %v2414_v43, %v7346_v57 }
 0x631   : > { %7344 = vst [vmem:[#allocation72_spill] sm:$0xff] %v6291_v6  ;;  %7345 = vst [vmem:[#allocation73_spill] sm:$0xff] %v6294_v10  ;;  %v2875_v34 = vpop.permute.xlu0 %2874  ;;  %v2397_v18 = vpop.permute.xlu1 %2396 }
 0x632   : > { %v2403_v4 = vsel %vm988_vm8, %v5986_v29, %v2397_v18  ;;  %v2415_v53 = vsel %vm988_vm8, %v2397_v18, %v5970_v27  ;;  %7347 = vst [vmem:[#allocation74_spill] sm:$0xff] %v6317_v55  ;;  %7349 = vst [vmem:[#allocation75_spill] sm:$0xff] %v6320_v7  ;;  %v2902_v29 = vsel %vm1280_vm4, %v2875_v34, %v5984_v41 }
 0x633   : > { %v6323_v36 = vmul.f32 %v2415_v53, %v7346_v57  ;;  %v6326_v54 = vmul.f32 %v2403_v4, %v7348_v11  ;;  %2810 = vrot.lane.b32.xlu0 %v5835_v25, %s7286_s17  ;;  %v2906_v27 = vsel %vm1280_vm4, %v5992_v42, %v2875_v34  ;;  %v7352_v34 = vld [vmem:[#allocation26_spill] sm:$0xff]  ;;  %v6352_v6 = vmul.f32 %v2902_v29, %v7354_v47 }
 0x634   : > { %2400 = vrot.lane.b32.xlu1 %v6116_v14, %s4107_s12  ;;  %v6349_v10 = vmul.f32 %v2906_v27, %v7352_v34 }
 0x635   : > { %7350 = vst [vmem:[#allocation76_spill] sm:$0xff] %v6323_v36  ;;  %7351 = vst [vmem:[#allocation77_spill] sm:$0xff] %v6326_v54  ;;  %v2795_v43 = vpop.permute.xlu0 %2794  ;;  %v2877_v4 = vpop.permute.xlu1 %2876  ;;  %v7360_v54 = vld [vmem:[#allocation30_spill] sm:$0xff] }
 0x636   : > { %v2903_v53 = vsel %vm1280_vm4, %v2877_v4, %v5994_v33  ;;  %v2907_v20 = vsel %vm1280_vm4, %v6002_v52, %v2877_v4  ;;  %7353 = vst [vmem:[#allocation78_spill] sm:$0xff] %v6349_v10  ;;  %7355 = vst [vmem:[#allocation79_spill] sm:$0xff] %v6352_v6  ;;  %v2822_v18 = vsel %vm1238_vm5, %v2795_v43, %v6000_v46 }
 0x637   : > { %v6355_v31 = vmul.f32 %v2907_v20, %v7352_v34  ;;  %v6358_v55 = vmul.f32 %v2903_v53, %v7354_v47  ;;  %2878 = vrot.lane.b32.xlu0 %v6029_v1, %s4103_s28  ;;  %v2826_v27 = vsel %vm1238_vm5, %v6008_v32, %v2795_v43  ;;  %v7358_v43 = vld [vmem:[#allocation29_spill] sm:$0xff]  ;;  %v6384_v36 = vmul.f32 %v2822_v18, %v7360_v54 }
 0x638   : > { %2812 = vrot.lane.b32.xlu1 %v5841_v17, %s7286_s17  ;;  %v6381_v32 = vmul.f32 %v2826_v27, %v7358_v43 }
 0x639   : > { %7356 = vst [vmem:[#allocation80_spill] sm:$0xff] %v6355_v31  ;;  %7357 = vst [vmem:[#allocation81_spill] sm:$0xff] %v6358_v55  ;;  %v2891_v29 = vpop.permute.xlu0 %2890  ;;  %v2797_v4 = vpop.permute.xlu1 %2796 }
 0x63a   : > { %v2823_v7 = vsel %vm1238_vm5, %v2797_v4, %v6010_v35  ;;  %v2827_v46 = vsel %vm1238_vm5, %v6021_v0, %v2797_v4  ;;  %7359 = vst [vmem:[#allocation82_spill] sm:$0xff] %v6381_v32  ;;  %7361 = vst [vmem:[#allocation83_spill] sm:$0xff] %v6384_v36  ;;  %v2898_v53 = vsel %vm1280_vm4, %v5984_v41, %v2891_v29  ;;  %v7367_v0 = vld [vmem:[#allocation22_spill] sm:$0xff] }
 0x63b   : > { %v6387_v20 = vmul.f32 %v2827_v46, %v7358_v43  ;;  %v6390_v10 = vmul.f32 %v2823_v7, %v7360_v54  ;;  %2798 = vrot.lane.b32.xlu0 %v6029_v1, %s7286_s17  ;;  %v2910_v27 = vsel %vm1280_vm4, %v2891_v29, %v5992_v42  ;;  %v7365_v29 = vld [vmem:[#allocation15_spill] sm:$0xff] }
 0x63c   : > { %2880 = vrot.lane.b32.xlu1 %v6043_v63, %s4103_s28  ;;  %v6415_v35 = vmul.f32 %v2898_v53, %v7365_v29  ;;  %v6418_v31 = vmul.f32 %v2910_v27, %v7367_v0 }
 0x63d   : > { %7362 = vst [vmem:[#allocation84_spill] sm:$0xff] %v6387_v20  ;;  %7363 = vst [vmem:[#allocation85_spill] sm:$0xff] %v6390_v10  ;;  %v6404_v18 = vpop.permute.xlu0 %2714  ;;  %v2893_v7 = vpop.permute.xlu1 %2892 }
 0x63e   : > { %7364 = vst [vmem:[#allocation86_spill] sm:$0xff] %v6404_v18  ;;  %v2899_v41 = vsel %vm1280_vm4, %v5994_v33, %v2893_v7  ;;  %v2911_v42 = vsel %vm1280_vm4, %v2893_v7, %v6002_v52  ;;  %7366 = vst [vmem:[#allocation87_spill] sm:$0xff] %v6415_v35 }
 0x63f   : > { %7368 = vst [vmem:[#allocation88_spill] sm:$0xff] %v6418_v31  ;;  %v6421_v46 = vmul.f32 %v2899_v41, %v7365_v29  ;;  %v6424_v32 = vmul.f32 %v2911_v42, %v7367_v0  ;;  %2894 = vrot.lane.b32.xlu0 %v6078_v12, %s4103_s28 }
 0x640   : > { %2800 = vrot.lane.b32.xlu1 %v6043_v63, %s7286_s17 }
 0x641   : > { %7369 = vst [vmem:[#allocation89_spill] sm:$0xff] %v6421_v46  ;;  %7370 = vst [vmem:[#allocation90_spill] sm:$0xff] %v6424_v32  ;;  %v6432_v52 = vpop.permute.xlu1 %2716  ;;  %v6434_v53 = vpop.permute.xlu0 %2614 }
 0x642   : > { %7371 = vst [vmem:[#allocation91_spill] sm:$0xff] %v6432_v52 }
 0x643   : > { %2718 = vrot.lane.b32.xlu0 %v6029_v1, %s7287_s9  ;;  %v6465_v1 = vld [vmem:[%s7016_s2] sm:$0x3f] }
 0x644   : > { %2896 = vrot.lane.b32.xlu1 %v6116_v14, %s4103_s28 }
 0x645   : > { %v6442_v7 = vpop.permute.xlu0 %2966  ;;  %v6444_v41 = vpop.permute.xlu1 %2616 }
 0x646   : > { %7372 = vst [vmem:[#allocation92_spill] sm:$0xff] %v6442_v7 }
 0x647   : > { %2814 = vrot.lane.b32.xlu0 %v6078_v12, %s7286_s17 }
 0x648   : > { %2720 = vrot.lane.b32.xlu1 %v6043_v63, %s7287_s9  ;;  %v7375_v63 = vld [vmem:[#allocation7_spill] sm:$0xff] }
 0x649   : > { %v6450_v42 = vpop.permute.xlu0 %2950  ;;  %v6452_v33 = vpop.permute.xlu1 %2968  ;;  %v6471_v35 = vrot.slane %v6465_v1, %v7375_v63 }
 0x64a   : > { %7373 = vst [vmem:[#allocation93_spill] sm:$0xff] %v6450_v42  ;;  %7374 = vst [vmem:[#allocation94_spill] sm:$0xff] %v6452_v33 }
 0x64b   : > { %2706 = vrot.lane.b32.xlu0 %v5738_v8, %s7287_s9  ;;  %7376 = vst [vmem:[#allocation7_spill] sm:$0xff] %v6471_v35  ;;  %v6481_v20 = vcombine.high %v6471_v35, %v6471_v35 }
 0x64c   : > { %2816 = vrot.lane.b32.xlu1 %v6116_v14, %s7286_s17 }
 0x64d   : > { %v6458_v27 = vpop.permute.xlu0 %2534  ;;  %v6460_v4 = vpop.permute.xlu1 %2952  ;;  %3297 = vmatprep.mubr.bf16.mxu0 %v6481_v20 }
 0x64f   : > { %2734 = vrot.lane.b32.xlu0 %v6078_v12, %s7287_s9 }
 0x650   : > { %2708 = vrot.lane.b32.xlu1 %v5744_v16, %s7287_s9 }
 0x651   : > { %v6475_v8 = vpop.permute.xlu0 %2630  ;;  %v6477_v46 = vpop.permute.xlu1 %2536 }
 0x653   : > { %2730 = vrot.lane.b32.xlu0 %v5835_v25, %s7287_s9 }
 0x654   : > { %2736 = vrot.lane.b32.xlu1 %v6116_v14, %s7287_s9 }
 0x655   : > { %v6488_v31 = vpop.permute.xlu0 %2454  ;;  %v2633_v32 = vpop.permute.xlu1 %2632 }
 0x657   : > { %2974 = vrot.lane.b32.xlu0 %v6078_v12, %s4102_s26 }
 0x658   : > { %2732 = vrot.lane.b32.xlu1 %v5841_v17, %s7287_s9 }
 0x659   : > { %v6494_v16 = vpop.permute.xlu0 %2550  ;;  %v6496_v35 = vpop.permute.xlu1 %2456 }
 0x65b   : > { %2970 = vrot.lane.b32.xlu0 %v5835_v25, %s4102_s26 }
 0x65c   : > { %2976 = vrot.lane.b32.xlu1 %v6116_v14, %s4102_s26 }
 0x65d   : > { %v6502_v36 = vpop.permute.xlu0 %2374  ;;  %v6504_v10 = vpop.permute.xlu1 %2552 }
 0x660   : > { %2972 = vrot.lane.b32.xlu1 %v5841_v17, %s4102_s26  ;;  %s3589_s26 = sshll.u32 %s4167_s25, 9  ;;  %s4110_s25 = smov [#allocation4]  }
 0x661   : > { %v6508_v12 = vpop.permute.xlu0 %2470  ;;  %v6510_v18 = vpop.permute.xlu1 %2376  ;;  %s3466_s29 = scalar_lea.hbm %s7020_s6, %s3589_s26  ;;  %s4041_s13 = sshll.u32 %s4110_s25, 4  ;;  %s4042_s13 = int_to_ptr.vmem [resolvable:$false] %s4041_s13 }
 0x662   : > { %7377 = vst [vmem:[#allocation95_spill] sm:$0xff] %v6510_v18  ;;  %s4043_s16 = scalar_lea.vmem %s4042_s13, 1024  ;;  %p4044_p0 = scmp.lt.s32.totalorder %s3469_s11, %s4042_s13 }
 0x663   : > { %p4045_p1 = scmp.lt.s32.totalorder %s4043_s16, %s4037_s20 }
 0x665   : > { %v6512_v52 = vpop.permute.xlu0 %2390  ;;  %v6514_v0 = vpop.permute.xlu1 %2472  ;;  %p4046_p2 = por %p4045_p1, %p4044_p0 }
 0x667   : > { %p4047_p3 = pnand %p4046_p2, %p4040_p13 }
 0x669   : > { %v6516_v43 = vpop.permute.xlu0 %2886  ;;  %v6518_v25 = vpop.permute.xlu1 %2392 }
 0x66a   : > { %7378 = vst [vmem:[#allocation96_spill] sm:$0xff] %v6516_v43  ;;  %7379 = vst [vmem:[#allocation97_spill] sm:$0xff] %v6518_v25 }
 0x66d   : > { %v6520_v14 = vpop.permute.xlu0 %2870  ;;  %v6522_v29 = vpop.permute.xlu1 %2888 }
 0x66e   : > { %7380 = vst [vmem:[#allocation98_spill] sm:$0xff] %v6520_v14  ;;  %7381 = vst [vmem:[#allocation99_spill] sm:$0xff] %v6522_v29 }
 0x671   : > { %v6524_v6 = vpop.permute.xlu0 %2806  ;;  %v6526_v55 = vpop.permute.xlu1 %2872 }
 0x672   : > { %7382 = vst [vmem:[#allocation100_spill] sm:$0xff] %v6524_v6  ;;  %7383 = vst [vmem:[#allocation101_spill] sm:$0xff] %v6526_v55 }
 0x675   : > { %v6528_v17 = vpop.permute.xlu0 %2790  ;;  %v6530_v54 = vpop.permute.xlu1 %2808 }
 0x676   : > { %7384 = vst [vmem:[#allocation102_spill] sm:$0xff] %v6528_v17  ;;  %7385 = vst [vmem:[#allocation103_spill] sm:$0xff] %v6530_v54 }
 0x679   : > { %v6532_v47 = vpop.permute.xlu0 %2726  ;;  %v6534_v34 = vpop.permute.xlu1 %2792 }
 0x67a   : > { %7386 = vst [vmem:[#allocation104_spill] sm:$0xff] %v6532_v47  ;;  %7387 = vst [vmem:[#allocation105_spill] sm:$0xff] %v6534_v34 }
 0x67d   : > { %v6536_v11 = vpop.permute.xlu0 %2710  ;;  %v6538_v43 = vpop.permute.xlu1 %2728 }
 0x67e   : > { %7388 = vst [vmem:[#allocation106_spill] sm:$0xff] %v6536_v11  ;;  %7389 = vst [vmem:[#allocation107_spill] sm:$0xff] %v6538_v43 }
 0x681   : > { %v2623_v57 = vpop.permute.xlu0 %2622  ;;  %v6540_v14 = vpop.permute.xlu1 %2712 }
 0x682   : > { %7390 = vst [vmem:[#allocation108_spill] sm:$0xff] %v6540_v14  ;;  %v2652_v6 = vsel %vm1126_vm7, %v6434_v53, %v2623_v57 }
 0x683   : > { %v2667_v47 = vmul.f32 %v2652_v6, %v7309_v24 }
 0x685   : > { %v2959_v55 = vpop.permute.xlu0 %2958  ;;  %v2625_v29 = vpop.permute.xlu1 %2624 }
 0x686   : > { %v2653_v17 = vsel %vm1126_vm7, %v6444_v41, %v2625_v29  ;;  %v2984_v11 = vsel %vm1334_vm2, %v2959_v55, %v6442_v7  ;;  %v2988_v14 = vsel %vm1334_vm2, %v6450_v42, %v2959_v55 }
 0x687   : > { %v2671_v34 = vmul.f32 %v2653_v17, %v7309_v24  ;;  %v3002_v24 = vmul.f32 %v2988_v14, %v7314_v37  ;;  %v3003_v17 = vmul.f32 %v2984_v11, %v7315_v61  ;;  %v2649_v14 = vsel %vm1126_vm7, %v2625_v29, %v2633_v32 }
 0x688   : > { %v2672_v29 = vmul.f32 %v2649_v14, %v7310_v39 }
 0x689   : > { %v2639_v43 = vpop.permute.xlu0 %2638  ;;  %v3199_v56 = vpack.c.bf16 %v2671_v34, %v2667_v47 }
 0x68a   : > { %v2961_v54 = vpop.permute.xlu1 %2960  ;;  %v2656_v47 = vsel %vm1126_vm7, %v2639_v43, %v6434_v53  ;;  %v2644_v11 = vsel %vm1126_vm7, %v6475_v8, %v2639_v43 }
 0x68b   : > { %v2985_v18 = vsel %vm1334_vm2, %v2961_v54, %v6452_v33  ;;  %v2989_v6 = vsel %vm1334_vm2, %v6460_v4, %v2961_v54  ;;  %3265 = vmatprep.subr.bf16.mxu0 %v3199_v56  ;;  %v3243_v54 = vcombine.high %v6465_v1, %v6465_v1 }
 0x68c   : > { %v3006_v7 = vmul.f32 %v2989_v6, %v7314_v37  ;;  %v3007_v25 = vmul.f32 %v2985_v18, %v7315_v61  ;;  %v2666_v61 = vmul.f32 %v2656_v47, %v7317_v62  ;;  %v2648_v18 = vsel %vm1126_vm7, %v2623_v57, %v6475_v8 }
 0x68d   : > { %v2543_v55 = vpop.permute.xlu0 %2542  ;;  %v6599_v57 = vrot.slane %v3243_v54, %v7375_v63  ;;  %v7393_v63 = vpack.c.bf16 %v6097_v26, %v6091_v48 }
 0x68e   : > { %v3238_v34 = vpack.c.bf16 %v3006_v7, %v3002_v24  ;;  %v2641_v33 = vpop.permute.xlu1 %2640  ;;  %v3239_v42 = vpack.c.bf16 %v3007_v25, %v3003_v17  ;;  %v2572_v43 = vsel %vm1084_vm9, %v6458_v27, %v2543_v55 }
 0x68f   : > { %v2645_v56 = vsel %vm1126_vm7, %v2633_v32, %v2641_v33  ;;  %v2657_v37 = vsel %vm1126_vm7, %v2641_v33, %v6444_v41  ;;  %v2669_v33 = vmul.f32 %v2644_v11, %v7318_v44  ;;  %v2668_v41 = vmul.f32 %v2648_v18, %v7310_v39 }
 0x690   : > { %v2670_v25 = vmul.f32 %v2657_v37, %v7317_v62  ;;  %v2673_v1 = vmul.f32 %v2645_v56, %v7318_v44  ;;  %3318 = vmatprep.subr.bf16.mxu1 %v3239_v42  ;;  %v7391_v62 = vpack.c.bf16 %v6100_v2, %v6094_v13  ;;  %v2587_v42 = vmul.f32 %v2572_v43, %v7319_v59 }
 0x691   : > { %3319 = vmatpush1.bf16.msra.mxu1 %v3238_v34  ;;  %v2559_v32 = vpop.permute.xlu0 %2558  ;;  %v7392_v13 = vpack.c.bf16 %v6058_v15, %v6052_v51  ;;  %v3200_v39 = vpack.c.bf16 %v2672_v29, %v2668_v41  ;;  %v7395_v11 = vpack.c.bf16 %v6134_v50, %v6128_v60  ;;  %v7396_v50 = vpack.c.bf16 %v6163_v40, %v6157_v23  ;;  %v7401_v41 = vld [vmem:[#allocation43_spill] sm:$0xff] }
 0x692   : > { %v3198_v53 = vpack.c.bf16 %v2670_v25, %v2666_v61  ;;  %3320 = vmatprep.subr.bf16.mxu1 %v7391_v62  ;;  %v2545_v7 = vpop.permute.xlu1 %2544  ;;  %v3201_v44 = vpack.c.bf16 %v2673_v1, %v2669_v33  ;;  %v2576_v2 = vsel %vm1084_vm9, %v2559_v32, %v6458_v27  ;;  %v2564_v27 = vsel %vm1084_vm9, %v6494_v16, %v2559_v32 }
 0x693   : > { %v2573_v8 = vsel %vm1084_vm9, %v6477_v46, %v2545_v7  ;;  %v2569_v51 = vsel %vm1084_vm9, %v2545_v7, %v6504_v10  ;;  %v2586_v48 = vmul.f32 %v2576_v2, %v7323_v38  ;;  %v2589_v54 = vmul.f32 %v2564_v27, %v7325_v9 }
 0x694   : > { %v2591_v6 = vmul.f32 %v2573_v8, %v7319_v59  ;;  %3266 = vmatpush1.bf16.msra.mxu0 %v3198_v53  ;;  %v2568_v59 = vsel %vm1084_vm9, %v2543_v55, %v6494_v16  ;;  %v7394_v16 = vpack.c.bf16 %v6131_v30, %v6125_v28  ;;  %v7399_v53 = vld [vmem:[#allocation18_spill] sm:$0xff] }
 0x695   : > { %3267 = vmatprep.subr.bf16.mxu0 %v7392_v13  ;;  %3321 = vmatpush1.bf16.msra.mxu1 %v7393_v63  ;;  %v2463_v24 = vpop.permute.xlu0 %2462  ;;  %v2588_v30 = vmul.f32 %v2568_v59, %v7320_v3  ;;  %v7400_v62 = vpack.c.bf16 %v6195_v49, %v7399_v53  ;;  %v7405_v63 = vld [vmem:[#allocation97_spill] sm:$0xff]  ;;  %v7406_v59 = vld [vmem:[#allocation95_spill] sm:$0xff] }
 0x696   : > { %3347 = vmatprep.subr.bf16.mxu1 %v3201_v44  ;;  %v2561_v17 = vpop.permute.xlu1 %2560  ;;  %v3191_v47 = vpack.c.bf16 %v2591_v6, %v2587_v42  ;;  %v7402_v42 = vld [vmem:[#allocation41_spill] sm:$0xff] }
 0x697   : > { %v2565_v15 = vsel %vm1084_vm9, %v6504_v10, %v2561_v17  ;;  %v2577_v26 = vsel %vm1084_vm9, %v2561_v17, %v6477_v46  ;;  %v2492_v10 = vsel %vm1030_vm6, %v6488_v31, %v2463_v24  ;;  %v7403_v6 = vpack.c.bf16 %v7401_v41, %v7402_v42  ;;  %v7404_v44 = vld [vmem:[#allocation33_spill] sm:$0xff] }
 0x698   : > { %v2590_v55 = vmul.f32 %v2577_v26, %v7323_v38  ;;  %v2593_v34 = vmul.f32 %v2565_v15, %v7325_v9  ;;  %3268 = vmatpush1.bf16.msra.mxu0 %v7394_v16  ;;  %3581 = vmatmul.mubr.msk.bf16.vlgmr.msra.gmra.mxu1 %vm3261_vm11, %v6599_v57  ;;  %v2592_v38 = vmul.f32 %v2569_v51, %v7320_v3  ;;  %v7397_v3 = vld [vmem:[#allocation35_spill] sm:$0xff]  ;;  %v7408_v26 = vld [vmem:[#allocation32_spill] sm:$0xff]  ;;  %v7431_v42 = vld [vmem:[#allocation101_spill] sm:$0xff] }
 0x699   : > { %3269 = vmatprep.subr.bf16.mxu0 %v3191_v47  ;;  %3348 = vmatpush1.bf16.msra.mxu1 %v3200_v39  ;;  %v2479_v46 = vpop.permute.xlu0 %2478  ;;  %v2507_v37 = vmul.f32 %v2492_v10, %v7328_v22  ;;  %v7398_v25 = vpack.c.bf16 %v6061_v5, %v7397_v3  ;;  %v7412_v16 = vld [vmem:[#allocation40_spill] sm:$0xff] }
 0x69a   : > { %v3190_v14 = vpack.c.bf16 %v2590_v55, %v2586_v48  ;;  %3349 = vmatprep.subr.bf16.mxu1 %v7395_v11  ;;  %v2465_v28 = vpop.permute.xlu1 %2464  ;;  %3379 = vmatprep.mubr.bf16.mxu1 %v6481_v20  ;;  %v2496_v9 = vsel %vm1030_vm6, %v2479_v46, %v6488_v31  ;;  %v3193_v60 = vpack.c.bf16 %v2593_v34, %v2589_v54  ;;  %v7409_v48 = vld [vmem:[#allocation42_spill] sm:$0xff]  ;;  %v7411_v34 = vld [vmem:[#allocation31_spill] sm:$0xff] }
 0x69b   : > { %v2493_v56 = vsel %vm1030_vm6, %v6496_v35, %v2465_v28  ;;  %v3192_v20 = vpack.c.bf16 %v2592_v38, %v2588_v30  ;;  %v2484_v31 = vsel %vm1030_vm6, %v6508_v12, %v2479_v46  ;;  %v2489_v40 = vsel %vm1030_vm6, %v2465_v28, %v6514_v0  ;;  %v7414_v30 = vld [vmem:[#allocation34_spill] sm:$0xff] }
 0x69c   : > { %v2511_v61 = vmul.f32 %v2493_v56, %v7328_v22  ;;  %3270 = vmatpush1.bf16.msra.mxu0 %v3190_v14  ;;  %v2506_v22 = vmul.f32 %v2496_v9, %v7334_v21  ;;  %v2509_v8 = vmul.f32 %v2484_v31, %v7336_v58  ;;  %v2512_v2 = vmul.f32 %v2489_v40, %v7404_v44  ;;  %v7415_v9 = vld [vmem:[#allocation20_spill] sm:$0xff]  ;;  %v7423_v40 = vld [vmem:[#allocation98_spill] sm:$0xff] }
 0x69d   : > { %3271 = vmatprep.subr.bf16.mxu0 %v7396_v50  ;;  %3350 = vmatpush1.bf16.msra.mxu1 %v7398_v25  ;;  %v2383_v1 = vpop.permute.xlu0 %2382  ;;  %v7410_v55 = vpack.c.bf16 %v7408_v26, %v7409_v48  ;;  %v7413_v10 = vpack.c.bf16 %v7411_v34, %v7412_v16  ;;  %v7417_v50 = vld [vmem:[#allocation28_spill] sm:$0xff]  ;;  %v7441_v34 = vld [vmem:[#allocation103_spill] sm:$0xff] }
 0x69e   : > { %3351 = vmatprep.subr.bf16.mxu1 %v3193_v60  ;;  %v2481_v18 = vpop.permute.xlu1 %2480  ;;  %v3183_v43 = vpack.c.bf16 %v2511_v61, %v2507_v37  ;;  %v2412_v32 = vsel %vm988_vm8, %v6502_v36, %v2383_v1  ;;  %v7416_v60 = vld [vmem:[#allocation69_spill] sm:$0xff]  ;;  %v7440_v48 = vld [vmem:[#allocation100_spill] sm:$0xff] }
 0x69f   : > { %v2485_v23 = vsel %vm1030_vm6, %v6514_v0, %v2481_v18  ;;  %v2497_v5 = vsel %vm1030_vm6, %v2481_v18, %v6496_v35  ;;  %v2408_v35 = vsel %vm988_vm8, %v2383_v1, %v6512_v52  ;;  %v2488_v0 = vsel %vm1030_vm6, %v2463_v24, %v6508_v12  ;;  %v7407_v24 = vld [vmem:[#allocation38_spill] sm:$0xff]  ;;  %v7420_v18 = vld [vmem:[#allocation17_spill] sm:$0xff] }
 0x6a0   : > { %v2510_v29 = vmul.f32 %v2497_v5, %v7334_v21  ;;  %v2513_v33 = vmul.f32 %v2485_v23, %v7336_v58  ;;  %3272 = vmatpush1.bf16.msra.mxu0 %v7400_v62  ;;  %v2427_v13 = vmul.f32 %v2412_v32, %v7340_v19  ;;  %v2428_v58 = vmul.f32 %v2408_v35, %v7407_v24  ;;  %v7422_v23 = vld [vmem:[#allocation96_spill] sm:$0xff] }
 0x6a1   : > { %3273 = vmatprep.subr.bf16.mxu0 %v3183_v43  ;;  %3352 = vmatpush1.bf16.msra.mxu1 %v3192_v20  ;;  %v2399_v7 = vpop.permute.xlu0 %2398  ;;  %v2508_v51 = vmul.f32 %v2488_v0, %v7404_v44  ;;  %v7418_v3 = vpack.c.bf16 %v7416_v60, %v7417_v50  ;;  %v7419_v20 = vld [vmem:[#allocation70_spill] sm:$0xff]  ;;  %v7427_v62 = vld [vmem:[#allocation68_spill] sm:$0xff]  ;;  %v7448_v60 = vld [vmem:[#allocation81_spill] sm:$0xff] }
 0x6a2   : > { %v3182_v21 = vpack.c.bf16 %v2510_v29, %v2506_v22  ;;  %3353 = vmatprep.subr.bf16.mxu1 %v7403_v6  ;;  %v2385_v49 = vpop.permute.xlu1 %2384  ;;  %v3185_v27 = vpack.c.bf16 %v2513_v33, %v2509_v8  ;;  %v2416_v15 = vsel %vm988_vm8, %v2399_v7, %v6502_v36  ;;  %v2404_v11 = vsel %vm988_vm8, %v6512_v52, %v2399_v7  ;;  %v7424_v29 = vld [vmem:[#allocation72_spill] sm:$0xff]  ;;  %v7425_v33 = vld [vmem:[#allocation37_spill] sm:$0xff]  ;;  %v7449_v50 = vld [vmem:[#allocation79_spill] sm:$0xff] }
 0x6a3   : > { %v2409_v39 = vsel %vm988_vm8, %v2385_v49, %v7405_v63  ;;  %v2413_v12 = vsel %vm988_vm8, %v7406_v59, %v2385_v49  ;;  %v3184_v14 = vpack.c.bf16 %v2512_v2, %v2508_v51  ;;  %v2426_v56 = vmul.f32 %v2416_v15, %v7414_v30  ;;  %v7428_v35 = vld [vmem:[#allocation44_spill] sm:$0xff]  ;;  %v7432_v49 = vld [vmem:[#allocation26_spill] sm:$0xff]  ;;  %v7433_v2 = vld [vmem:[#allocation27_spill] sm:$0xff] }
 0x6a4   : > { %v2431_v17 = vmul.f32 %v2413_v12, %v7340_v19  ;;  %v2432_v47 = vmul.f32 %v2409_v39, %v7407_v24  ;;  %3274 = vmatpush1.bf16.msra.mxu0 %v3182_v21  ;;  %v2429_v25 = vmul.f32 %v2404_v11, %v7415_v9  ;;  %v7421_v43 = vpack.c.bf16 %v7419_v20, %v7420_v18  ;;  %v7430_v21 = vld [vmem:[#allocation99_spill] sm:$0xff]  ;;  %v7435_v12 = vld [vmem:[#allocation74_spill] sm:$0xff]  ;;  %v7452_v20 = vld [vmem:[#allocation29_spill] sm:$0xff] }
 0x6a5   : > { %3275 = vmatprep.subr.bf16.mxu0 %v7410_v55  ;;  %3354 = vmatpush1.bf16.msra.mxu1 %v7413_v10  ;;  %v6712_v46 = vpop.permute.xlu0 %2810  ;;  %v7426_v53 = vpack.c.bf16 %v7424_v29, %v7425_v33  ;;  %v7429_v7 = vpack.c.bf16 %v7427_v62, %v7428_v35  ;;  %v7454_v33 = vld [vmem:[#allocation67_spill] sm:$0xff] }
 0x6a6   : > { %v3176_v19 = vpack.c.bf16 %v2432_v47, %v2428_v58  ;;  %3355 = vmatprep.subr.bf16.mxu1 %v3185_v27  ;;  %v2401_v54 = vpop.permute.xlu1 %2400  ;;  %v3175_v38 = vpack.c.bf16 %v2431_v17, %v2427_v13  ;;  %v7437_v47 = vld [vmem:[#allocation77_spill] sm:$0xff]  ;;  %v7438_v27 = vld [vmem:[#allocation75_spill] sm:$0xff] }
 0x6a7   : > { %v2405_v36 = vsel %vm988_vm8, %v7405_v63, %v2401_v54  ;;  %v2417_v28 = vsel %vm988_vm8, %v2401_v54, %v7406_v59  ;;  %v7434_v59 = vld [vmem:[#allocation76_spill] sm:$0xff]  ;;  %v7439_v51 = vpack.c.bf16 %v7437_v47, %v7438_v27 }
 0x6a8   : > { %v2430_v37 = vmul.f32 %v2417_v28, %v7414_v30  ;;  %v2433_v61 = vmul.f32 %v2405_v36, %v7415_v9  ;;  %3276 = vmatpush1.bf16.msra.mxu0 %v7418_v3  ;;  %v7436_v24 = vpack.c.bf16 %v7434_v59, %v7435_v12  ;;  %v7444_v36 = vld [vmem:[#allocation73_spill] sm:$0xff]  ;;  %v7445_v28 = vld [vmem:[#allocation71_spill] sm:$0xff]  ;;  %v7450_v3 = vpack.c.bf16 %v7448_v60, %v7449_v50  ;;  %v7462_v59 = vld [vmem:[#allocation104_spill] sm:$0xff] }
 0x6a9   : > { %3277 = vmatprep.subr.bf16.mxu0 %v3175_v38  ;;  %3356 = vmatpush1.bf16.msra.mxu1 %v3184_v14  ;;  %v2879_v52 = vpop.permute.xlu0 %2878  ;;  %v7443_v38 = vld [vmem:[#allocation30_spill] sm:$0xff]  ;;  %v7446_v30 = vpack.c.bf16 %v7444_v36, %v7445_v28  ;;  %v7474_v50 = vld [vmem:[#allocation88_spill] sm:$0xff] }
 0x6aa   : > { %v3174_v1 = vpack.c.bf16 %v2430_v37, %v2426_v56  ;;  %3357 = vmatprep.subr.bf16.mxu1 %v7421_v43  ;;  %v6733_v31 = vpop.permute.xlu1 %2812  ;;  %v3177_v22 = vpack.c.bf16 %v2433_v61, %v2429_v25  ;;  %v2904_v5 = vsel %vm1280_vm4, %v2879_v52, %v7422_v23  ;;  %v2908_v32 = vsel %vm1280_vm4, %v7423_v40, %v2879_v52  ;;  %v7447_v37 = vld [vmem:[#allocation102_spill] sm:$0xff]  ;;  %v7451_v25 = vld [vmem:[#allocation15_spill] sm:$0xff] }
 0x6ab   : > { %v2922_v44 = vmul.f32 %v2908_v32, %v7432_v49  ;;  %v2923_v13 = vmul.f32 %v2904_v5, %v7433_v2  ;;  %v7469_v36 = vld [vmem:[#allocation106_spill] sm:$0xff] }
 0x6ac   : > { %3278 = vmatpush1.bf16.msra.mxu0 %v3174_v1 }
 0x6ad   : > { %3279 = vmatprep.subr.bf16.mxu0 %v7426_v53  ;;  %3358 = vmatpush1.bf16.msra.mxu1 %v7429_v7  ;;  %v2799_v0 = vpop.permute.xlu0 %2798  ;;  %v7455_v53 = vld [vmem:[#allocation91_spill] sm:$0xff]  ;;  %v7456_v7 = vld [vmem:[#allocation80_spill] sm:$0xff] }
 0x6ae   : > { %3359 = vmatprep.subr.bf16.mxu1 %v3177_v22  ;;  %v2881_v8 = vpop.permute.xlu1 %2880  ;;  %v2824_v55 = vsel %vm1238_vm5, %v2799_v0, %v7440_v48  ;;  %v2828_v9 = vsel %vm1238_vm5, %v7447_v37, %v2799_v0  ;;  %v2743_v62 = vsel %vm1184_vm3, %v7455_v53, %v7454_v33  ;;  %v7457_v0 = vld [vmem:[#allocation78_spill] sm:$0xff] }
 0x6af   : > { %v2905_v41 = vsel %vm1280_vm4, %v2881_v8, %v7430_v21  ;;  %v2909_v6 = vsel %vm1280_vm4, %v7431_v42, %v2881_v8  ;;  %v2843_v61 = vmul.f32 %v2824_v55, %v7443_v38  ;;  %v2842_v35 = vmul.f32 %v2828_v9, %v7452_v20  ;;  %v7466_v55 = vld [vmem:[#allocation62_spill] sm:$0xff]  ;;  %v7470_v9 = vld [vmem:[#allocation85_spill] sm:$0xff] }
 0x6b0   : > { %v2926_v63 = vmul.f32 %v2909_v6, %v7432_v49  ;;  %v2927_v39 = vmul.f32 %v2905_v41, %v7433_v2  ;;  %3280 = vmatpush1.bf16.msra.mxu0 %v7436_v24  ;;  %v7458_v8 = vpack.c.bf16 %v7456_v7, %v7457_v0  ;;  %v7459_v41 = vld [vmem:[#allocation64_spill] sm:$0xff]  ;;  %v7463_v24 = vld [vmem:[#allocation107_spill] sm:$0xff] }
 0x6b1   : > { %3360 = vmatpush1.bf16.msra.mxu1 %v3176_v19  ;;  %v2895_v58 = vpop.permute.xlu0 %2894  ;;  %v7442_v19 = vld [vmem:[#allocation105_spill] sm:$0xff]  ;;  %v7482_v7 = vld [vmem:[#allocation87_spill] sm:$0xff] }
 0x6b2   : > { %v3230_v17 = vpack.c.bf16 %v2926_v63, %v2922_v44  ;;  %3361 = vmatprep.subr.bf16.mxu1 %v7439_v51  ;;  %v2801_v15 = vpop.permute.xlu1 %2800  ;;  %v3231_v26 = vpack.c.bf16 %v2927_v39, %v2923_v13  ;;  %v2900_v10 = vsel %vm1280_vm4, %v7422_v23, %v2895_v58  ;;  %v2912_v11 = vsel %vm1280_vm4, %v2895_v58, %v7423_v40  ;;  %v7453_v23 = vld [vmem:[#allocation22_spill] sm:$0xff]  ;;  %v7461_v13 = vld [vmem:[#allocation65_spill] sm:$0xff]  ;;  %v7465_v51 = vld [vmem:[#allocation108_spill] sm:$0xff] }
 0x6b3   : > { %v2825_v16 = vsel %vm1238_vm5, %v2801_v15, %v7441_v34  ;;  %v2829_v54 = vsel %vm1238_vm5, %v7442_v19, %v2801_v15  ;;  %v2924_v1 = vmul.f32 %v2900_v10, %v7451_v25  ;;  %v2925_v5 = vmul.f32 %v2912_v11, %v7453_v23  ;;  %v7467_v10 = vld [vmem:[#allocation63_spill] sm:$0xff] }
 0x6b4   : > { %v2847_v14 = vmul.f32 %v2825_v16, %v7443_v38  ;;  %3281 = vmatprep.subr.bf16.mxu0 %v3231_v26  ;;  %v2846_v18 = vmul.f32 %v2829_v54, %v7452_v20  ;;  %v2831_v63 = vsel %vm1238_vm5, %v6733_v31, %v7461_v13  ;;  %v2830_v16 = vsel %vm1238_vm5, %v6712_v46, %v7466_v55 }
 0x6b5   : > { %3282 = vmatpush2.bf16.msra.mxu0 %v3230_v17  ;;  %3362 = vmatpush1.bf16.msra.mxu1 %v7446_v30  ;;  %v2719_v56 = vpop.permute.xlu0 %2718  ;;  %v7464_v17 = vld [vmem:[#allocation24_spill] sm:$0xff]  ;;  %v2819_v54 = vsel %vm1238_vm5, %v7467_v10, %v6733_v31  ;;  %v7473_v31 = vld [vmem:[#allocation90_spill] sm:$0xff] }
 0x6b6   : > { %3283 = vmatprep.subr.bf16.mxu0 %v7450_v3  ;;  %v2897_v52 = vpop.permute.xlu1 %2896  ;;  %v3223_v29 = vpack.c.bf16 %v2847_v14, %v2843_v61  ;;  %v3222_v39 = vpack.c.bf16 %v2846_v18, %v2842_v35  ;;  %v2744_v12 = vsel %vm1184_vm3, %v2719_v56, %v7462_v59  ;;  %v2759_v47 = vmul.f32 %v2743_v62, %v7464_v17  ;;  %v7468_v14 = vld [vmem:[#allocation25_spill] sm:$0xff]  ;;  %v7471_v61 = vld [vmem:[#allocation83_spill] sm:$0xff]  ;;  %v7479_v62 = vld [vmem:[#allocation82_spill] sm:$0xff] }
 0x6b7   : > { %v2901_v43 = vsel %vm1280_vm4, %v7430_v21, %v2897_v52  ;;  %v2913_v22 = vsel %vm1280_vm4, %v2897_v52, %v7431_v42  ;;  %v7460_v42 = vld [vmem:[#allocation86_spill] sm:$0xff]  ;;  %v2841_v11 = vmul.f32 %v2831_v63, %v7468_v14  ;;  %v2748_v28 = vsel %vm1184_vm3, %v7469_v36, %v2719_v56  ;;  %v7476_v52 = vld [vmem:[#allocation16_spill] sm:$0xff] }
 0x6b8   : > { %v2928_v40 = vmul.f32 %v2901_v43, %v7451_v25  ;;  %v2929_v32 = vmul.f32 %v2913_v22, %v7453_v23  ;;  %v2742_v6 = vsel %vm1184_vm3, %v7460_v42, %v7459_v41  ;;  %v2763_v30 = vmul.f32 %v2744_v12, %v7464_v17  ;;  %v7486_v10 = vld [vmem:[#allocation12_spill] sm:$0xff] }
 0x6b9   : > { %3284 = vmatpush2.bf16.msra.mxu0 %v7458_v8  ;;  %v2815_v21 = vpop.permute.xlu0 %2814  ;;  %v7472_v60 = vpack.c.bf16 %v7470_v9, %v7471_v61  ;;  %v7475_v3 = vpack.c.bf16 %v7473_v31, %v7474_v50  ;;  %v2840_v13 = vmul.f32 %v2819_v54, %v7476_v52 }
 0x6ba   : > { %v3232_v49 = vpack.c.bf16 %v2928_v40, %v2924_v1  ;;  %3285 = vmatprep.subr.bf16.mxu0 %v3223_v29  ;;  %v2721_v44 = vpop.permute.xlu1 %2720  ;;  %v3233_v2 = vpack.c.bf16 %v2929_v32, %v2925_v5  ;;  %v2820_v27 = vsel %vm1238_vm5, %v7440_v48, %v2815_v21  ;;  %v2832_v48 = vsel %vm1238_vm5, %v2815_v21, %v7447_v37  ;;  %v7477_v1 = vld [vmem:[#allocation23_spill] sm:$0xff]  ;;  %v7484_v21 = vld [vmem:[#allocation61_spill] sm:$0xff] }
 0x6bb   : > { %v2745_v58 = vsel %vm1184_vm3, %v2721_v44, %v7463_v24  ;;  %v2749_v15 = vsel %vm1184_vm3, %v7465_v51, %v2721_v44  ;;  %v2844_v25 = vmul.f32 %v2820_v27, %v7476_v52  ;;  %v2845_v43 = vmul.f32 %v2832_v48, %v7468_v14  ;;  %v7487_v48 = vld [vmem:[#allocation14_spill] sm:$0xff] }
 0x6bc   : > { %v2767_v26 = vmul.f32 %v2745_v58, %v7464_v17  ;;  %3363 = vmatprep.subr.bf16.mxu1 %v3233_v2  ;;  %v2766_v20 = vmul.f32 %v2749_v15, %v7477_v1  ;;  %v2755_v40 = vmul.f32 %v2742_v6, %v7464_v17  ;;  %v2762_v32 = vmul.f32 %v2748_v28, %v7477_v1  ;;  %v7488_v28 = vld [vmem:[#allocation21_spill] sm:$0xff] }
 0x6bd   : > { %3286 = vmatpush2.bf16.msra.mxu0 %v3222_v39  ;;  %3364 = vmatpush2.bf16.msra.mxu1 %v3232_v49  ;;  %v2707_v38 = vpop.permute.xlu0 %2706  ;;  %v2818_v6 = vsel %vm1238_vm5, %v7484_v21, %v6712_v46  ;;  %v2837_v49 = vmul.f32 %v2830_v16, %v7468_v14  ;;  %v7485_v16 = vld [vmem:[#allocation66_spill] sm:$0xff] }
 0x6be   : > { %3287 = vmatprep.subr.bf16.mxu0 %v7472_v60  ;;  %3365 = vmatprep.subr.bf16.mxu1 %v7475_v3  ;;  %v2817_v37 = vpop.permute.xlu1 %2816  ;;  %v3215_v5 = vpack.c.bf16 %v2767_v26, %v2763_v30  ;;  %v2746_v29 = vsel %vm1184_vm3, %v2707_v38, %v7460_v42  ;;  %v3214_v63 = vpack.c.bf16 %v2766_v20, %v2762_v32  ;;  %v7494_v32 = vld [vmem:[#allocation93_spill] sm:$0xff] }
 0x6bf   : > { %v2821_v18 = vsel %vm1238_vm5, %v7441_v34, %v2817_v37  ;;  %v2833_v56 = vsel %vm1238_vm5, %v2817_v37, %v7442_v19  ;;  %v7478_v34 = vld [vmem:[#allocation84_spill] sm:$0xff]  ;;  %v7481_v19 = vld [vmem:[#allocation89_spill] sm:$0xff]  ;;  %v3211_v12 = vpack.c.bf16 %v2759_v47, %v2755_v40  ;;  %v2754_v58 = vmul.f32 %v2746_v29, %v7477_v1 }
 0x6c0   : > { %v2848_v22 = vmul.f32 %v2821_v18, %v7476_v52  ;;  %v2849_v23 = vmul.f32 %v2833_v56, %v7468_v14  ;;  %v7480_v35 = vpack.c.bf16 %v7478_v34, %v7479_v62  ;;  %v7483_v0 = vpack.c.bf16 %v7481_v19, %v7482_v7  ;;  %v7489_v37 = vld [vmem:[#allocation49_spill] sm:$0xff]  ;;  %v7492_v18 = vld [vmem:[#allocation10_spill] sm:$0xff]  ;;  %v7496_v7 = vld [vmem:[#allocation47_spill] sm:$0xff] }
 0x6c1   : > { %v2735_v8 = vpop.permute.xlu0 %2734  ;;  %v3221_v27 = vpack.c.bf16 %v2841_v11, %v2837_v49  ;;  %v2836_v15 = vmul.f32 %v2818_v6, %v7476_v52  ;;  %v7490_v52 = vld [vmem:[#allocation50_spill] sm:$0xff]  ;;  %v7495_v19 = vld [vmem:[#allocation45_spill] sm:$0xff] }
 0x6c2   : > { %3288 = vmatpush2.bf16.msra.mxu0 %v7480_v35  ;;  %3366 = vmatpush2.bf16.msra.mxu1 %v7483_v0  ;;  %v3224_v44 = vpack.c.bf16 %v2848_v22, %v2844_v25  ;;  %v2709_v2 = vpop.permute.xlu1 %2708  ;;  %v3225_v42 = vpack.c.bf16 %v2849_v23, %v2845_v43  ;;  %v2740_v46 = vsel %vm1184_vm3, %v7462_v59, %v2735_v8  ;;  %v7493_v22 = vld [vmem:[#allocation92_spill] sm:$0xff]  ;;  %v7498_v6 = vld [vmem:[#allocation94_spill] sm:$0xff] }
 0x6c3   : > { %3289 = vmatprep.subr.bf16.mxu0 %v3215_v5  ;;  %v2747_v39 = vsel %vm1184_vm3, %v2709_v2, %v7455_v53  ;;  %v2752_v26 = vsel %vm1184_vm3, %v2735_v8, %v7469_v36  ;;  %v3207_v59 = vpack.c.bf16 %v7486_v10, %v7485_v16  ;;  %v3220_v54 = vpack.c.bf16 %v2840_v13, %v2836_v15  ;;  %v7497_v8 = vld [vmem:[#allocation13_spill] sm:$0xff] }
 0x6c4   : > { %v2758_v17 = vmul.f32 %v2747_v39, %v7477_v1  ;;  %3367 = vmatprep.subr.bf16.mxu1 %v3225_v42  ;;  %v2764_v14 = vmul.f32 %v2740_v46, %v7487_v48  ;;  %v2765_v30 = vmul.f32 %v2752_v26, %v7488_v28  ;;  %v3203_v25 = vpack.c.bf16 %v7490_v52, %v7489_v37  ;;  %v7500_v42 = vld [vmem:[#allocation39_spill] sm:$0xff] }
 0x6c5   : > { %v2731_v53 = vpop.permute.xlu0 %2730  ;;  %v3202_v0 = vpack.c.bf16 %v7496_v7, %v7495_v19  ;;  %v7517_v19 = vld [vmem:[#allocation53_spill] sm:$0xff] }
 0x6c6   : > { %3290 = vmatpush2.bf16.msra.mxu0 %v3214_v63  ;;  %3368 = vmatpush2.bf16.msra.mxu1 %v3224_v44  ;;  %v3210_v47 = vpack.c.bf16 %v2758_v17, %v2754_v58  ;;  %v2737_v55 = vpop.permute.xlu1 %2736  ;;  %v2738_v9 = vsel %vm1184_vm3, %v7459_v41, %v2731_v53  ;;  %v2750_v31 = vsel %vm1184_vm3, %v2731_v53, %v2707_v38  ;;  %v7491_v38 = vld [vmem:[#allocation11_spill] sm:$0xff] }
 0x6c7   : > { %3291 = vmatprep.subr.bf16.mxu0 %v3211_v12  ;;  %3369 = vmatprep.subr.bf16.mxu1 %v3221_v27  ;;  %v2741_v11 = vsel %vm1184_vm3, %v7463_v24, %v2737_v55  ;;  %v2753_v36 = vsel %vm1184_vm3, %v2737_v55, %v7465_v51  ;;  %v2756_v1 = vmul.f32 %v2738_v9, %v7487_v48  ;;  %v7501_v63 = vld [vmem:[#allocation19_spill] sm:$0xff]  ;;  %v7502_v12 = vld [vmem:[#allocation57_spill] sm:$0xff]  ;;  %v7503_v27 = vld [vmem:[#allocation58_spill] sm:$0xff] }
 0x6c8   : > { %v2768_v61 = vmul.f32 %v2741_v11, %v7487_v48  ;;  %v2769_v60 = vmul.f32 %v2753_v36, %v7488_v28  ;;  %v3206_v56 = vpack.c.bf16 %v7492_v18, %v7491_v38  ;;  %v2757_v43 = vmul.f32 %v2750_v31, %v7488_v28  ;;  %v7505_v55 = vld [vmem:[#allocation9_spill] sm:$0xff]  ;;  %v7508_v11 = vld [vmem:[#allocation8_spill] sm:$0xff] }
 0x6c9   : > { %v2975_v24 = vpop.permute.xlu0 %2974  ;;  %v7509_v36 = vld [vmem:[#allocation56_spill] sm:$0xff] }
 0x6ca   : > { %3292 = vmatpush2.bf16.msra.mxu0 %v3210_v47  ;;  %3370 = vmatpush2.bf16.msra.mxu1 %v3220_v54  ;;  %v3216_v50 = vpack.c.bf16 %v2768_v61, %v2764_v14  ;;  %v2733_v3 = vpop.permute.xlu1 %2732  ;;  %v3217_v51 = vpack.c.bf16 %v2769_v60, %v2765_v30  ;;  %v2980_v23 = vsel %vm1334_vm2, %v7493_v22, %v2975_v24  ;;  %v7504_v47 = vld [vmem:[#allocation51_spill] sm:$0xff]  ;;  %v7515_v18 = vld [vmem:[#allocation52_spill] sm:$0xff] }
 0x6cb   : > { %3293 = vmatprep.subr.bf16.mxu0 %v3207_v59  ;;  %v2739_v41 = vsel %vm1184_vm3, %v7454_v33, %v2733_v3  ;;  %v2751_v20 = vsel %vm1184_vm3, %v2733_v3, %v2709_v2  ;;  %v2992_v33 = vsel %vm1334_vm2, %v2975_v24, %v7494_v32  ;;  %v3004_v21 = vmul.f32 %v2980_v23, %v7497_v8  ;;  %v7499_v2 = vld [vmem:[#allocation36_spill] sm:$0xff]  ;;  %v7506_v59 = vld [vmem:[#allocation59_spill] sm:$0xff]  ;;  %v7513_v3 = vld [vmem:[#allocation46_spill] sm:$0xff] }
 0x6cc   : > { %v2760_v5 = vmul.f32 %v2739_v41, %v7487_v48  ;;  %v2761_v40 = vmul.f32 %v2751_v20, %v7488_v28  ;;  %3371 = vmatprep.subr.bf16.mxu1 %v3217_v51  ;;  %v3209_v13 = vpack.c.bf16 %v7500_v42, %v7499_v2  ;;  %v3005_v39 = vmul.f32 %v2992_v33, %v7501_v63  ;;  %v7507_v48 = vld [vmem:[#allocation60_spill] sm:$0xff]  ;;  %v7510_v60 = vld [vmem:[#allocation7_spill] sm:$0xff] }
 0x6cd   : > { %v2971_v29 = vpop.permute.xlu0 %2970  ;;  %v3205_v16 = vpack.c.bf16 %v7505_v55, %v7504_v47  ;;  %v3208_v28 = vpack.c.bf16 %v7509_v36, %v7508_v11  ;;  %v7514_v51 = vpack.c.bf16 %v7512_v45, %v7513_v3 }
 0x6ce   : > { %3294 = vmatpush2.bf16.msra.mxu0 %v3206_v56  ;;  %3372 = vmatpush2.bf16.msra.mxu1 %v3216_v50  ;;  %v3212_v34 = vpack.c.bf16 %v2760_v5, %v2756_v1  ;;  %v2977_v62 = vpop.permute.xlu1 %2976  ;;  %v3213_v35 = vpack.c.bf16 %v2761_v40, %v2757_v43  ;;  %v2978_v58 = vsel %vm1334_vm2, %v7502_v12, %v2971_v29  ;;  %v7511_v50 = vmov 0   ;;  %v7516_v5 = vld [vmem:[#allocation54_spill] sm:$0xff] }
 0x6cf   : > { %3295 = vmatprep.subr.bf16.mxu0 %v3203_v25  ;;  %v2981_v49 = vsel %vm1334_vm2, %v7498_v6, %v2977_v62  ;;  %v2993_v44 = vsel %vm1334_vm2, %v2977_v62, %v6460_v4  ;;  %v2990_v15 = vsel %vm1334_vm2, %v2971_v29, %v7503_v27  ;;  %v2996_v10 = vmul.f32 %v2978_v58, %v7497_v8 }
 0x6d0   : > { %v3008_v46 = vmul.f32 %v2981_v49, %v7497_v8  ;;  %v3009_v17 = vmul.f32 %v2993_v44, %v7501_v63  ;;  %3373 = vmatprep.subr.bf16.mxu1 %v3213_v35  ;;  %v2997_v30 = vmul.f32 %v2990_v15, %v7501_v63  ;;  %v7518_v49 = vld [vmem:[#allocation55_spill] sm:$0xff] }
 0x6d2   : > { %3296 = vmatpush2.bf16.msra.mxu0 %v3202_v0  ;;  %3374 = vmatpush2.bf16.msra.mxu1 %v3212_v34  ;;  %v3240_v4 = vpack.c.bf16 %v3008_v46, %v3004_v21  ;;  %v2973_v26 = vpop.permute.xlu1 %2972  ;;  %v3241_v53 = vpack.c.bf16 %v3009_v17, %v3005_v39 }
 0x6d3   : > { %3375 = vmatprep.subr.bf16.mxu1 %v3209_v13  ;;  %v2979_v54 = vsel %vm1334_vm2, %v7506_v59, %v2973_v26  ;;  %v2991_v14 = vsel %vm1334_vm2, %v2973_v26, %v7507_v48 }
 0x6d4   : > { %v3000_v9 = vmul.f32 %v2979_v54, %v7497_v8  ;;  %v3001_v61 = vmul.f32 %v2991_v14, %v7501_v63  ;;  %3400 = vmatprep.subr.bf16.mxu0 %v3241_v53 }
 0x6d5   : > { %3298 = vmatmul.mubr.bf16.vlgmr.msra.gmra.mxu0 %v7510_v60 }
 0x6d6   : > { %3376 = vmatpush2.bf16.msra.mxu1 %v3208_v28  ;;  %3401 = vmatpush1.bf16.msra.mxu0 %v3240_v4  ;;  %v3236_v31 = vpack.c.bf16 %v3000_v9, %v2996_v10  ;;  %v3237_v24 = vpack.c.bf16 %v3001_v61, %v2997_v30 }
 0x6d7   : > { %3377 = vmatprep.subr.bf16.mxu1 %v3205_v16  ;;  %3420 = vmatprep.mubr.bf16.mxu0 %v7511_v50 }
 0x6d8   : > { %3402 = vmatprep.subr.bf16.mxu0 %v3237_v24 }
 0x6da   : > { %3378 = vmatpush2.bf16.msra.mxu1 %v7514_v51  ;;  %3403 = vmatpush1.bf16.msra.mxu0 %v3236_v31 }
 0x6dd   : > { %3380 = vmatmul.mubr.bf16.vlgmr.msra.gmra.mxu1 %v7510_v60  ;;  %3582 = vmatmul.mubr.msk.bf16.vlgmr.msra.gmra.mxu0 %vm3261_vm11, %v6599_v57 }
 0x758   : > { %v3340_v37 = vpop.f32.mrf.mxu1 }
 0x75a   : > { %v3342_v52 = vpop.f32.mrf.mxu1 }
 0x75c   : > { %v3344_v25 = vpop.f32.mrf.mxu1 }
 0x75e   : > { %v3345_v1 = vpop.f32.mrf.mxu1 }
 0x795   : > { %v3299_v41 = vpop.f32.mrf.mxu0 }
 0x796   : > { %v3341_v20 = vadd.f32 %v3340_v37, %v3299_v41 }
 0x797   : > { %v3301_v38 = vpop.f32.mrf.mxu0 }
 0x798   : > { %v3429_v56 = vadd.f32 %v3341_v20, %v7515_v18  ;;  %v3343_v43 = vadd.f32 %v3342_v52, %v3301_v38 }
 0x799   : > { %v3303_v22 = vpop.f32.mrf.mxu0 }
 0x79a   : > { %v3441_v23 = vrot.slane %v3429_v56, 4  ;;  %v3430_v40 = vadd.f32 %v3343_v43, %v7516_v5 }
 0x79b   : > { %v3304_v32 = vpop.f32.mrf.mxu0 }
 0x79c   : > { %3449 = vst [vmem:[%s4512_s18] sm:$0xf0] %v3441_v23  ;;  %v3442_v57 = vrot.slane %v3430_v40, 4 }
 0x79d   : > { %v3381_v33 = vpop.f32.mrf.mxu1  ;;  %v3422_v29 = vpop.f32.mrf.mxu0 }
 0x79e   : > { %3450 = vst [vmem:[%s4512_s18 + $0x8] sm:$0xf0] %v3442_v57  ;;  %v3423_v34 = vadd.f32 %v3422_v29, %v3381_v33 }
 0x79f   : > { %v3383_v62 = vpop.f32.mrf.mxu1  ;;  %v3424_v35 = vpop.f32.mrf.mxu0 }
 0x7a0   : > { %v3431_v7 = vadd.f32 %v3423_v34, %v7517_v19  ;;  %v3425_v0 = vadd.f32 %v3424_v35, %v3383_v62 }
 0x7a1   : > { %v3385_v8 = vpop.f32.mrf.mxu1  ;;  %v3426_v21 = vpop.f32.mrf.mxu0 }
 0x7a2   : > { %v3443_v6 = vrot.slane %v3431_v7, 4  ;;  %v3432_v44 = vadd.f32 %v3425_v0, %v7518_v49 }
 0x7a3   : > { %v3386_v2 = vpop.f32.mrf.mxu1  ;;  %v3427_v42 = vpop.f32.mrf.mxu0 }
 0x7a4   : > { %3451 = vst [vmem:[%s4512_s18 + $0x10] sm:$0xf0] %v3443_v6  ;;  %v3444_v13 = vrot.slane %v3432_v44, 4 }
 0x7a6   : > { %3452 = vst [vmem:[%s4512_s18 + $0x18] sm:$0xf0] %v3444_v13 }
 0x7a7   : > { %4050 = shalt.err (!%p4047_p3)
}
 0x7a8   : > { %s4051_s17 = scalar_lea.hbm %s3466_s29, 512  ;;  %s4055_s28 = scalar_lea.hbm %s7020_s6, 4096 }
 0x7a9   : > { %p4052_p4 = scmp.ne.s32.totalorder %s3466_s29, %s4051_s17  ;;  %p4056_p9 = scmp.lt.s32.totalorder %s3466_s29, %s7020_s6 }
 0x7aa   : > { %p4057_p10 = scmp.lt.s32.totalorder %s4055_s28, %s4051_s17 }
 0x7ab   : > { %p4053_p7 = pnand %p4052_p4, %p4184_p5 }
 0x7ac   : > { %p4058_p11 = por %p4057_p10, %p4056_p9 }
 0x7ad   : > { %p4054_p8 = pneg %p4053_p7 }
 0x7af   : > { %p4059_p12 = pnand %p4058_p11, %p4054_p8 }
 0x7b1   : > { %4062 = shalt.err (!%p4059_p12)
}
 0x7b2   : > { %3906 = dma.vmem_to_hbm [thread:$0]  (%p4184_p5), %s3469_s11, 512, %s3466_s29, %s3454_s19  }
 0x7b3 PF: > { %p3912_p13 = scmp.ge.s32.totalorder %s4097_s24, 2  ;;  %s3480_s12 = sand.u32 1, %s4085_s21  }
 0x7b4   : > { %s3481_s14 = scalar_lea.sflag [#allocation5], %s3480_s12 }
 0x7b5   : > { %p3909_p0 = pnand %p3912_p13, %p4188_p6 }
 0x7b7   : > { %p3910_p1 = pneg %p3909_p0 }
 0x7b9   : > { %4080 = dma.done.wait (%p3910_p1), %s3481_s14, 512  }
 0x7ba   : > { %4082 = vsyncadd (%p3910_p1), %s3481_s14, 4294966784  ;;  %p16_p2 = scmp.ge.s32.totalorder %s4171_s27, 10   ;;  %s7520_s21 = smov %s4089_s22 }
 0x7bb   : > { %s7521_s22 = smov %s4093_s23  ;;  %s7522_s23 = smov %s4182_s30 }
 0x7bc   : > { %s7523_s24 = smov %s4171_s27  ;;  %18 = sbr.rel (!%p16_p2) target bundleno = 3 (0x3), region = 79 }
 0x7c1   :  { %3486 = vsyncpa [#allocation5], 1 }
 0x7c2   :  { %3488 = vsyncpa [#allocation5 + $0x1], 1 }

</bundles_post_ra>
